<compile_context>
chip_gen: v6e
topology: v6e:2x2x1
jax: 0.10.0
libtpu: 0.0.40
codegen_flags: <defaults>
</compile_context>

<pallas_src>
import functools

import numpy as np
import jax
import jax.numpy as jnp
from jax import lax
from jax.experimental import pallas as pl
from jax.experimental.pallas import tpu as pltpu


# ---------------------------------------------------------------------------
# Fused kernel: one grid step == B samples.  Everything is kept as 2-D
# lane-dense slabs; row index = (sample, image-row) folded together.
# ---------------------------------------------------------------------------
def _lenet_kernel(x_ref, bm1_ref, b1_ref, pw1_ref, ph1_ref,
                  bm2_ref, b2_ref, pw2_ref, ph2_ref,
                  w1b_ref, bf1_ref, w2t_ref, bf2_ref, w3t_ref, bf3_ref,
                  o_ref, *, block_b):
    f32 = jnp.float32
    B = block_b
    R1 = B * 36                      # conv1 rows per step (rows 0..31 valid/sample)
    R2 = B * 16                      # conv2 rows per step (rows 0..11 valid/sample)

    # ---- conv1 + bias + tanh: ONE (R1,180)x(180,256) matmul ----------------
    x = x_ref[...]                                            # (B*36, 36)
    xpad = jnp.concatenate([x, jnp.zeros((8, 36), f32)], axis=0)
    s1 = jnp.concatenate([xpad[kh:kh + R1, :] for kh in range(5)], axis=1)
    a1 = jnp.tanh(jnp.dot(s1, bm1_ref[...], preferred_element_type=f32)
                  + b1_ref[...])                              # (B*36, 256)

    # ---- avg-pool 2x2 (width on lanes, height on rows, both matmuls) -------
    a1w = jnp.dot(a1, pw1_ref[...], preferred_element_type=f32)   # (B*36, 128)
    p1 = jnp.dot(ph1_ref[...], a1w, preferred_element_type=f32)   # (B*16+8, 128)

    # ---- conv2 + bias + tanh: ONE (R2,640)x(640,256) matmul ----------------
    s2 = jnp.concatenate([p1[kh:kh + R2, :] for kh in range(5)], axis=1)
    a2 = jnp.tanh(jnp.dot(s2, bm2_ref[...], preferred_element_type=f32)
                  + b2_ref[...])                              # (B*16, 256)

    # ---- avg-pool 2x2; height pool emits rows in (r, b) order ---------------
    a2w = jnp.dot(a2, pw2_ref[...], preferred_element_type=f32)   # (B*16, 128)
    p2 = jnp.dot(ph2_ref[...], a2w, preferred_element_type=f32)   # (6*B, 128)

    # ---- fc1: fold the 6 pooled rows into lanes -> ONE K=768 matmul --------
    f1in = jnp.concatenate([p2[r * B:(r + 1) * B, :] for r in range(6)],
                           axis=1)                            # (B, 768)
    f1 = jnp.tanh(jnp.dot(f1in, w1b_ref[...], preferred_element_type=f32)
                  + bf1_ref[...])                             # (B, 128)

    # ---- fc2 + tanh, fc3 ----------------------------------------------------
    f2 = jnp.tanh(jnp.dot(f1, w2t_ref[...], preferred_element_type=f32)
                  + bf2_ref[...])                             # (B, 128)
    o_ref[...] = (jnp.dot(f2, w3t_ref[...], preferred_element_type=f32)
                  + bf3_ref[...])                             # (B, 128)


# ---------------------------------------------------------------------------
# One-time weight repacking (host-side layout plumbing, numpy).
# ---------------------------------------------------------------------------
def prepare_lenet_params(p):
    f32 = np.float32
    w1 = np.asarray(p["conv1_w"], f32)[:, 0]          # (6,5,5)
    b1 = np.asarray(p["conv1_b"], f32)
    w2 = np.asarray(p["conv2_w"], f32)                 # (16,6,5,5)
    b2 = np.asarray(p["conv2_b"], f32)
    fc1w = np.asarray(p["fc1_w"], f32); fc1b = np.asarray(p["fc1_b"], f32)
    fc2w = np.asarray(p["fc2_w"], f32); fc2b = np.asarray(p["fc2_b"], f32)
    fc3w = np.asarray(p["fc3_w"], f32); fc3b = np.asarray(p["fc3_b"], f32)

    # conv1: BM1[kh*36 + (w+kw), c*32 + w] = w1[c, kh, kw]   -> (180, 256)
    bm1 = np.zeros((180, 256), f32)
    for c in range(6):
        for kh in range(5):
            for kw in range(5):
                for w in range(32):
                    bm1[kh * 36 + w + kw, c * 32 + w] = w1[c, kh, kw]
    b1r = np.zeros((1, 256), f32)
    for c in range(6):
        b1r[0, c * 32:(c + 1) * 32] = b1[c]

    # conv1 width pool: PW1[c*32+2s+t, c*16+s] = 0.5          -> (256, 128)
    pw1 = np.zeros((256, 128), f32)
    for c in range(6):
        for s in range(16):
            pw1[c * 32 + 2 * s, c * 16 + s] = 0.5
            pw1[c * 32 + 2 * s + 1, c * 16 + s] = 0.5

    # conv2: BM2[kh*128 + ci*16 + (j+kw), co*12 + j] = w2[co,ci,kh,kw] -> (640,256)
    bm2 = np.zeros((640, 256), f32)
    for co in range(16):
        for ci in range(6):
            for kh in range(5):
                for kw in range(5):
                    for j in range(12):
                        bm2[kh * 128 + ci * 16 + j + kw, co * 12 + j] = w2[co, ci, kh, kw]
    b2r = np.zeros((1, 256), f32)
    for co in range(16):
        b2r[0, co * 12:(co + 1) * 12] = b2[co]

    # conv2 width pool: PW2[co*12+2s+t, co*6+s] = 0.5          -> (256, 128)
    pw2 = np.zeros((256, 128), f32)
    for co in range(16):
        for s in range(6):
            pw2[co * 12 + 2 * s, co * 6 + s] = 0.5
            pw2[co * 12 + 2 * s + 1, co * 6 + s] = 0.5

    # fc1: W1B[r*128 + co*6 + s, o] = fc1_w[o, co*36 + r*6 + s] -> (768, 128)
    w1b = np.zeros((768, 128), f32)
    for r in range(6):
        for co in range(16):
            for s in range(6):
                w1b[r * 128 + co * 6 + s, :120] = fc1w[:, co * 36 + r * 6 + s]
    b1f = np.zeros((1, 128), f32); b1f[0, :120] = fc1b
    w2t = np.zeros((128, 128), f32); w2t[:120, :84] = fc2w.T
    b2f = np.zeros((1, 128), f32); b2f[0, :84] = fc2b
    w3t = np.zeros((128, 128), f32); w3t[:84, :10] = fc3w.T
    b3f = np.zeros((1, 128), f32); b3f[0, :10] = fc3b

    packed = dict(bm1=bm1, b1r=b1r, pw1=pw1, bm2=bm2, b2r=b2r, pw2=pw2,
                  w1b=w1b, b1f=b1f, w2t=w2t, b2f=b2f, w3t=w3t, b3f=b3f)
    return {k: jnp.asarray(v) for k, v in packed.items()}


def _pool_height_matrices(B):
    """Block-diagonal 2x2 height-pool matrices (depend only on B)."""
    # PH1: (b, r) rows from (b, 2r)/(b, 2r+1) conv1 rows; 8 trailing zero rows
    # double as the zero pad for conv2's row-window slab.
    ph1 = np.zeros((B * 16 + 8, B * 36), np.float32)
    for b in range(B):
        for r in range(16):
            ph1[b * 16 + r, b * 36 + 2 * r] = 0.5
            ph1[b * 16 + r, b * 36 + 2 * r + 1] = 0.5
    # PH2 emits rows in (r, b) order so fc1's row->lane fold is vreg-aligned.
    ph2 = np.zeros((6 * B, B * 16), np.float32)
    for b in range(B):
        for r in range(6):
            ph2[r * B + b, b * 16 + 2 * r] = 0.5
            ph2[r * B + b, b * 16 + 2 * r + 1] = 0.5
    return jnp.asarray(ph1), jnp.asarray(ph2)


_OPERAND_ORDER = ("bm1", "b1r", "pw1", "ph1", "bm2", "b2r", "pw2", "ph2",
                  "w1b", "b1f", "w2t", "b2f", "w3t", "b3f")


# ---------------------------------------------------------------------------
# Forward: pad input (tiny XLA op) + ONE pallas_call over batch blocks.
# ---------------------------------------------------------------------------
def lenet_forward(x, kp, *, block_b=8):
    """x: (N, 1, 32, 32) f32; kp: output of prepare_lenet_params."""
    N = x.shape[0]
    B = int(block_b)                                   # B*32 = 256 on v6e/v7x
    n_pad = -(-N // B) * B
    xp = jnp.pad(x[:, 0].astype(jnp.float32),
                 ((0, n_pad - N), (2, 2), (2, 2)))     # (n_pad, 36, 36)
    x2d = xp.reshape(n_pad * 36, 36)                   # rows = (sample, row)

    ph1, ph2 = _pool_height_matrices(B)
    operands = dict(kp, ph1=ph1, ph2=ph2)
    weights = [operands[name] for name in _OPERAND_ORDER]

    in_specs = [pl.BlockSpec((B * 36, 36), lambda n: (n, 0))]
    in_specs += [pl.BlockSpec(w.shape, lambda n: (0, 0)) for w in weights]

    out = pl.pallas_call(
        functools.partial(_lenet_kernel, block_b=B),
        out_shape=jax.ShapeDtypeStruct((n_pad, 128), jnp.float32),
        grid=(n_pad // B,),
        in_specs=in_specs,
        out_specs=pl.BlockSpec((B, 128), lambda n: (n, 0)),
        compiler_params=pltpu.CompilerParams(
            dimension_semantics=("parallel",)),
    )(x2d, *weights)
    return out[:N, :10]


# ---------------------------------------------------------------------------
# Params + pure-JAX reference (PyTorch semantics) for the sanity check.
# ---------------------------------------------------------------------------
def init_params(key):
    ks = jax.random.split(key, 10)

    def w(k, shape, scale):
        return (scale * jax.random.normal(k, shape)).astype(jnp.float32)

    return {
        "conv1_w": w(ks[0], (6, 1, 5, 5), 0.2),
        "conv1_b": w(ks[1], (6,), 0.1),
        "conv2_w": w(ks[2], (16, 6, 5, 5), 0.1),
        "conv2_b": w(ks[3], (16,), 0.1),
        "fc1_w": w(ks[4], (120, 16 * 6 * 6), 0.05),
        "fc1_b": w(ks[5], (120,), 0.05),
        "fc2_w": w(ks[6], (84, 120), 0.1),
        "fc2_b": w(ks[7], (84,), 0.1),
        "fc3_w": w(ks[8], (10, 84), 0.1),
        "fc3_b": w(ks[9], (10,), 0.1),
    }


def lenet_reference(x, p):
    dn = ("NCHW", "OIHW", "NCHW")
    hi = lax.Precision.HIGHEST

    def conv(x, w, b, pad):
        y = lax.conv_general_dilated(
            x, w, (1, 1), ((pad, pad), (pad, pad)),
            dimension_numbers=dn, precision=hi)
        return jnp.tanh(y + b[None, :, None, None])

    def pool(x):
        N, C, H, W = x.shape
        return x.reshape(N, C, H // 2, 2, W // 2, 2).mean(axis=(3, 5))

    x = pool(conv(x, p["conv1_w"], p["conv1_b"], 2))
    x = pool(conv(x, p["conv2_w"], p["conv2_b"], 0))
    x = x.reshape(x.shape[0], -1)
    x = jnp.tanh(jnp.dot(x, p["fc1_w"].T, precision=hi) + p["fc1_b"])
    x = jnp.tanh(jnp.dot(x, p["fc2_w"].T, precision=hi) + p["fc2_b"])
    return jnp.dot(x, p["fc3_w"].T, precision=hi) + p["fc3_b"]


if __name__ == "__main__":
    key = jax.random.PRNGKey(0)
    kx, kparam = jax.random.split(key)
    # fc1 expects 16*6*6 features -> input spatial size 32x32, 1 channel.
    # N=16 with B=8 gives a 2-step parallel grid (splits across v7x's 2 TCs).
    x = jax.random.normal(kx, (16, 1, 32, 32), dtype=jnp.float32)
    params = init_params(kparam)

    kernel_params = prepare_lenet_params(params)       # one-time repack
    out = jax.jit(lenet_forward)(x, kernel_params)
    out = jax.block_until_ready(out)
    assert out.shape == (16, 10)

    ref = lenet_reference(x, params)
    np.testing.assert_allclose(np.asarray(out), np.asarray(ref),
                               rtol=5e-3, atol=5e-3)
    print("KERNEL_OK")
</pallas_src>

<mosaic_0001>
module attributes {stable_mosaic.version = 11 : i64} {
  func.func @_lenet_kernel(%arg0: i32, %arg1: memref<288x36xf32, #tpu.memory_space<vmem>>, %arg2: memref<180x256xf32, #tpu.memory_space<vmem>>, %arg3: memref<1x256xf32, #tpu.memory_space<vmem>>, %arg4: memref<256x128xf32, #tpu.memory_space<vmem>>, %arg5: memref<136x288xf32, #tpu.memory_space<vmem>>, %arg6: memref<640x256xf32, #tpu.memory_space<vmem>>, %arg7: memref<1x256xf32, #tpu.memory_space<vmem>>, %arg8: memref<256x128xf32, #tpu.memory_space<vmem>>, %arg9: memref<48x128xf32, #tpu.memory_space<vmem>>, %arg10: memref<768x128xf32, #tpu.memory_space<vmem>>, %arg11: memref<1x128xf32, #tpu.memory_space<vmem>>, %arg12: memref<128x128xf32, #tpu.memory_space<vmem>>, %arg13: memref<1x128xf32, #tpu.memory_space<vmem>>, %arg14: memref<128x128xf32, #tpu.memory_space<vmem>>, %arg15: memref<1x128xf32, #tpu.memory_space<vmem>>, %arg16: memref<8x128xf32, #tpu.memory_space<vmem>>) attributes {dimension_semantics = [#tpu.dimension_semantics<parallel>], iteration_bounds = array<i64: 2>, scalar_prefetch = 0 : i64, scratch_operands = 0 : i64, tpu.core_type = #tpu.core_type<tc>, window_params = [{transform_indices = @transform_0, window_bounds = array<i64: 288, 36>}, {pipeline_mode = #tpu.pipeline_mode<synchronous>, transform_indices = @transform_1, window_bounds = array<i64: 180, 256>}, {pipeline_mode = #tpu.pipeline_mode<synchronous>, transform_indices = @transform_2, window_bounds = array<i64: 1, 256>}, {pipeline_mode = #tpu.pipeline_mode<synchronous>, transform_indices = @transform_3, window_bounds = array<i64: 256, 128>}, {pipeline_mode = #tpu.pipeline_mode<synchronous>, transform_indices = @transform_4, window_bounds = array<i64: 136, 288>}, {pipeline_mode = #tpu.pipeline_mode<synchronous>, transform_indices = @transform_5, window_bounds = array<i64: 640, 256>}, {pipeline_mode = #tpu.pipeline_mode<synchronous>, transform_indices = @transform_6, window_bounds = array<i64: 1, 256>}, {pipeline_mode = #tpu.pipeline_mode<synchronous>, transform_indices = @transform_7, window_bounds = array<i64: 256, 128>}, {pipeline_mode = #tpu.pipeline_mode<synchronous>, transform_indices = @transform_8, window_bounds = array<i64: 48, 128>}, {pipeline_mode = #tpu.pipeline_mode<synchronous>, transform_indices = @transform_9, window_bounds = array<i64: 768, 128>}, {pipeline_mode = #tpu.pipeline_mode<synchronous>, transform_indices = @transform_10, window_bounds = array<i64: 1, 128>}, {pipeline_mode = #tpu.pipeline_mode<synchronous>, transform_indices = @transform_11, window_bounds = array<i64: 128, 128>}, {pipeline_mode = #tpu.pipeline_mode<synchronous>, transform_indices = @transform_12, window_bounds = array<i64: 1, 128>}, {pipeline_mode = #tpu.pipeline_mode<synchronous>, transform_indices = @transform_13, window_bounds = array<i64: 128, 128>}, {pipeline_mode = #tpu.pipeline_mode<synchronous>, transform_indices = @transform_14, window_bounds = array<i64: 1, 128>}, {transform_indices = @transform_15, window_bounds = array<i64: 8, 128>}]} {
    %c0 = arith.constant 0 : index
    %c0_0 = arith.constant 0 : index
    %0 = vector.load %arg1[%c0, %c0_0] : memref<288x36xf32, #tpu.memory_space<vmem>>, vector<288x36xf32>
    %cst = arith.constant 0.000000e+00 : f32
    %1 = vector.broadcast %cst : f32 to vector<8x36xf32>
    %2 = tpu.concatenate %0, %1 in 0 : vector<288x36xf32>, vector<8x36xf32> -> vector<296x36xf32>
    %3 = vector.extract_strided_slice %2 {offsets = [0, 0], sizes = [288, 36], strides = [1, 1]} : vector<296x36xf32> to vector<288x36xf32>
    %4 = vector.extract_strided_slice %2 {offsets = [1, 0], sizes = [288, 36], strides = [1, 1]} : vector<296x36xf32> to vector<288x36xf32>
    %5 = vector.extract_strided_slice %2 {offsets = [2, 0], sizes = [288, 36], strides = [1, 1]} : vector<296x36xf32> to vector<288x36xf32>
    %6 = vector.extract_strided_slice %2 {offsets = [3, 0], sizes = [288, 36], strides = [1, 1]} : vector<296x36xf32> to vector<288x36xf32>
    %7 = vector.extract_strided_slice %2 {offsets = [4, 0], sizes = [288, 36], strides = [1, 1]} : vector<296x36xf32> to vector<288x36xf32>
    %8 = tpu.concatenate %3, %4, %5, %6, %7 in 1 : vector<288x36xf32>, vector<288x36xf32>, vector<288x36xf32>, vector<288x36xf32>, vector<288x36xf32> -> vector<288x180xf32>
    %c0_1 = arith.constant 0 : index
    %c0_2 = arith.constant 0 : index
    %9 = vector.load %arg2[%c0_1, %c0_2] : memref<180x256xf32, #tpu.memory_space<vmem>>, vector<180x256xf32>
    %cst_3 = arith.constant dense<0.000000e+00> : vector<288x256xf32>
    %10 = tpu.matmul %8, %9, %cst_3 {dimension_numbers = #tpu.dot_dimension_numbers<[1], [0], [0], [1], [0, 0, 1, 1], [], []>} : vector<288x180xf32>, vector<180x256xf32>, vector<288x256xf32> -> vector<288x256xf32>
    %c0_4 = arith.constant 0 : index
    %c0_5 = arith.constant 0 : index
    %11 = vector.load %arg3[%c0_4, %c0_5] : memref<1x256xf32, #tpu.memory_space<vmem>>, vector<1x256xf32>
    %12 = vector.broadcast %11 : vector<1x256xf32> to vector<288x256xf32>
    %13 = arith.addf %10, %12 : vector<288x256xf32>
    %14 = math.tanh %13 : vector<288x256xf32>
    %c0_6 = arith.constant 0 : index
    %c0_7 = arith.constant 0 : index
    %15 = vector.load %arg4[%c0_6, %c0_7] : memref<256x128xf32, #tpu.memory_space<vmem>>, vector<256x128xf32>
    %cst_8 = arith.constant dense<0.000000e+00> : vector<288x128xf32>
    %16 = tpu.matmul %14, %15, %cst_8 {dimension_numbers = #tpu.dot_dimension_numbers<[1], [0], [0], [1], [0, 0, 1, 1], [], []>} : vector<288x256xf32>, vector<256x128xf32>, vector<288x128xf32> -> vector<288x128xf32>
    %c0_9 = arith.constant 0 : index
    %c0_10 = arith.constant 0 : index
    %17 = vector.load %arg5[%c0_9, %c0_10] : memref<136x288xf32, #tpu.memory_space<vmem>>, vector<136x288xf32>
    %cst_11 = arith.constant dense<0.000000e+00> : vector<136x128xf32>
    %18 = tpu.matmul %17, %16, %cst_11 {dimension_numbers = #tpu.dot_dimension_numbers<[1], [0], [0], [1], [0, 0, 1, 1], [], []>} : vector<136x288xf32>, vector<288x128xf32>, vector<136x128xf32> -> vector<136x128xf32>
    %19 = vector.extract_strided_slice %18 {offsets = [0, 0], sizes = [128, 128], strides = [1, 1]} : vector<136x128xf32> to vector<128x128xf32>
    %20 = vector.extract_strided_slice %18 {offsets = [1, 0], sizes = [128, 128], strides = [1, 1]} : vector<136x128xf32> to vector<128x128xf32>
    %21 = vector.extract_strided_slice %18 {offsets = [2, 0], sizes = [128, 128], strides = [1, 1]} : vector<136x128xf32> to vector<128x128xf32>
    %22 = vector.extract_strided_slice %18 {offsets = [3, 0], sizes = [128, 128], strides = [1, 1]} : vector<136x128xf32> to vector<128x128xf32>
    %23 = vector.extract_strided_slice %18 {offsets = [4, 0], sizes = [128, 128], strides = [1, 1]} : vector<136x128xf32> to vector<128x128xf32>
    %24 = tpu.concatenate %19, %20, %21, %22, %23 in 1 : vector<128x128xf32>, vector<128x128xf32>, vector<128x128xf32>, vector<128x128xf32>, vector<128x128xf32> -> vector<128x640xf32>
    %c0_12 = arith.constant 0 : index
    %c0_13 = arith.constant 0 : index
    %25 = vector.load %arg6[%c0_12, %c0_13] : memref<640x256xf32, #tpu.memory_space<vmem>>, vector<640x256xf32>
    %cst_14 = arith.constant dense<0.000000e+00> : vector<128x256xf32>
    %26 = tpu.matmul %24, %25, %cst_14 {dimension_numbers = #tpu.dot_dimension_numbers<[1], [0], [0], [1], [0, 0, 1, 1], [], []>} : vector<128x640xf32>, vector<640x256xf32>, vector<128x256xf32> -> vector<128x256xf32>
    %c0_15 = arith.constant 0 : index
    %c0_16 = arith.constant 0 : index
    %27 = vector.load %arg7[%c0_15, %c0_16] : memref<1x256xf32, #tpu.memory_space<vmem>>, vector<1x256xf32>
    %28 = vector.broadcast %27 : vector<1x256xf32> to vector<128x256xf32>
    %29 = arith.addf %26, %28 : vector<128x256xf32>
    %30 = math.tanh %29 : vector<128x256xf32>
    %c0_17 = arith.constant 0 : index
    %c0_18 = arith.constant 0 : index
    %31 = vector.load %arg8[%c0_17, %c0_18] : memref<256x128xf32, #tpu.memory_space<vmem>>, vector<256x128xf32>
    %cst_19 = arith.constant dense<0.000000e+00> : vector<128x128xf32>
    %32 = tpu.matmul %30, %31, %cst_19 {dimension_numbers = #tpu.dot_dimension_numbers<[1], [0], [0], [1], [0, 0, 1, 1], [], []>} : vector<128x256xf32>, vector<256x128xf32>, vector<128x128xf32> -> vector<128x128xf32>
    %c0_20 = arith.constant 0 : index
    %c0_21 = arith.constant 0 : index
    %33 = vector.load %arg9[%c0_20, %c0_21] : memref<48x128xf32, #tpu.memory_space<vmem>>, vector<48x128xf32>
    %cst_22 = arith.constant dense<0.000000e+00> : vector<48x128xf32>
    %34 = tpu.matmul %33, %32, %cst_22 {dimension_numbers = #tpu.dot_dimension_numbers<[1], [0], [0], [1], [0, 0, 1, 1], [], []>} : vector<48x128xf32>, vector<128x128xf32>, vector<48x128xf32> -> vector<48x128xf32>
    %35 = vector.extract_strided_slice %34 {offsets = [0, 0], sizes = [8, 128], strides = [1, 1]} : vector<48x128xf32> to vector<8x128xf32>
    %36 = vector.extract_strided_slice %34 {offsets = [8, 0], sizes = [8, 128], strides = [1, 1]} : vector<48x128xf32> to vector<8x128xf32>
    %37 = vector.extract_strided_slice %34 {offsets = [16, 0], sizes = [8, 128], strides = [1, 1]} : vector<48x128xf32> to vector<8x128xf32>
    %38 = vector.extract_strided_slice %34 {offsets = [24, 0], sizes = [8, 128], strides = [1, 1]} : vector<48x128xf32> to vector<8x128xf32>
    %39 = vector.extract_strided_slice %34 {offsets = [32, 0], sizes = [8, 128], strides = [1, 1]} : vector<48x128xf32> to vector<8x128xf32>
    %40 = vector.extract_strided_slice %34 {offsets = [40, 0], sizes = [8, 128], strides = [1, 1]} : vector<48x128xf32> to vector<8x128xf32>
    %41 = tpu.concatenate %35, %36, %37, %38, %39, %40 in 1 : vector<8x128xf32>, vector<8x128xf32>, vector<8x128xf32>, vector<8x128xf32>, vector<8x128xf32>, vector<8x128xf32> -> vector<8x768xf32>
    %c0_23 = arith.constant 0 : index
    %c0_24 = arith.constant 0 : index
    %42 = vector.load %arg10[%c0_23, %c0_24] : memref<768x128xf32, #tpu.memory_space<vmem>>, vector<768x128xf32>
    %cst_25 = arith.constant dense<0.000000e+00> : vector<8x128xf32>
    %43 = tpu.matmul %41, %42, %cst_25 {dimension_numbers = #tpu.dot_dimension_numbers<[1], [0], [0], [1], [0, 0, 1, 1], [], []>} : vector<8x768xf32>, vector<768x128xf32>, vector<8x128xf32> -> vector<8x128xf32>
    %c0_26 = arith.constant 0 : index
    %c0_27 = arith.constant 0 : index
    %44 = vector.load %arg11[%c0_26, %c0_27] : memref<1x128xf32, #tpu.memory_space<vmem>>, vector<1x128xf32>
    %45 = vector.broadcast %44 : vector<1x128xf32> to vector<8x128xf32>
    %46 = arith.addf %43, %45 : vector<8x128xf32>
    %47 = math.tanh %46 : vector<8x128xf32>
    %c0_28 = arith.constant 0 : index
    %c0_29 = arith.constant 0 : index
    %48 = vector.load %arg12[%c0_28, %c0_29] : memref<128x128xf32, #tpu.memory_space<vmem>>, vector<128x128xf32>
    %cst_30 = arith.constant dense<0.000000e+00> : vector<8x128xf32>
    %49 = tpu.matmul %47, %48, %cst_30 {dimension_numbers = #tpu.dot_dimension_numbers<[1], [0], [0], [1], [0, 0, 1, 1], [], []>} : vector<8x128xf32>, vector<128x128xf32>, vector<8x128xf32> -> vector<8x128xf32>
    %c0_31 = arith.constant 0 : index
    %c0_32 = arith.constant 0 : index
    %50 = vector.load %arg13[%c0_31, %c0_32] : memref<1x128xf32, #tpu.memory_space<vmem>>, vector<1x128xf32>
    %51 = vector.broadcast %50 : vector<1x128xf32> to vector<8x128xf32>
    %52 = arith.addf %49, %51 : vector<8x128xf32>
    %53 = math.tanh %52 : vector<8x128xf32>
    %c0_33 = arith.constant 0 : index
    %c0_34 = arith.constant 0 : index
    %54 = vector.load %arg14[%c0_33, %c0_34] : memref<128x128xf32, #tpu.memory_space<vmem>>, vector<128x128xf32>
    %cst_35 = arith.constant dense<0.000000e+00> : vector<8x128xf32>
    %55 = tpu.matmul %53, %54, %cst_35 {dimension_numbers = #tpu.dot_dimension_numbers<[1], [0], [0], [1], [0, 0, 1, 1], [], []>} : vector<8x128xf32>, vector<128x128xf32>, vector<8x128xf32> -> vector<8x128xf32>
    %c0_36 = arith.constant 0 : index
    %c0_37 = arith.constant 0 : index
    %56 = vector.load %arg15[%c0_36, %c0_37] : memref<1x128xf32, #tpu.memory_space<vmem>>, vector<1x128xf32>
    %57 = vector.broadcast %56 : vector<1x128xf32> to vector<8x128xf32>
    %58 = arith.addf %55, %57 : vector<8x128xf32>
    %c0_38 = arith.constant 0 : index
    %c0_39 = arith.constant 0 : index
    %59 = vector.load %arg16[%c0_38, %c0_39] : memref<8x128xf32, #tpu.memory_space<vmem>>, vector<8x128xf32>
    tpu.vector_store %arg16[%c0_38, %c0_39], %58 {strides = array<i32>} : memref<8x128xf32, #tpu.memory_space<vmem>>, vector<8x128xf32>,
    return
  }
  func.func @transform_0(%arg0: i32) -> (i32, i32) {
    %c0_i32 = arith.constant 0 : i32
    %c0_i32_0 = arith.constant 0 : i32
    return %arg0, %c0_i32 : i32, i32
  }
  func.func @transform_1(%arg0: i32) -> (i32, i32) {
    %c0_i32 = arith.constant 0 : i32
    %c0_i32_0 = arith.constant 0 : i32
    %c0_i32_1 = arith.constant 0 : i32
    return %c0_i32, %c0_i32_0 : i32, i32
  }
  func.func @transform_2(%arg0: i32) -> (i32, i32) {
    %c0_i32 = arith.constant 0 : i32
    %c0_i32_0 = arith.constant 0 : i32
    %c0_i32_1 = arith.constant 0 : i32
    return %c0_i32, %c0_i32_0 : i32, i32
  }
  func.func @transform_3(%arg0: i32) -> (i32, i32) {
    %c0_i32 = arith.constant 0 : i32
    %c0_i32_0 = arith.constant 0 : i32
    %c0_i32_1 = arith.constant 0 : i32
    return %c0_i32, %c0_i32_0 : i32, i32
  }
  func.func @transform_4(%arg0: i32) -> (i32, i32) {
    %c0_i32 = arith.constant 0 : i32
    %c0_i32_0 = arith.constant 0 : i32
    %c0_i32_1 = arith.constant 0 : i32
    return %c0_i32, %c0_i32_0 : i32, i32
  }
  func.func @transform_5(%arg0: i32) -> (i32, i32) {
    %c0_i32 = arith.constant 0 : i32
    %c0_i32_0 = arith.constant 0 : i32
    %c0_i32_1 = arith.constant 0 : i32
    return %c0_i32, %c0_i32_0 : i32, i32
  }
  func.func @transform_6(%arg0: i32) -> (i32, i32) {
    %c0_i32 = arith.constant 0 : i32
    %c0_i32_0 = arith.constant 0 : i32
    %c0_i32_1 = arith.constant 0 : i32
    return %c0_i32, %c0_i32_0 : i32, i32
  }
  func.func @transform_7(%arg0: i32) -> (i32, i32) {
    %c0_i32 = arith.constant 0 : i32
    %c0_i32_0 = arith.constant 0 : i32
    %c0_i32_1 = arith.constant 0 : i32
    return %c0_i32, %c0_i32_0 : i32, i32
  }
  func.func @transform_8(%arg0: i32) -> (i32, i32) {
    %c0_i32 = arith.constant 0 : i32
    %c0_i32_0 = arith.constant 0 : i32
    %c0_i32_1 = arith.constant 0 : i32
    return %c0_i32, %c0_i32_0 : i32, i32
  }
  func.func @transform_9(%arg0: i32) -> (i32, i32) {
    %c0_i32 = arith.constant 0 : i32
    %c0_i32_0 = arith.constant 0 : i32
    %c0_i32_1 = arith.constant 0 : i32
    return %c0_i32, %c0_i32_0 : i32, i32
  }
  func.func @transform_10(%arg0: i32) -> (i32, i32) {
    %c0_i32 = arith.constant 0 : i32
    %c0_i32_0 = arith.constant 0 : i32
    %c0_i32_1 = arith.constant 0 : i32
    return %c0_i32, %c0_i32_0 : i32, i32
  }
  func.func @transform_11(%arg0: i32) -> (i32, i32) {
    %c0_i32 = arith.constant 0 : i32
    %c0_i32_0 = arith.constant 0 : i32
    %c0_i32_1 = arith.constant 0 : i32
    return %c0_i32, %c0_i32_0 : i32, i32
  }
  func.func @transform_12(%arg0: i32) -> (i32, i32) {
    %c0_i32 = arith.constant 0 : i32
    %c0_i32_0 = arith.constant 0 : i32
    %c0_i32_1 = arith.constant 0 : i32
    return %c0_i32, %c0_i32_0 : i32, i32
  }
  func.func @transform_13(%arg0: i32) -> (i32, i32) {
    %c0_i32 = arith.constant 0 : i32
    %c0_i32_0 = arith.constant 0 : i32
    %c0_i32_1 = arith.constant 0 : i32
    return %c0_i32, %c0_i32_0 : i32, i32
  }
  func.func @transform_14(%arg0: i32) -> (i32, i32) {
    %c0_i32 = arith.constant 0 : i32
    %c0_i32_0 = arith.constant 0 : i32
    %c0_i32_1 = arith.constant 0 : i32
    return %c0_i32, %c0_i32_0 : i32, i32
  }
  func.func @transform_15(%arg0: i32) -> (i32, i32) {
    %c0_i32 = arith.constant 0 : i32
    %c0_i32_0 = arith.constant 0 : i32
    return %arg0, %c0_i32 : i32, i32
  }
}

</mosaic_0001>

<bundles_post_ra>
// kernel: lenet_forward.1
= control target key start
LH: loop header
LB: loop body
LE: loop exit
PB: predicated region body
PF: predicated region fallthrough
CT: control target
= control target key end

     0   :  { %s8303_s0 = inlined_call_operand.vmem [shape: f32[576,36], index: 0, kind: input, shape index: {}]   ;;  %s8304_s1 = inlined_call_operand.hbm [shape: f32[180,256], index: 1, kind: input, shape index: {}]   ;;  %s8305_s2 = inlined_call_operand.vmem [shape: f32[1,256], index: 2, kind: input, shape index: {}]   ;;  %s8306_s3 = inlined_call_operand.vmem [shape: f32[256,128], index: 3, kind: input, shape index: {}]   ;;  %s8307_s4 = inlined_call_operand.hbm [shape: f32[136,288], index: 4, kind: input, shape index: {}]   ;;  %s8308_s5 = inlined_call_operand.vmem [shape: f32[640,256], index: 5, kind: input, shape index: {}]   ;;  %s8309_s6 = inlined_call_operand.vmem [shape: f32[1,256], index: 6, kind: input, shape index: {}]   ;;  %s8310_s7 = inlined_call_operand.hbm [shape: f32[256,128], index: 7, kind: input, shape index: {}]   ;;  %s8311_s8 = inlined_call_operand.vmem [shape: f32[48,128], index: 8, kind: input, shape index: {}]   ;;  %s8312_s9 = inlined_call_operand.vmem [shape: f32[768,128], index: 9, kind: input, shape index: {}]   ;;  %s8313_s10 = inlined_call_operand.vmem [shape: f32[1,128], index: 10, kind: input, shape index: {}]   ;;  %s8314_s11 = inlined_call_operand.hbm [shape: f32[128,128], index: 11, kind: input, shape index: {}]   ;;  %s8315_s12 = inlined_call_operand.vmem [shape: f32[1,128], index: 12, kind: input, shape index: {}]   ;;  %s8316_s13 = inlined_call_operand.hbm [shape: f32[128,128], index: 13, kind: input, shape index: {}]   ;;  %s8317_s14 = inlined_call_operand.vmem [shape: f32[1,128], index: 14, kind: input, shape index: {}]   ;;  %s8318_s15 = inlined_call_operand.hbm [shape: f32[16,128], index: 15, kind: output, shape index: {}]  }
   0x1   :  { %8333 = sst [smem:[#allocation23_spill]] %s8303_s0 }
   0x2   :  { %8334 = sst [smem:[#allocation24_spill]] %s8317_s14 }
   0x3   :  { %8335 = sst [smem:[#allocation25_spill]] %s8318_s15 }
   0x4   :  { %20 = vsyncpa [#allocation3], 0 }
   0x5   :  { %21 = vsyncpa [#allocation6], 0 }
   0x6   :  { %22 = vsyncpa [#allocation9], 0 }
   0x7   :  { %23 = vsyncpa [#allocation4], 0 }
   0x8   :  { %25 = vsyncpa [#allocation4 + $0x1], 0  ;;  %s5846_s18 = smov 0   ;;  %s5848_s19 = smov 0  }
   0x9   :  { %s5850_s20 = smov 0   ;;  %s5852_s21 = smov 0  }
   0xa LB: > { %8336 = sst [smem:[#allocation16_spill]] %s5734_s18  ;;  %s5867_s22 = sadd.s32 4294967295, %s5746_s21   ;;  %s5746_s21 = sphi %s5852_s21, %s8365_s21   ;;  %s5742_s20 = sphi %s5850_s20, %s8367_s20   ;;  %s5738_s19 = sphi %s5848_s19, %s8369_s19   ;;  %s5734_s18 = sphi %s5846_s18, %s8368_s18  }
   0xb   : > { %8337 = sst [smem:[#allocation17_spill]] %s5742_s20  ;;  %s4526_s23 = sadd.s32 4294967294, %s5746_s21  }
   0xc   : > { %8338 = sst [smem:[#allocation18_spill]] %s5746_s21  ;;  %s5871_s24 = sadd.s32 1, %s5746_s21  }
   0xd   : > { %8339 = sst [smem:[#allocation19_spill]] %s5871_s24  ;;  %s358_s25 = sadd.s32 1, %s5742_s20 }
   0xe   : > { %s355_s26 = ssub.s32 %s5746_s21, %s5871_s24  ;;  %p368_p0 = scmp.ne.s32.totalorder %s5742_s20, %s5738_s19 }
   0xf   : > { %p356_p1 = scmp.eq.s32.totalorder %s355_s26, 0  ;;  %p369_p2 = scmp.eq.s32.totalorder %s5867_s22, 1 }
  0x10   : > { %p374_p3 = scmp.ne.s32.totalorder %s5738_s19, %s5734_s18  ;;  %p375_p4 = scmp.eq.s32.totalorder %s4526_s23, 1 }
  0x11   : > { %s5882_s27 = scalar_select %p356_p1, %s5742_s20, %s358_s25  }
  0x12   : > { %p5884_p5 = por %p369_p2, %p368_p0  ;;  %p5888_p6 = por %p375_p4, %p374_p3 }
  0x13   : > { %8340 = sst [smem:[#allocation20_spill]] %s5882_s27  ;;  %p4527_p7 = scmp.ge.s32.totalorder %s5746_s21, 1 }
  0x14   : > { %s8342_s29 = scalar_select %p5888_p6, 1, 0 }
  0x15   : > { %p382_p8 = scmp.lt.s32.totalorder %s5746_s21, 3  ;;  %p8330_p9 = scmp.eq.s32.totalorder %s5867_s22, 0 }
  0x16   : > { %8343 = sst [smem:[#allocation21_spill]] %s8342_s29  ;;  %s5748_s16 = smov [#allocation5]  }
  0x17   : > { %p5895_p10 = pnand %p4527_p7, %p382_p8  ;;  %s413_s17 = sshll.u32 %s5748_s16, 4  ;;  %s414_s17 = int_to_ptr.vmem [resolvable:$true] %s413_s17 }
  0x18   : > { %s5749_s25 = smov [#allocation8]   ;;  %s5555_s20 = scalar_lea.vmem %s414_s17, 6528 }
  0x19   : > { %p5058_p11 = pneg %p5895_p10  ;;  %s454_s26 = sshll.u32 %s5749_s25, 4  ;;  %s455_s26 = int_to_ptr.vmem [resolvable:$true] %s454_s26 }
  0x1a   : > { %p5556_p0 = scmp.ne.s32.totalorder %s414_s17, %s5555_s20  ;;  %p5563_p3 = scmp.lt.s32.totalorder %s414_s17, %s414_s17 }
  0x1b   : > { %p5903_p12 = pnand %p8330_p9, %p5058_p11  ;;  %p5564_p4 = scmp.lt.s32.totalorder %s5555_s20, %s5555_s20 }
  0x1d   : > { %p5909_p13 = pneg %p5903_p12  ;;  %p5565_p7 = por %p5564_p4, %p5563_p3 }
  0x1f   : > { %p5558_p1 = pnand %p5556_p0, %p5909_p13 }
  0x21   : > { %p5559_p2 = pneg %p5558_p1 }
  0x23   : > { %p5566_p8 = pnand %p5565_p7, %p5559_p2 }
  0x25   : > { %5569 = shalt.err (!%p5566_p8)
}
  0x26   : > { %s5750_s16 = smov 384   ;;  %s5751_s25 = smov 24  }
  0x27   : > { %5064 = dma.hbm_to_vmem [thread:$0]  (!%p5903_p12), %s8307_s4, 6528, %s414_s17, [#allocation6], %s5750_s16, %s5750_s16, %s5751_s25  }
  0x28   : > { %s5752_s18 = smov [#allocation2]   ;;  %s5581_s15 = scalar_lea.vmem %s455_s26, 2048 }
  0x29   : > { %s394_s21 = sshll.u32 %s5752_s18, 4  ;;  %p5582_p11 = scmp.ne.s32.totalorder %s455_s26, %s5581_s15  ;;  %s395_s21 = int_to_ptr.vmem [resolvable:$true] %s394_s21 }
  0x2a   : > { %p5589_p3 = scmp.lt.s32.totalorder %s455_s26, %s455_s26  ;;  %p5590_p2 = scmp.lt.s32.totalorder %s5581_s15, %s5581_s15 }
  0x2b   : > { %p5584_p0 = pnand %p5582_p11, %p5909_p13 }
  0x2c   : > { %p5591_p4 = por %p5590_p2, %p5589_p3 }
  0x2d   : > { %p5585_p1 = pneg %p5584_p0 }
  0x2f   : > { %p5592_p7 = pnand %p5591_p4, %p5585_p1 }
  0x31   : > { %5595 = shalt.err (!%p5592_p7)
}
  0x32   : > { %s8326_s20 = smov 128   ;;  %s8328_s14 = smov 8  }
  0x33   : > { %5070 = dma.hbm_to_vmem [thread:$0]  (!%p5903_p12), %s8314_s11, 2048, %s455_s26, [#allocation9], %s8326_s20, %s8326_s20, %s8328_s14  }
  0x34   : > { %s5607_s29 = scalar_lea.vmem %s395_s21, 5888  ;;  %p5615_p1 = scmp.lt.s32.totalorder %s395_s21, %s395_s21 }
  0x35   : > { %p5608_p8 = scmp.ne.s32.totalorder %s395_s21, %s5607_s29  ;;  %p5616_p3 = scmp.lt.s32.totalorder %s5607_s29, %s5607_s29 }
  0x37   : > { %p5610_p11 = pnand %p5608_p8, %p5909_p13  ;;  %p5617_p2 = por %p5616_p3, %p5615_p1 }
  0x39   : > { %p5611_p0 = pneg %p5610_p11 }
  0x3b   : > { %p5618_p4 = pnand %p5617_p2, %p5611_p0 }
  0x3d   : > { %5621 = shalt.err (!%p5618_p4)
}
  0x3e   : > { %s5755_s15 = smov 256   ;;  %s5756_s17 = smov 16  }
  0x3f   : > { %5061 = dma.hbm_to_vmem [thread:$0]  (!%p5903_p12), %s8304_s1, 5888, %s395_s21, [#allocation3], %s5755_s15, %s5755_s15, %s5756_s17  }
  0x40   : > { %s5757_s26 = smov [#allocation7]   ;;  %s5758_s18 = smov [#allocation10]  }
  0x41   : > { %s432_s24 = sshll.u32 %s5757_s26, 4  ;;  %s470_s20 = sshll.u32 %s5758_s18, 4  ;;  %s433_s24 = int_to_ptr.vmem [resolvable:$true] %s432_s24  ;;  %s471_s20 = int_to_ptr.vmem [resolvable:$true] %s470_s20 }
  0x42   : > { %s5633_s14 = scalar_lea.vmem %s433_s24, 4096  ;;  %p5641_p0 = scmp.lt.s32.totalorder %s433_s24, %s433_s24 }
  0x43   : > { %p5634_p7 = scmp.ne.s32.totalorder %s433_s24, %s5633_s14  ;;  %p5642_p1 = scmp.lt.s32.totalorder %s5633_s14, %s5633_s14 }
  0x45   : > { %p5636_p8 = pnand %p5634_p7, %p5909_p13  ;;  %p5643_p3 = por %p5642_p1, %p5641_p0 }
  0x47   : > { %p5637_p11 = pneg %p5636_p8 }
  0x49   : > { %p5644_p2 = pnand %p5643_p3, %p5637_p11 }
  0x4b   : > { %5647 = shalt.err (!%p5644_p2)
}
  0x4c   : > { %s8347_s29 = smov 8   ;;  %s8348_s16 = smov 128  }
  0x4d   : > { %5067 = dma.hbm_to_vmem [thread:$0]  (!%p5903_p12), %s8310_s7, 4096, %s433_s24, [#allocation6], %s8348_s16, %s8348_s16, %s8347_s29  }
  0x4e   : > { %s5659_s17 = scalar_lea.vmem %s471_s20, 2048  ;;  %p5667_p9 = scmp.lt.s32.totalorder %s471_s20, %s471_s20 }
  0x4f   : > { %p5660_p4 = scmp.ne.s32.totalorder %s471_s20, %s5659_s17  ;;  %p5668_p0 = scmp.lt.s32.totalorder %s5659_s17, %s5659_s17 }
  0x51   : > { %p5662_p7 = pnand %p5660_p4, %p5909_p13  ;;  %p5669_p11 = por %p5668_p0, %p5667_p9 }
  0x53   : > { %p5663_p8 = pneg %p5662_p7 }
  0x55   : > { %p5670_p1 = pnand %p5669_p11, %p5663_p8 }
  0x57   : > { %5673 = shalt.err (!%p5670_p1)
}
  0x58   : > { %5073 = dma.hbm_to_vmem [thread:$0]  (!%p5903_p12), %s8316_s13, 2048, %s471_s20, [#allocation9], %s8348_s16, %s8348_s16, %s8347_s29  }
  0x59   : > { %498 = sbr.rel (%p5895_p10) target bundleno = 2484 (0x9b4), region = 80 }
  0x5e   : > { %p8349_p13 = scmp.eq.s32.totalorder %s5867_s22, 0 }
  0x60   : > { %5717 = dma.done.wait (%p8349_p13), [#allocation3], 5888   ;;  %p8350_p3 = pmov %p8349_p13 }
  0x62   : > { %5719 = vsyncadd (%p8350_p3), [#allocation3], 4294961408  ;;  %p8351_p9 = pmov %p8350_p3 }
  0x63   : > { %p8352_p2 = pmov %p8350_p3 }
  0x64   : > { %5721 = dma.done.wait (%p8351_p9), [#allocation6], 10624  }
  0x65   : > { %5723 = vsyncadd (%p8352_p2), [#allocation6], 4294956672  ;;  %p8353_p4 = pmov %p8352_p2 }
  0x66   : > { %p8354_p12 = pmov %p8352_p2 }
  0x67   : > { %5725 = dma.done.wait (%p8353_p4), [#allocation9], 4096  }
  0x68   : > { %5727 = vsyncadd (%p8354_p12), [#allocation9], 4294963200  ;;  %s562_s27 = smul.u32 36, %s5867_s22  ;;  %s8355_s0 = sld [smem:[#allocation23_spill]]  ;;  %vm1005_vm0 = vcmask 1044480   ;;  %v1548_v0 = vld [vmem:[#allocation2 + $0xf8] sm:$0xff] }
  0x69   : > { %v1547_v1 = vld [vmem:[#allocation2 + $0xf0] sm:$0xff]  ;;  %v1546_v2 = vld [vmem:[#allocation2 + $0xe8] sm:$0xff]  ;;  %vm641_vm1 = vcmask 1046528   ;;  %vm1187_vm2 = vcmask 1043456   ;;  %vm823_vm3 = vcmask 1045504   ;;  %1690 = vmatprep.subr.mxu0 %v1548_v0  ;;  %s5759_s24 = smov 108  }
  0x6a   : > { %p563_p10 = scmp.lt.s32.totalorder %s562_s27, 71  ;;  %1691 = vmatpush1.msra.mxu0 %v1547_v1  ;;  %v1545_v27 = vld [vmem:[#allocation2 + $0xe0] sm:$0xff]  ;;  %v1544_v29 = vld [vmem:[#allocation2 + $0xd8] sm:$0xff]  ;;  %v1543_v30 = vld [vmem:[#allocation2 + $0xd0] sm:$0xff]  ;;  %s5760_s18 = smov 36   ;;  %vm1480_vm4 = vcmask 130048  }
  0x6b   : > { %1692 = vmatprep.subr.mxu0 %v1546_v2  ;;  %v1542_v31 = vld [vmem:[#allocation2 + $0xc8] sm:$0xff]  ;;  %v1541_v34 = vld [vmem:[#allocation2 + $0xc0] sm:$0xff]  ;;  %s5761_s29 = smov 16   ;;  %v1540_v37 = vld [vmem:[#allocation2 + $0xb8] sm:$0xff]  ;;  %s5762_s16 = smov 72   ;;  %vm1575_vm5 = vcmask 424960  }
  0x6c   : > { %s8371_s27 = smov (!%p563_p10, %s562_s27), 71  ;;  %1693 = vmatpush1.msra.mxu0 %v1545_v27  ;;  %v1539_v41 = vld [vmem:[#allocation2 + $0xb0] sm:$0xff]  ;;  %v1538_v42 = vld [vmem:[#allocation2 + $0xa8] sm:$0xff]  ;;  %v1537_v44 = vld [vmem:[#allocation2 + $0xa0] sm:$0xff]  ;;  %vm1369_vm6 = vcmask 293888   ;;  %vm1406_vm7 = vcmask 588800  }
  0x6d   : > { %s4541_s30 = sshll.u32 %s8371_s27, 3  ;;  %1694 = vmatprep.subr.mxu0 %v1544_v29  ;;  %v1536_v48 = vld [vmem:[#allocation2 + $0x98] sm:$0xff]  ;;  %v1535_v50 = vld [vmem:[#allocation2 + $0x90] sm:$0xff]  ;;  %v1534_v53 = vld [vmem:[#allocation2 + $0x88] sm:$0xff]  ;;  %vm1443_vm8 = vcmask 883712   ;;  %vm5764_vm9 = vmmov 0  }
  0x6e   : > { %s5975_s26 = scalar_lea.vmem %s8355_s0, %s4541_s30  ;;  %1695 = vmatpush1.msra.mxu0 %v1543_v30  ;;  %v1533_v55 = vld [vmem:[#allocation2 + $0x80] sm:$0xff]  ;;  %v1532_v61 = vld [vmem:[#allocation2 + $0x78] sm:$0xff]  ;;  %v1531_v62 = vld [vmem:[#allocation2 + $0x70] sm:$0xff]  ;;  %vm2371_vm10 = vcmask 261120   ;;  %s8359_s25 = sld [smem:[#allocation24_spill]] }
  0x6f   : > { %v5978_v3 = vld [vmem:[%s5975_s26] sm:$0xff]  ;;  %v5981_v4 = vld [vmem:[%s5975_s26 + $0x8] sm:$0xff]  ;;  %v5984_v5 = vld [vmem:[%s5975_s26 + $0x10] sm:$0xff]  ;;  %1696 = vmatprep.subr.mxu0 %v1542_v31  ;;  %s8360_s21 = sld [smem:[#allocation25_spill]]  ;;  %s5765_s14 = smov [#allocation11]  }
  0x70   : > { %v1006_v6 = vrot.slane %v5978_v3, 3  ;;  %v1007_v7 = vrot.slane %v5981_v4, 3  ;;  %v642_v8 = vrot.slane %v5978_v3, 1  ;;  %v643_v9 = vrot.slane %v5981_v4, 1  ;;  %v5995_v14 = vld [vmem:[%s5975_s26 + $0x18] sm:$0xff]  ;;  %v6002_v19 = vld [vmem:[%s5975_s26 + $0x20] sm:$0xff]  ;;  %1697 = vmatpush1.msra.mxu0 %v1541_v34 }
  0x71   : > { %v645_v10 = vrot.slane %v5984_v5, 1  ;;  %v1188_v11 = vrot.slane %v5978_v3, 4  ;;  %v1189_v12 = vrot.slane %v5981_v4, 4  ;;  %v824_v13 = vrot.slane %v5978_v3, 2  ;;  %1698 = vmatprep.subr.mxu0 %v1540_v37  ;;  %v6031_v51 = vld [vmem:[%s5975_s26 + $0x28] sm:$0xff]  ;;  %v6034_v52 = vld [vmem:[%s5975_s26 + $0x30] sm:$0xff] }
  0x72   : > { %v1008_v15 = vsel %vm1005_vm0, %v1006_v6, %v1007_v7  ;;  %v644_v16 = vsel %vm641_vm1, %v642_v8, %v643_v9  ;;  %v825_v17 = vrot.slane %v5981_v4, 2  ;;  %v827_v18 = vrot.slane %v5984_v5, 2  ;;  %1699 = vmatpush1.msra.mxu0 %v1539_v41  ;;  %v1530_v0 = vld [vmem:[#allocation2 + $0x68] sm:$0xff]  ;;  %v1524_v30 = vld [vmem:[#allocation2 + $0x38] sm:$0xff]  ;;  %v1523_v31 = vld [vmem:[#allocation2 + $0x30] sm:$0xff] }
  0x73   : > { %1079 = vrot.lane.b32.xlu1 %v1008_v15, %s5759_s24  ;;  %v646_v20 = vsel %vm641_vm1, %v643_v9, %v645_v10  ;;  %v1190_v21 = vsel %vm1187_vm2, %v1188_v11, %v1189_v12  ;;  %v1191_v22 = vrot.slane %v5984_v5, 4  ;;  %v829_v26 = vrot.slane %v5995_v14, 2  ;;  %1700 = vmatprep.subr.mxu0 %v1538_v42  ;;  %v1528_v11 = vld [vmem:[#allocation2 + $0x58] sm:$0xff] }
  0x74   : > { %v5138_v23 = vpack.i.bf16 %v646_v20, %v644_v16  ;;  %v826_v24 = vsel %vm823_vm3, %v824_v13, %v825_v17  ;;  %v828_v25 = vsel %vm823_vm3, %v825_v17, %v827_v18  ;;  %v831_v28 = vrot.slane %v6002_v19, 2  ;;  %1701 = vmatpush1.msra.mxu0 %v1537_v44  ;;  %v1527_v13 = vld [vmem:[#allocation2 + $0x50] sm:$0xff]  ;;  %v6063_v20 = vld [vmem:[%s5975_s26 + $0x38] sm:$0xff] }
  0x75   : > { %v5143_v32 = vpack.i.bf16 %v828_v25, %v826_v24  ;;  %v1009_v33 = vrot.slane %v5984_v5, 3  ;;  %v647_v35 = vrot.slane %v5995_v14, 1  ;;  %v649_v36 = vrot.slane %v6002_v19, 1  ;;  %1702 = vmatprep.subr.mxu0 %v1536_v48  ;;  %v1525_v24 = vld [vmem:[#allocation2 + $0x40] sm:$0xff]  ;;  %v1520_v41 = vld [vmem:[#allocation2 + $0x18] sm:$0xff]  ;;  %v6091_v48 = vld [vmem:[%s5975_s26 + $0x48] sm:$0xff] }
  0x76   : > { %5139 = vrot.lane.b32.xlu0 %v5138_v23, %s5760_s18  ;;  %v1192_v38 = vsel %vm1187_vm2, %v1189_v12, %v1191_v22  ;;  %v830_v39 = vsel %vm823_vm3, %v827_v18, %v829_v26  ;;  %v832_v40 = vsel %vm823_vm3, %v829_v26, %v831_v28  ;;  %v1193_v49 = vrot.slane %v5995_v14, 4  ;;  %1703 = vmatpush1.msra.mxu0 %v1535_v50  ;;  %v1518_v50 = vld [vmem:[#allocation2 + $0x8] sm:$0xff] }
  0x77   : > { %1261 = vrot.lane.b32.xlu1 %v1190_v21, %s5761_s29  ;;  %v1010_v43 = vsel %vm1005_vm0, %v1007_v7, %v1009_v33  ;;  %v5153_v45 = vpack.i.bf16 %v832_v40, %v830_v39  ;;  %v648_v46 = vsel %vm641_vm1, %v645_v10, %v647_v35  ;;  %v650_v47 = vsel %vm641_vm1, %v647_v35, %v649_v36  ;;  %v1529_v10 = vld [vmem:[#allocation2 + $0x60] sm:$0xff] }
  0x78   : > { %v5148_v54 = vpack.i.bf16 %v650_v47, %v648_v46  ;;  %v1011_v56 = vrot.slane %v5995_v14, 3  ;;  %v1194_v57 = vsel %vm1187_vm2, %v1191_v22, %v1193_v49  ;;  %v1195_v58 = vrot.slane %v6002_v19, 4  ;;  %1704 = vmatprep.subr.mxu0 %v1534_v53  ;;  %v6066_v21 = vld [vmem:[%s5975_s26 + $0x40] sm:$0xff]  ;;  %v1526_v22 = vld [vmem:[#allocation2 + $0x48] sm:$0xff]  ;;  %v1519_v46 = vld [vmem:[#allocation2 + $0x10] sm:$0xff] }
  0x79   : > { %v833_v59 = vrot.slane %v6031_v51, 2  ;;  %v835_v60 = vrot.slane %v6034_v52, 2  ;;  %1705 = vmatpush1.msra.mxu0 %v1533_v55  ;;  %v1013_v63 = vrot.slane %v6002_v19, 3  ;;  %v651_v2 = vrot.slane %v6031_v51, 1  ;;  %v1521_v40 = vld [vmem:[#allocation2 + $0x20] sm:$0xff] }
  0x7a   : > { %5144 = vrot.lane.b32.xlu0 %v5143_v32, %s5762_s16  ;;  %v1012_v1 = vsel %vm1005_vm0, %v1009_v33, %v1011_v56  ;;  %v653_v6 = vrot.slane %v6034_v52, 1  ;;  %1706 = vmatprep.subr.mxu0 %v1532_v61  ;;  %v1196_v7 = vsel %vm1187_vm2, %v1193_v49, %v1195_v58  ;;  %v1197_v18 = vrot.slane %v6031_v51, 4  ;;  %v6094_v49 = vld [vmem:[%s5975_s26 + $0x50] sm:$0xff]  ;;  %v1561_v61 = vld [vmem:[#allocation2 + $0x160] sm:$0xf] }
  0x7b   : > { %1263 = vrot.lane.b32.xlu1 %v1192_v38, %s5761_s29  ;;  %v834_v8 = vsel %vm823_vm3, %v831_v28, %v833_v59  ;;  %v836_v9 = vsel %vm823_vm3, %v833_v59, %v835_v60  ;;  %1707 = vmatpush1.msra.mxu0 %v1531_v62  ;;  %v1014_v12 = vsel %vm1005_vm0, %v1011_v56, %v1013_v63  ;;  %v1015_v25 = vrot.slane %v6031_v51, 3  ;;  %v1562_v56 = vld [vmem:[#allocation2 + $0x168] sm:$0xf]  ;;  %v1560_v62 = vld [vmem:[#allocation2 + $0x158] sm:$0xff] }
  0x7c   : > { %1708 = vmatprep.subr.mxu0 %v1530_v0  ;;  %v5163_v15 = vpack.i.bf16 %v836_v9, %v834_v8  ;;  %v652_v16 = vsel %vm641_vm1, %v649_v36, %v651_v2  ;;  %v654_v17 = vsel %vm641_vm1, %v651_v2, %v653_v6  ;;  %v1198_v26 = vsel %vm1187_vm2, %v1195_v58, %v1197_v18  ;;  %v1522_v36 = vld [vmem:[#allocation2 + $0x28] sm:$0xff]  ;;  %v1559_v0 = vld [vmem:[#allocation2 + $0x150] sm:$0xff] }
  0x7d   : > { %1709 = vmatpush1.msra.mxu0 %v1529_v10  ;;  %v5158_v23 = vpack.i.bf16 %v654_v17, %v652_v16  ;;  %v1199_v27 = vrot.slane %v6034_v52, 4  ;;  %v837_v28 = vrot.slane %v6063_v20, 2  ;;  %v839_v29 = vrot.slane %v6066_v21, 2 }
  0x7e   : > { %1081 = vrot.lane.b32.xlu0 %v1010_v43, %s5759_s24  ;;  %1710 = vmatprep.subr.mxu0 %v1528_v11  ;;  %v1016_v32 = vsel %vm1005_vm0, %v1013_v63, %v1015_v25  ;;  %v1017_v33 = vrot.slane %v6034_v52, 3  ;;  %v655_v34 = vrot.slane %v6063_v20, 1  ;;  %v657_v35 = vrot.slane %v6066_v21, 1  ;;  %v1557_v11 = vld [vmem:[#allocation2 + $0x140] sm:$0xff] }
  0x7f   : > { %5154 = vrot.lane.b32.xlu1 %v5153_v45, %s5762_s16  ;;  %1711 = vmatpush1.msra.mxu0 %v1527_v13  ;;  %v1200_v37 = vsel %vm1187_vm2, %v1197_v18, %v1199_v27  ;;  %v838_v38 = vsel %vm823_vm3, %v835_v60, %v837_v28  ;;  %v840_v39 = vsel %vm823_vm3, %v837_v28, %v839_v29  ;;  %v1201_v47 = vrot.slane %v6063_v20, 4 }
  0x80   : > { %1712 = vmatprep.subr.mxu0 %v1526_v22  ;;  %v1018_v42 = vsel %vm1005_vm0, %v1015_v25, %v1017_v33  ;;  %v5173_v43 = vpack.i.bf16 %v840_v39, %v838_v38  ;;  %v656_v44 = vsel %vm641_vm1, %v653_v6, %v655_v34  ;;  %v658_v45 = vsel %vm641_vm1, %v655_v34, %v657_v35  ;;  %v1554_v22 = vld [vmem:[#allocation2 + $0x128] sm:$0xff]  ;;  %v6123_v25 = vld [vmem:[%s5975_s26 + $0x58] sm:$0xff] }
  0x81   : > { %1713 = vmatpush1.msra.mxu0 %v1525_v24  ;;  %v5168_v53 = vpack.i.bf16 %v658_v45, %v656_v44  ;;  %v1019_v55 = vrot.slane %v6063_v20, 3  ;;  %v1203_v58 = vrot.slane %v6066_v21, 4  ;;  %v841_v59 = vrot.slane %v6091_v48, 2  ;;  %v1553_v24 = vld [vmem:[#allocation2 + $0x120] sm:$0xff] }
  0x82   : > { %5149 = vrot.lane.b32.xlu0 %v5148_v54, %s5760_s18  ;;  %1714 = vmatprep.subr.mxu0 %v1524_v30  ;;  %v1517_v54 = vld [vmem:[#allocation2] sm:$0xff]  ;;  %v843_v60 = vrot.slane %v6094_v49, 2  ;;  %v1021_v63 = vrot.slane %v6066_v21, 3  ;;  %v659_v2 = vrot.slane %v6091_v48, 1  ;;  %v661_v6 = vrot.slane %v6094_v49, 1 }
  0x83   : > { %1265 = vrot.lane.b32.xlu1 %v1194_v57, %s5761_s29  ;;  %1715 = vmatpush1.msra.mxu0 %v1523_v31  ;;  %v1202_v57 = vsel %vm1187_vm2, %v1199_v27, %v1201_v47  ;;  %v1204_v8 = vsel %vm1187_vm2, %v1201_v47, %v1203_v58  ;;  %v842_v9 = vsel %vm823_vm3, %v839_v29, %v841_v59  ;;  %v1552_v27 = vld [vmem:[#allocation2 + $0x118] sm:$0xff]  ;;  %v1551_v29 = vld [vmem:[#allocation2 + $0x110] sm:$0xff]  ;;  %v1023_v30 = vrot.slane %v6091_v48, 3  ;;  %v1550_v31 = vld [vmem:[#allocation2 + $0x108] sm:$0xff] }
  0x84   : > { %1716 = vmatprep.subr.mxu0 %v1522_v36  ;;  %v844_v10 = vsel %vm823_vm3, %v841_v59, %v843_v60  ;;  %v1022_v13 = vsel %vm1005_vm0, %v1019_v55, %v1021_v63  ;;  %v660_v17 = vsel %vm641_vm1, %v657_v35, %v659_v2  ;;  %v662_v18 = vsel %vm641_vm1, %v659_v2, %v661_v6  ;;  %v1549_v36 = vld [vmem:[#allocation2 + $0x100] sm:$0xff] }
  0x85   : > { %1717 = vmatpush1.msra.mxu0 %v1521_v40  ;;  %v5183_v16 = vpack.i.bf16 %v844_v10, %v842_v9  ;;  %v5178_v28 = vpack.i.bf16 %v662_v18, %v660_v17  ;;  %v845_v34 = vrot.slane %v6123_v25, 2  ;;  %v1025_v38 = vrot.slane %v6094_v49, 3 }
  0x86   : > { %1083 = vrot.lane.b32.xlu0 %v1012_v1, %s5759_s24  ;;  %1718 = vmatprep.subr.mxu0 %v1520_v41  ;;  %v1020_v1 = vsel %vm1005_vm0, %v1017_v33, %v1019_v55  ;;  %v1207_v33 = vrot.slane %v6094_v49, 4  ;;  %v663_v39 = vrot.slane %v6123_v25, 1 }
  0x87   : > { %1267 = vrot.lane.b32.xlu1 %v1196_v7, %s5761_s29  ;;  %1719 = vmatpush1.msra.mxu0 %v1519_v46  ;;  %v1558_v7 = vld [vmem:[#allocation2 + $0x148] sm:$0xff]  ;;  %v1026_v44 = vsel %vm1005_vm0, %v1023_v30, %v1025_v38 }
  0x88   : > { %1720 = vmatprep.subr.mxu0 %v1518_v50  ;;  %v664_v46 = vsel %vm641_vm1, %v661_v6, %v663_v39  ;;  %v1209_v50 = vrot.slane %v6123_v25, 4 }
  0x89   : > { %1721 = vmatpush1.msra.mxu0 %v1517_v54  ;;  %v6156_v54 = vld [vmem:[%s5975_s26 + $0x70] sm:$0xff] }
  0x8a   : > { %1085 = vrot.lane.b32.xlu0 %v1014_v12, %s5759_s24  ;;  %4542 = vmatprep.subr.msk.mxu0 %vm1187_vm2, %v1562_v56  ;;  %v1556_v12 = vld [vmem:[#allocation2 + $0x138] sm:$0xff]  ;;  %v1027_v56 = vrot.slane %v6123_v25, 3  ;;  %v1215_v18 = vrot.slane %v6156_v54, 4 }
  0x8b   : > { %5164 = vrot.lane.b32.xlu1 %v5163_v15, %s5762_s16  ;;  %4543 = vmatpush2.msk.msra.mxu0 %vm1187_vm2, %v1561_v61  ;;  %v1555_v15 = vld [vmem:[#allocation2 + $0x130] sm:$0xff] }
  0x8c   : > { %1742 = vmatprep.subr.mxu0 %v1560_v62  ;;  %v1028_v61 = vsel %vm1005_vm0, %v1025_v38, %v1027_v56  ;;  %v585_v38 = vld [vmem:[%s5975_s26 + $0x88] sm:$0xff] }
  0x8d   : > { %1743 = vmatpush2.msra.mxu0 %v1559_v0  ;;  %v669_v0 = vrot.slane %v6156_v54, 1 }
  0x8e   : > { %5159 = vrot.lane.b32.xlu0 %v5158_v23, %s5760_s18  ;;  %1744 = vmatprep.subr.mxu0 %v1558_v7  ;;  %v1205_v23 = vrot.slane %v6091_v48, 4 }
  0x8f   : > { %1269 = vrot.lane.b32.xlu1 %v1198_v26, %s5761_s29  ;;  %1745 = vmatpush2.msra.mxu0 %v1557_v11  ;;  %v6126_v26 = vld [vmem:[%s5975_s26 + $0x60] sm:$0xff] }
  0x90   : > { %1746 = vmatprep.subr.mxu0 %v1556_v12  ;;  %v847_v35 = vrot.slane %v6126_v26, 2  ;;  %v665_v40 = vrot.slane %v6126_v26, 1  ;;  %v1208_v41 = vsel %vm1187_vm2, %v1205_v23, %v1207_v33  ;;  %v1029_v62 = vrot.slane %v6126_v26, 3  ;;  %v583_v12 = vld [vmem:[%s5975_s26 + $0x78] sm:$0xff] }
  0x91   : > { %1747 = vmatpush2.msra.mxu0 %v1555_v15 }
  0x92   : > { %1087 = vrot.lane.b32.xlu0 %v1016_v32, %s5759_s24  ;;  %1748 = vmatprep.subr.mxu0 %v1554_v22  ;;  %v1206_v32 = vsel %vm1187_vm2, %v1203_v58, %v1205_v23  ;;  %v666_v47 = vsel %vm641_vm1, %v663_v39, %v665_v40  ;;  %v1211_v58 = vrot.slane %v6126_v26, 4  ;;  %v1030_v7 = vsel %vm1005_vm0, %v1027_v56, %v1029_v62  ;;  %v6207_v39 = vld [vmem:[%s5975_s26 + $0x90] sm:$0xff] }
  0x93   : > { %1271 = vrot.lane.b32.xlu1 %v1200_v37, %s5761_s29  ;;  %1749 = vmatpush2.msra.mxu0 %v1553_v24  ;;  %v1024_v37 = vsel %vm1005_vm0, %v1021_v63, %v1023_v30  ;;  %v5188_v55 = vpack.i.bf16 %v666_v47, %v664_v46  ;;  %v853_v22 = vrot.slane %v583_v12, 2  ;;  %v8331_v24 = vmov 0.0  }
  0x94   : > { %1750 = vmatprep.subr.mxu0 %v1552_v27  ;;  %2075 = vmatprep.subr.mxu1 %v8331_v24  ;;  %v1033_v27 = vrot.slane %v6156_v54, 3 }
  0x95   : > { %1751 = vmatpush2.msra.mxu0 %v1551_v29 }
  0x96   : > { %1089 = vrot.lane.b32.xlu0 %v1018_v42, %s5759_s24  ;;  %1752 = vmatprep.subr.mxu0 %v1550_v31  ;;  %v846_v42 = vsel %vm823_vm3, %v843_v60, %v845_v34  ;;  %v851_v60 = vrot.slane %v6156_v54, 2  ;;  %v677_v54 = vrot.slane %v6207_v39, 1 }
  0x97   : > { %5174 = vrot.lane.b32.xlu1 %v5173_v43, %s5762_s16  ;;  %1753 = vmatpush2.msra.mxu0 %v1549_v36  ;;  %v848_v43 = vsel %vm823_vm3, %v845_v34, %v847_v35 }
  0x98   : > { %v5193_v45 = vpack.i.bf16 %v848_v43, %v846_v42  ;;  %2423 = vmatprep.subr.mxu0 %v8331_v24  ;;  %v854_v31 = vsel %vm823_vm3, %v851_v60, %v853_v22 }
  0x9a   : > { %5169 = vrot.lane.b32.xlu0 %v5168_v53, %s5760_s18  ;;  %v6153_v53 = vld [vmem:[%s5975_s26 + $0x68] sm:$0xff] }
  0x9b   : > { %1273 = vrot.lane.b32.xlu1 %v1202_v57, %s5761_s29  ;;  %v1210_v57 = vsel %vm1187_vm2, %v1207_v33, %v1209_v50  ;;  %v849_v59 = vrot.slane %v6153_v53, 2  ;;  %v667_v63 = vrot.slane %v6153_v53, 1  ;;  %v1213_v11 = vrot.slane %v6153_v53, 4 }
  0x9d   : > { %v850_v2 = vsel %vm823_vm3, %v847_v35, %v849_v59  ;;  %v852_v6 = vsel %vm823_vm3, %v849_v59, %v851_v60  ;;  %v668_v9 = vsel %vm641_vm1, %v665_v40, %v667_v63  ;;  %v670_v10 = vsel %vm641_vm1, %v667_v63, %v669_v0  ;;  %v587_v63 = vld [vmem:[%s5975_s26 + $0x98] sm:$0xff] }
  0x9e   : > { %1091 = vrot.lane.b32.xlu0 %v1020_v1, %s5759_s24  ;;  %v1212_v1 = vsel %vm1187_vm2, %v1209_v50, %v1211_v58  ;;  %v5198_v15 = vpack.i.bf16 %v670_v10, %v668_v9  ;;  %v1214_v17 = vsel %vm1187_vm2, %v1211_v58, %v1213_v11  ;;  %v1216_v30 = vsel %vm1187_vm2, %v1213_v11, %v1215_v18 }
  0x9f   : > { %1275 = vrot.lane.b32.xlu1 %v1204_v8, %s5761_s29  ;;  %v5203_v8 = vpack.i.bf16 %v852_v6, %v850_v2  ;;  %v675_v50 = vrot.slane %v585_v38, 1  ;;  %v1039_v2 = vrot.slane %v585_v38, 3  ;;  %v1041_v11 = vrot.slane %v6207_v39, 3 }
  0xa2   : > { %1093 = vrot.lane.b32.xlu0 %v1022_v13, %s5759_s24  ;;  %v6182_v13 = vld [vmem:[%s5975_s26 + $0x80] sm:$0xff] }
  0xa3   : > { %5184 = vrot.lane.b32.xlu1 %v5183_v16, %s5762_s16  ;;  %v1031_v16 = vrot.slane %v6153_v53, 3  ;;  %v855_v23 = vrot.slane %v6182_v13, 2  ;;  %v673_v29 = vrot.slane %v6182_v13, 1  ;;  %v1219_v43 = vrot.slane %v6182_v13, 4 }
  0xa4   : > { %v1037_v47 = vrot.slane %v6182_v13, 3 }
  0xa5   : > { %v1032_v26 = vsel %vm1005_vm0, %v1029_v62, %v1031_v16  ;;  %v1034_v33 = vsel %vm1005_vm0, %v1031_v16, %v1033_v27  ;;  %v676_v60 = vsel %vm641_vm1, %v673_v29, %v675_v50  ;;  %v1221_v62 = vrot.slane %v585_v38, 4 }
  0xa6   : > { %5179 = vrot.lane.b32.xlu0 %v5178_v28, %s5760_s18  ;;  %v671_v28 = vrot.slane %v583_v12, 1  ;;  %v1040_v10 = vsel %vm1005_vm0, %v1037_v47, %v1039_v2 }
  0xa7   : > { %1277 = vrot.lane.b32.xlu1 %v1206_v32, %s5761_s29  ;;  %v856_v32 = vsel %vm823_vm3, %v853_v22, %v855_v23  ;;  %v1222_v6 = vsel %vm1187_vm2, %v1219_v43, %v1221_v62 }
  0xa8   : > { %v5213_v34 = vpack.i.bf16 %v856_v32, %v854_v31  ;;  %v672_v35 = vsel %vm641_vm1, %v669_v0, %v671_v28  ;;  %v674_v36 = vsel %vm641_vm1, %v671_v28, %v673_v29  ;;  %v6229_v0 = vld [vmem:[%s5975_s26 + $0xa0] sm:$0xff]  ;;  %v6250_v28 = vld [vmem:[%s5975_s26 + $0xa8] sm:$0xff]  ;;  %v6253_v29 = vld [vmem:[%s5975_s26 + $0xb0] sm:$0xff]  ;;  %v1043_v31 = vrot.slane %v587_v63, 3 }
  0xa9   : > { %v5208_v40 = vpack.i.bf16 %v674_v36, %v672_v35  ;;  %v863_v9 = vrot.slane %v6229_v0, 2  ;;  %v681_v13 = vrot.slane %v6229_v0, 1  ;;  %v867_v35 = vrot.slane %v6253_v29, 2 }
  0xaa   : > { %1095 = vrot.lane.b32.xlu0 %v1024_v37, %s5759_s24  ;;  %v1217_v37 = vrot.slane %v583_v12, 4  ;;  %v1044_v36 = vsel %vm1005_vm0, %v1041_v11, %v1043_v31 }
  0xab   : > { %1279 = vrot.lane.b32.xlu1 %v1208_v41, %s5761_s29  ;;  %v1035_v41 = vrot.slane %v583_v12, 3  ;;  %v679_v12 = vrot.slane %v587_v63, 1 }
  0xac   : > { %v1218_v42 = vsel %vm1187_vm2, %v1215_v18, %v1217_v37  ;;  %v1042_v18 = vsel %vm1005_vm0, %v1039_v2, %v1041_v11 }
  0xad   : > { %v1036_v46 = vsel %vm1005_vm0, %v1033_v27, %v1035_v41  ;;  %v1038_v58 = vsel %vm1005_vm0, %v1035_v41, %v1037_v47  ;;  %v1225_v27 = vrot.slane %v587_v63, 4 }
  0xae   : > { %1097 = vrot.lane.b32.xlu0 %v1026_v44, %s5759_s24  ;;  %v857_v44 = vrot.slane %v585_v38, 2  ;;  %v683_v38 = vrot.slane %v6250_v28, 1 }
  0xaf   : > { %5194 = vrot.lane.b32.xlu1 %v5193_v45, %s5762_s16  ;;  %v859_v45 = vrot.slane %v6207_v39, 2 }
  0xb0   : > { %v858_v56 = vsel %vm823_vm3, %v855_v23, %v857_v44  ;;  %v680_v23 = vsel %vm641_vm1, %v677_v54, %v679_v12 }
  0xb2   : > { %5189 = vrot.lane.b32.xlu0 %v5188_v55, %s5760_s18  ;;  %v1220_v55 = vsel %vm1187_vm2, %v1217_v37, %v1219_v43  ;;  %v1045_v37 = vrot.slane %v6229_v0, 3 }
  0xb3   : > { %1281 = vrot.lane.b32.xlu1 %v1210_v57, %s5761_s29  ;;  %v860_v57 = vsel %vm823_vm3, %v857_v44, %v859_v45 }
  0xb4   : > { %v5223_v59 = vpack.i.bf16 %v860_v57, %v858_v56  ;;  %v1046_v44 = vsel %vm1005_vm0, %v1043_v31, %v1045_v37  ;;  %v6277_v56 = vld [vmem:[%s5975_s26 + $0xb8] sm:$0xff]  ;;  %v6280_v57 = vld [vmem:[%s5975_s26 + $0xc0] sm:$0xff] }
  0xb5   : > { %v869_v2 = vrot.slane %v6277_v56, 2 }
  0xb6   : > { %1099 = vrot.lane.b32.xlu0 %v1028_v61, %s5759_s24  ;;  %v678_v61 = vsel %vm641_vm1, %v675_v50, %v677_v54  ;;  %v1229_v54 = vrot.slane %v6250_v28, 4 }
  0xb7   : > { %1283 = vrot.lane.b32.xlu1 %v1212_v1, %s5761_s29  ;;  %v5218_v1 = vpack.i.bf16 %v678_v61, %v676_v60  ;;  %v1047_v61 = vrot.slane %v6250_v28, 3 }
  0xb9   : > { %v1048_v11 = vsel %vm1005_vm0, %v1045_v37, %v1047_v61 }
  0xba   : > { %1101 = vrot.lane.b32.xlu0 %v1030_v7, %s5759_s24  ;;  %v1223_v7 = vrot.slane %v6207_v39, 4  ;;  %v685_v39 = vrot.slane %v6253_v29, 1 }
  0xbb   : > { %5204 = vrot.lane.b32.xlu1 %v5203_v8, %s5762_s16  ;;  %v861_v8 = vrot.slane %v587_v63, 2 }
  0xbc   : > { %v1226_v32 = vsel %vm1187_vm2, %v1223_v7, %v1225_v27  ;;  %v686_v47 = vsel %vm641_vm1, %v683_v38, %v685_v39 }
  0xbd   : > { %v862_v16 = vsel %vm823_vm3, %v859_v45, %v861_v8 }
  0xbe   : > { %5199 = vrot.lane.b32.xlu0 %v5198_v15, %s5760_s18  ;;  %v1224_v15 = vsel %vm1187_vm2, %v1221_v62, %v1223_v7  ;;  %v1231_v62 = vrot.slane %v6253_v29, 4 }
  0xbf   : > { %1285 = vrot.lane.b32.xlu1 %v1214_v17, %s5761_s29  ;;  %v864_v17 = vsel %vm823_vm3, %v861_v8, %v863_v9 }
  0xc0   : > { %v5233_v22 = vpack.i.bf16 %v864_v17, %v862_v16  ;;  %v687_v16 = vrot.slane %v6277_v56, 1  ;;  %v689_v17 = vrot.slane %v6280_v57, 1 }
  0xc2   : > { %1103 = vrot.lane.b32.xlu0 %v1032_v26, %s5759_s24  ;;  %v682_v26 = vsel %vm641_vm1, %v679_v12, %v681_v13  ;;  %v1049_v12 = vrot.slane %v6253_v29, 3  ;;  %v688_v31 = vsel %vm641_vm1, %v685_v39, %v687_v16 }
  0xc3   : > { %1287 = vrot.lane.b32.xlu1 %v1216_v30, %s5761_s29  ;;  %v5228_v30 = vpack.i.bf16 %v682_v26, %v680_v23  ;;  %v870_v23 = vsel %vm823_vm3, %v867_v35, %v869_v2 }
  0xc6   : > { %1105 = vrot.lane.b32.xlu0 %v1034_v33, %s5759_s24  ;;  %v1227_v33 = vrot.slane %v6229_v0, 4 }
  0xc7   : > { %5214 = vrot.lane.b32.xlu1 %v5213_v34, %s5762_s16  ;;  %v865_v34 = vrot.slane %v6250_v28, 2 }
  0xc9   : > { %v866_v41 = vsel %vm823_vm3, %v863_v9, %v865_v34 }
  0xca   : > { %5209 = vrot.lane.b32.xlu0 %v5208_v40, %s5760_s18  ;;  %v1228_v40 = vsel %vm1187_vm2, %v1225_v27, %v1227_v33 }
  0xcb   : > { %1289 = vrot.lane.b32.xlu1 %v1218_v42, %s5761_s29  ;;  %v868_v42 = vsel %vm823_vm3, %v865_v34, %v867_v35 }
  0xcc   : > { %v5243_v45 = vpack.i.bf16 %v868_v42, %v866_v41  ;;  %v6321_v41 = vld [vmem:[%s5975_s26 + $0xc8] sm:$0xff]  ;;  %v6324_v42 = vld [vmem:[%s5975_s26 + $0xd0] sm:$0xff] }
  0xce   : > { %1107 = vrot.lane.b32.xlu0 %v1036_v46, %s5759_s24  ;;  %v684_v46 = vsel %vm641_vm1, %v681_v13, %v683_v38 }
  0xcf   : > { %1291 = vrot.lane.b32.xlu1 %v1220_v55, %s5761_s29  ;;  %v5238_v60 = vpack.i.bf16 %v686_v47, %v684_v46  ;;  %v1235_v46 = vrot.slane %v6280_v57, 4 }
  0xd2   : > { %1109 = vrot.lane.b32.xlu0 %v1038_v58, %s5759_s24 }
  0xd3   : > { %5224 = vrot.lane.b32.xlu1 %v5223_v59, %s5762_s16 }
  0xd6   : > { %5219 = vrot.lane.b32.xlu0 %v5218_v1, %s5760_s18  ;;  %v1230_v1 = vsel %vm1187_vm2, %v1227_v33, %v1229_v54  ;;  %v1233_v33 = vrot.slane %v6277_v56, 4 }
  0xd7   : > { %1293 = vrot.lane.b32.xlu1 %v1222_v6, %s5761_s29  ;;  %v871_v6 = vrot.slane %v6280_v57, 2 }
  0xd9   : > { %v872_v26 = vsel %vm823_vm3, %v869_v2, %v871_v6 }
  0xda   : > { %1111 = vrot.lane.b32.xlu0 %v1040_v10, %s5759_s24 }
  0xdb   : > { %1295 = vrot.lane.b32.xlu1 %v1224_v15, %s5761_s29  ;;  %v1232_v15 = vsel %vm1187_vm2, %v1229_v54, %v1231_v62 }
  0xde   : > { %1113 = vrot.lane.b32.xlu0 %v1042_v18, %s5759_s24 }
  0xdf   : > { %5234 = vrot.lane.b32.xlu1 %v5233_v22, %s5762_s16 }
  0xe2   : > { %5229 = vrot.lane.b32.xlu0 %v5228_v30, %s5760_s18  ;;  %v5253_v30 = vpack.i.bf16 %v872_v26, %v870_v23 }
  0xe3   : > { %1297 = vrot.lane.b32.xlu1 %v1226_v32, %s5761_s29  ;;  %v690_v32 = vsel %vm641_vm1, %v687_v16, %v689_v17  ;;  %v1237_v16 = vrot.slane %v6321_v41, 4 }
  0xe4   : > { %v5248_v39 = vpack.i.bf16 %v690_v32, %v688_v31 }
  0xe5   : > { %v1080_v43 = vpop.permute.xlu1 %1079 }
  0xe6   : > { %1115 = vrot.lane.b32.xlu0 %v1044_v36, %s5759_s24 }
  0xe7   : > { %1299 = vrot.lane.b32.xlu1 %v1228_v40, %s5761_s29 }
  0xe8   : > { %v5140_v50 = vpop.permute.xlu0 %5139 }
  0xe9   : > { %v1262_v55 = vpop.permute.xlu1 %1261  ;;  %v5141_v58 = vunpack.i.l.bf16 %v5140_v50  ;;  %v5142_v63 = vunpack.i.h.bf16 %v5140_v50 }
  0xea   : > { %1117 = vrot.lane.b32.xlu0 %v1046_v44, %s5759_s24  ;;  %v1481_v59 = vsel %vm1480_vm4, %v1080_v43, %v1262_v55  ;;  %v1234_v44 = vsel %vm1187_vm2, %v1231_v62, %v1233_v33  ;;  %v873_v55 = vrot.slane %v6321_v41, 2 }
  0xeb   : > { %4544 = vmatprep.mubr.msk.f32.mxu0 %vm1575_vm5, %v1481_v59  ;;  %5244 = vrot.lane.b32.xlu1 %v5243_v45, %s5762_s16  ;;  %v1370_v10 = vsel %vm1369_vm6, %v5978_v3, %v5141_v58  ;;  %v1371_v3 = vsel %vm1369_vm6, %v5981_v4, %v5142_v63  ;;  %v1050_v4 = vsel %vm1005_vm0, %v1047_v61, %v1049_v12  ;;  %v1051_v45 = vrot.slane %v6277_v56, 3 }
  0xec   : > { %v5145_v0 = vpop.permute.xlu0 %5144  ;;  %v875_v58 = vrot.slane %v6324_v42, 2  ;;  %v1053_v56 = vrot.slane %v6280_v57, 3  ;;  %v691_v63 = vrot.slane %v6321_v41, 1 }
  0xed   : > { %v5147_v7 = vunpack.i.h.bf16 %v5145_v0  ;;  %v5146_v8 = vunpack.i.l.bf16 %v5145_v0  ;;  %v1264_v9 = vpop.permute.xlu1 %1263  ;;  %v1052_v62 = vsel %vm1005_vm0, %v1049_v12, %v1051_v45  ;;  %v693_v0 = vrot.slane %v6324_v42, 1 }
  0xee   : > { %5239 = vrot.lane.b32.xlu0 %v5238_v60, %s5760_s18  ;;  %v1054_v12 = vsel %vm1005_vm0, %v1051_v45, %v1053_v56 }
  0xef   : > { %v1407_v13 = vsel %vm1406_vm7, %v1370_v10, %v5146_v8  ;;  %1301 = vrot.lane.b32.xlu1 %v1230_v1, %s5761_s29  ;;  %v1408_v29 = vsel %vm1406_vm7, %v1371_v3, %v5147_v7  ;;  %v874_v7 = vsel %vm823_vm3, %v871_v6, %v873_v55  ;;  %v876_v8 = vsel %vm823_vm3, %v873_v55, %v875_v58 }
  0xf0   : > { %v1082_v18 = vpop.permute.xlu0 %1081  ;;  %v1444_v22 = vsel %vm1443_vm8, %v1407_v13, %v1080_v43  ;;  %v5263_v6 = vpack.i.bf16 %v876_v8, %v874_v7  ;;  %v692_v13 = vsel %vm641_vm1, %v689_v17, %v691_v63 }
  0xf1   : > { %1755 = vmatmul.mubr.f32.vlgmr.msra.gmra.mxu0 %v1444_v22  ;;  %v1482_v27 = vsel %vm1480_vm4, %v1082_v18, %v1264_v9  ;;  %v5155_v28 = vpop.permute.xlu1 %5154  ;;  %v1445_v36 = vsel %vm1443_vm8, %v1408_v29, %v1082_v18  ;;  %v1238_v29 = vsel %vm1187_vm2, %v1235_v46, %v1237_v16 }
  0xf2   : > { %1119 = vrot.lane.b32.xlu0 %v1048_v11, %s5759_s24  ;;  %4545 = vmatprep.mubr.msk.f32.mxu0 %vm1575_vm5, %v1482_v27  ;;  %v5156_v34 = vunpack.i.l.bf16 %v5155_v28  ;;  %v5157_v47 = vunpack.i.h.bf16 %v5155_v28  ;;  %v6369_v27 = vld [vmem:[%s5975_s26 + $0xd8] sm:$0xff]  ;;  %v6372_v28 = vld [vmem:[%s5975_s26 + $0xe0] sm:$0xff] }
  0xf3   : > { %1303 = vrot.lane.b32.xlu1 %v1232_v15, %s5761_s29  ;;  %v694_v15 = vsel %vm641_vm1, %v691_v63, %v693_v0  ;;  %v2056_v63 = vld [vmem:[%s8306_s3 + $0x68] sm:$0xff] }
  0xf4   : > { %v5150_v35 = vpop.permute.xlu0 %5149  ;;  %v5258_v57 = vpack.i.bf16 %v694_v15, %v692_v13  ;;  %v1059_v13 = vrot.slane %v6369_v27, 3  ;;  %v1243_v15 = vrot.slane %v6372_v28, 4 }
  0xf5   : > { %v5152_v37 = vunpack.i.h.bf16 %v5150_v35  ;;  %v5151_v38 = vunpack.i.l.bf16 %v5150_v35  ;;  %1761 = vmatmul.mubr.f32.gmra.mxu0 %v1445_v36  ;;  %v1266_v40 = vpop.permute.xlu1 %1265  ;;  %v879_v35 = vrot.slane %v6372_v28, 2 }
  0xf6   : > { %1121 = vrot.lane.b32.xlu0 %v1050_v4, %s5759_s24  ;;  %v1055_v4 = vrot.slane %v6321_v41, 3  ;;  %v1057_v41 = vrot.slane %v6324_v42, 3 }
  0xf7   : > { %5254 = vrot.lane.b32.xlu1 %v5253_v30, %s5762_s16  ;;  %v1372_v43 = vsel %vm1369_vm6, %v5984_v5, %v5151_v38  ;;  %v1373_v5 = vsel %vm1369_vm6, %v5995_v14, %v5152_v37  ;;  %v1236_v14 = vsel %vm1187_vm2, %v1233_v33, %v1235_v46  ;;  %v1239_v30 = vrot.slane %v6324_v42, 4 }
  0xf8   : > { %v1084_v50 = vpop.permute.xlu0 %1083  ;;  %v1409_v54 = vsel %vm1406_vm7, %v1372_v43, %v5156_v34  ;;  %v1410_v2 = vsel %vm1406_vm7, %v1373_v5, %v5157_v47  ;;  %v877_v34 = vrot.slane %v6369_v27, 2  ;;  %v695_v43 = vrot.slane %v6369_v27, 1 }
  0xf9   : > { %v1483_v59 = vsel %vm1480_vm4, %v1084_v50, %v1266_v40  ;;  %v1446_v60 = vsel %vm1443_vm8, %v1409_v54, %v1084_v50  ;;  %v1268_v61 = vpop.permute.xlu1 %1267  ;;  %v2058_v40 = vld [vmem:[%s8306_s3 + $0x78] sm:$0xff]  ;;  %v1240_v46 = vsel %vm1187_vm2, %v1237_v16, %v1239_v30 }
  0xfa   : > { %5249 = vrot.lane.b32.xlu0 %v5248_v39, %s5760_s18  ;;  %4546 = vmatprep.mubr.msk.f32.mxu0 %vm1575_vm5, %v1483_v59  ;;  %v1056_v39 = vsel %vm1005_vm0, %v1053_v56, %v1055_v4  ;;  %v878_v47 = vsel %vm823_vm3, %v875_v58, %v877_v34  ;;  %v880_v50 = vsel %vm823_vm3, %v877_v34, %v879_v35 }
  0xfb   : > { %1767 = vmatmul.mubr.f32.gmra.mxu0 %v1446_v60  ;;  %1305 = vrot.lane.b32.xlu1 %v1234_v44, %s5761_s29  ;;  %v697_v44 = vrot.slane %v6372_v28, 1  ;;  %v2057_v60 = vld [vmem:[%s8306_s3 + $0x70] sm:$0xff]  ;;  %v1058_v58 = vsel %vm1005_vm0, %v1055_v4, %v1057_v41  ;;  %v696_v5 = vsel %vm641_vm1, %v693_v0, %v695_v43  ;;  %v2055_v0 = vld [vmem:[%s8306_s3 + $0x60] sm:$0xff]  ;;  %v1061_v4 = vrot.slane %v6372_v28, 3 }
  0xfc   : > { %v1086_v1 = vpop.permute.xlu0 %1085  ;;  %2076 = vmatpush1.msra.mxu1 %v2058_v40  ;;  %v2053_v40 = vld [vmem:[%s8306_s3 + $0x50] sm:$0xff] }
  0xfd   : > { %v1484_v9 = vsel %vm1480_vm4, %v1086_v1, %v1268_v61  ;;  %v1447_v10 = vsel %vm1443_vm8, %v1410_v2, %v1086_v1  ;;  %v5165_v11 = vpop.permute.xlu1 %5164  ;;  %2077 = vmatprep.subr.mxu1 %v8331_v24  ;;  %v5273_v61 = vpack.i.bf16 %v880_v50, %v878_v47  ;;  %v698_v56 = vsel %vm641_vm1, %v695_v43, %v697_v44 }
  0xfe   : > { %1123 = vrot.lane.b32.xlu0 %v1052_v62, %s5759_s24  ;;  %4547 = vmatprep.mubr.msk.f32.mxu0 %vm1575_vm5, %v1484_v9  ;;  %v5166_v18 = vunpack.i.l.bf16 %v5165_v11  ;;  %v5167_v31 = vunpack.i.h.bf16 %v5165_v11  ;;  %v1241_v62 = vrot.slane %v6369_v27, 4  ;;  %v6429_v9 = vld [vmem:[%s5975_s26 + $0xe8] sm:$0xff]  ;;  %v5268_v11 = vpack.i.bf16 %v698_v56, %v696_v5 }
  0xff   : > { %1773 = vmatmul.mubr.f32.gmra.mxu0 %v1447_v10  ;;  %1307 = vrot.lane.b32.xlu1 %v1236_v14, %s5761_s29  ;;  %v6432_v10 = vld [vmem:[%s5975_s26 + $0xf0] sm:$0xff]  ;;  %v1063_v56 = vrot.slane %v6429_v9, 3 }
 0x100   : > { %v5160_v22 = vpop.permute.xlu0 %5159  ;;  %2078 = vmatpush1.msra.mxu1 %v2057_v60  ;;  %v1244_v34 = vsel %vm1187_vm2, %v1241_v62, %v1243_v15  ;;  %v6500_v60 = vld [vmem:[%s5975_s26 + $0x100] sm:$0xff] }
 0x101   : > { %v5162_v3 = vunpack.i.h.bf16 %v5160_v22  ;;  %v5161_v23 = vunpack.i.l.bf16 %v5160_v22  ;;  %v1270_v26 = vpop.permute.xlu1 %1269  ;;  %2079 = vmatprep.subr.mxu1 %v8331_v24 }
 0x102   : > { %1125 = vrot.lane.b32.xlu0 %v1054_v12, %s5759_s24  ;;  %2080 = vmatpush1.msra.mxu1 %v2056_v63 }
 0x103   : > { %5264 = vrot.lane.b32.xlu1 %v5263_v6, %s5762_s16  ;;  %v1374_v17 = vsel %vm1369_vm6, %v6002_v19, %v5161_v23  ;;  %v1375_v19 = vsel %vm1369_vm6, %v6031_v51, %v5162_v3  ;;  %v1242_v6 = vsel %vm1187_vm2, %v1239_v30, %v1241_v62  ;;  %2081 = vmatprep.subr.mxu1 %v8331_v24  ;;  %v881_v3 = vrot.slane %v6429_v9, 2 }
 0x104   : > { %v1088_v32 = vpop.permute.xlu0 %1087  ;;  %v1411_v33 = vsel %vm1406_vm7, %v1374_v17, %v5166_v18  ;;  %v1412_v45 = vsel %vm1406_vm7, %v1375_v19, %v5167_v31  ;;  %v883_v23 = vrot.slane %v6432_v10, 2  ;;  %2082 = vmatpush1.msra.mxu1 %v2055_v0  ;;  %v1060_v30 = vsel %vm1005_vm0, %v1057_v41, %v1059_v13 }
 0x105   : > { %v1485_v36 = vsel %vm1480_vm4, %v1088_v32, %v1270_v26  ;;  %v1448_v37 = vsel %vm1443_vm8, %v1411_v33, %v1088_v32  ;;  %v1272_v38 = vpop.permute.xlu1 %1271  ;;  %2083 = vmatprep.subr.mxu1 %v8331_v24  ;;  %v701_v31 = vrot.slane %v6432_v10, 1  ;;  %v1247_v62 = vrot.slane %v6432_v10, 4 }
 0x106   : > { %5259 = vrot.lane.b32.xlu0 %v5258_v57, %s5760_s18  ;;  %4548 = vmatprep.mubr.msk.f32.mxu0 %vm1575_vm5, %v1485_v36  ;;  %v882_v36 = vsel %vm823_vm3, %v879_v35, %v881_v3  ;;  %v1062_v35 = vsel %vm1005_vm0, %v1059_v13, %v1061_v4  ;;  %v1064_v13 = vsel %vm1005_vm0, %v1061_v4, %v1063_v56 }
 0x107   : > { %1779 = vmatmul.mubr.f32.gmra.mxu0 %v1448_v37  ;;  %1309 = vrot.lane.b32.xlu1 %v1238_v29, %s5761_s29  ;;  %v2054_v29 = vld [vmem:[%s8306_s3 + $0x58] sm:$0xff]  ;;  %v884_v37 = vsel %vm823_vm3, %v881_v3, %v883_v23 }
 0x108   : > { %v1090_v51 = vpop.permute.xlu0 %1089  ;;  %2084 = vmatpush1.msra.mxu1 %v2054_v29  ;;  %v5283_v41 = vpack.i.bf16 %v884_v37, %v882_v36  ;;  %v2049_v29 = vld [vmem:[%s8306_s3 + $0x30] sm:$0xff] }
 0x109   : > { %v1486_v54 = vsel %vm1480_vm4, %v1090_v51, %v1272_v38  ;;  %v1449_v55 = vsel %vm1443_vm8, %v1412_v45, %v1090_v51  ;;  %v5175_v59 = vpop.permute.xlu1 %5174  ;;  %2085 = vmatprep.subr.mxu1 %v8331_v24  ;;  %v1245_v51 = vrot.slane %v6429_v9, 4  ;;  %v2052_v45 = vld [vmem:[%s8306_s3 + $0x48] sm:$0xff] }
 0x10a   : > { %1127 = vrot.lane.b32.xlu0 %v1056_v39, %s5759_s24  ;;  %4549 = vmatprep.mubr.msk.f32.mxu0 %vm1575_vm5, %v1486_v54  ;;  %v5176_v1 = vunpack.i.l.bf16 %v5175_v59  ;;  %v5177_v16 = vunpack.i.h.bf16 %v5175_v59  ;;  %v6497_v59 = vld [vmem:[%s5975_s26 + $0xf8] sm:$0xff] }
 0x10b   : > { %1785 = vmatmul.mubr.f32.gmra.mxu0 %v1449_v55  ;;  %1311 = vrot.lane.b32.xlu1 %v1240_v46, %s5761_s29  ;;  %v1246_v5 = vsel %vm1187_vm2, %v1243_v15, %v1245_v51  ;;  %v705_v15 = vrot.slane %v6500_v60, 1 }
 0x10c   : > { %v5170_v2 = vpop.permute.xlu0 %5169  ;;  %2086 = vmatpush1.msra.mxu1 %v2053_v40  ;;  %v6568_v40 = vld [vmem:[%s5975_s26 + $0x110] sm:$0xff] }
 0x10d   : > { %v5172_v14 = vunpack.i.h.bf16 %v5170_v2  ;;  %v5171_v7 = vunpack.i.l.bf16 %v5170_v2  ;;  %v1274_v8 = vpop.permute.xlu1 %1273  ;;  %2087 = vmatprep.subr.mxu1 %v8331_v24 }
 0x10e   : > { %1129 = vrot.lane.b32.xlu0 %v1058_v58, %s5759_s24  ;;  %2088 = vmatpush1.msra.mxu1 %v2052_v45 }
 0x10f   : > { %5274 = vrot.lane.b32.xlu1 %v5273_v61, %s5762_s16  ;;  %v1376_v12 = vsel %vm1369_vm6, %v6034_v52, %v5171_v7  ;;  %v1377_v17 = vsel %vm1369_vm6, %v6063_v20, %v5172_v14  ;;  %v699_v20 = vrot.slane %v6429_v9, 1  ;;  %2089 = vmatprep.subr.mxu1 %v8331_v24  ;;  %v885_v14 = vrot.slane %v6497_v59, 2 }
 0x110   : > { %v1092_v18 = vpop.permute.xlu0 %1091  ;;  %v1413_v22 = vsel %vm1406_vm7, %v1376_v12, %v5176_v1  ;;  %v1414_v33 = vsel %vm1406_vm7, %v1377_v17, %v5177_v16  ;;  %v887_v7 = vrot.slane %v6500_v60, 2  ;;  %v2050_v12 = vld [vmem:[%s8306_s3 + $0x38] sm:$0xff] }
 0x111   : > { %v1487_v26 = vsel %vm1480_vm4, %v1092_v18, %v1274_v8  ;;  %v1450_v52 = vsel %vm1443_vm8, %v1413_v22, %v1092_v18  ;;  %v1276_v57 = vpop.permute.xlu1 %1275  ;;  %v700_v39 = vsel %vm641_vm1, %v697_v44, %v699_v20  ;;  %v702_v43 = vsel %vm641_vm1, %v699_v20, %v701_v31  ;;  %v2051_v44 = vld [vmem:[%s8306_s3 + $0x40] sm:$0xff] }
 0x112   : > { %5269 = vrot.lane.b32.xlu0 %v5268_v11, %s5760_s18  ;;  %4550 = vmatprep.mubr.msk.f32.mxu0 %vm1575_vm5, %v1487_v26  ;;  %v5278_v58 = vpack.i.bf16 %v702_v43, %v700_v39  ;;  %v1248_v22 = vsel %vm1187_vm2, %v1245_v51, %v1247_v62  ;;  %v886_v3 = vsel %vm823_vm3, %v883_v23, %v885_v14  ;;  %v1067_v43 = vrot.slane %v6497_v59, 3 }
 0x113   : > { %1791 = vmatmul.mubr.f32.gmra.mxu0 %v1450_v52  ;;  %1313 = vrot.lane.b32.xlu1 %v1242_v6, %s5761_s29  ;;  %v1065_v6 = vrot.slane %v6432_v10, 3  ;;  %v888_v26 = vsel %vm823_vm3, %v885_v14, %v887_v7  ;;  %v1251_v51 = vrot.slane %v6500_v60, 4 }
 0x114   : > { %v1094_v32 = vpop.permute.xlu0 %1093  ;;  %2090 = vmatpush1.msra.mxu1 %v2051_v44  ;;  %v5293_v4 = vpack.i.bf16 %v888_v26, %v886_v3 }
 0x115   : > { %v1488_v42 = vsel %vm1480_vm4, %v1094_v32, %v1276_v57  ;;  %v1451_v38 = vsel %vm1443_vm8, %v1414_v33, %v1094_v32  ;;  %v5185_v19 = vpop.permute.xlu1 %5184  ;;  %2091 = vmatprep.subr.mxu1 %v8331_v24  ;;  %v1066_v23 = vsel %vm1005_vm0, %v1063_v56, %v1065_v6  ;;  %v1249_v32 = vrot.slane %v6497_v59, 4  ;;  %v2048_v33 = vld [vmem:[%s8306_s3 + $0x28] sm:$0xff] }
 0x116   : > { %1131 = vrot.lane.b32.xlu0 %v1060_v30, %s5759_s24  ;;  %4551 = vmatprep.mubr.msk.f32.mxu0 %vm1575_vm5, %v1488_v42  ;;  %v5186_v46 = vunpack.i.l.bf16 %v5185_v19  ;;  %v5187_v63 = vunpack.i.h.bf16 %v5185_v19  ;;  %v6565_v19 = vld [vmem:[%s5975_s26 + $0x108] sm:$0xff]  ;;  %v1068_v56 = vsel %vm1005_vm0, %v1065_v6, %v1067_v43 }
 0x117   : > { %1797 = vmatmul.mubr.f32.gmra.mxu0 %v1451_v38  ;;  %1315 = vrot.lane.b32.xlu1 %v1244_v34, %s5761_s29  ;;  %v1250_v39 = vsel %vm1187_vm2, %v1247_v62, %v1249_v32  ;;  %v709_v62 = vrot.slane %v6568_v40, 1 }
 0x118   : > { %v5180_v47 = vpop.permute.xlu0 %5179  ;;  %2092 = vmatpush1.msra.mxu1 %v2050_v12  ;;  %v2045_v12 = vld [vmem:[%s8306_s3 + $0x10] sm:$0xff] }
 0x119   : > { %v5182_v50 = vunpack.i.h.bf16 %v5180_v47  ;;  %v5181_v54 = vunpack.i.l.bf16 %v5180_v47  ;;  %v1278_v55 = vpop.permute.xlu1 %1277  ;;  %2093 = vmatprep.subr.mxu1 %v8331_v24 }
 0x11a   : > { %1133 = vrot.lane.b32.xlu0 %v1062_v35, %s5759_s24  ;;  %2094 = vmatpush1.msra.mxu1 %v2049_v29 }
 0x11b   : > { %5284 = vrot.lane.b32.xlu1 %v5283_v41, %s5762_s16  ;;  %v1378_v61 = vsel %vm1369_vm6, %v6066_v21, %v5181_v54  ;;  %v1379_v11 = vsel %vm1369_vm6, %v6091_v48, %v5182_v50  ;;  %v703_v48 = vrot.slane %v6497_v59, 1  ;;  %2095 = vmatprep.subr.mxu1 %v8331_v24  ;;  %v889_v50 = vrot.slane %v6565_v19, 2 }
 0x11c   : > { %v1096_v1 = vpop.permute.xlu0 %1095  ;;  %v1415_v2 = vsel %vm1406_vm7, %v1378_v61, %v5186_v46  ;;  %v1416_v18 = vsel %vm1406_vm7, %v1379_v11, %v5187_v63  ;;  %2096 = vmatpush1.msra.mxu1 %v2048_v33  ;;  %v891_v54 = vrot.slane %v6568_v40, 2  ;;  %v2046_v61 = vld [vmem:[%s8306_s3 + $0x18] sm:$0xff] }
 0x11d   : > { %v1489_v8 = vsel %vm1480_vm4, %v1096_v1, %v1278_v55  ;;  %v1452_v21 = vsel %vm1443_vm8, %v1415_v2, %v1096_v1  ;;  %v1280_v0 = vpop.permute.xlu1 %1279  ;;  %v704_v30 = vsel %vm641_vm1, %v701_v31, %v703_v48  ;;  %v706_v20 = vsel %vm641_vm1, %v703_v48, %v705_v15  ;;  %v2047_v31 = vld [vmem:[%s8306_s3 + $0x20] sm:$0xff]  ;;  %2097 = vmatprep.subr.mxu1 %v8331_v24 }
 0x11e   : > { %5279 = vrot.lane.b32.xlu0 %v5278_v58, %s5760_s18  ;;  %4552 = vmatprep.mubr.msk.f32.mxu0 %vm1575_vm5, %v1489_v8  ;;  %v5288_v35 = vpack.i.bf16 %v706_v20, %v704_v30  ;;  %v1252_v2 = vsel %vm1187_vm2, %v1249_v32, %v1251_v51  ;;  %v890_v14 = vsel %vm823_vm3, %v887_v7, %v889_v50  ;;  %v1071_v20 = vrot.slane %v6565_v19, 3 }
 0x11f   : > { %1803 = vmatmul.mubr.f32.gmra.mxu0 %v1452_v21  ;;  %1317 = vrot.lane.b32.xlu1 %v1246_v5, %s5761_s29  ;;  %v1069_v5 = vrot.slane %v6500_v60, 3  ;;  %v892_v8 = vsel %vm823_vm3, %v889_v50, %v891_v54  ;;  %v1255_v32 = vrot.slane %v6568_v40, 4 }
 0x120   : > { %v1098_v16 = vpop.permute.xlu0 %1097  ;;  %2098 = vmatpush1.msra.mxu1 %v2047_v31  ;;  %v5303_v6 = vpack.i.bf16 %v892_v8, %v890_v14 }
 0x121   : > { %v1490_v52 = vsel %vm1480_vm4, %v1098_v16, %v1280_v0  ;;  %v1453_v57 = vsel %vm1443_vm8, %v1416_v18, %v1098_v16  ;;  %v5195_v17 = vpop.permute.xlu1 %5194  ;;  %2099 = vmatprep.subr.mxu1 %v8331_v24  ;;  %v1070_v7 = vsel %vm1005_vm0, %v1067_v43, %v1069_v5  ;;  %v1253_v16 = vrot.slane %v6565_v19, 4  ;;  %v2044_v18 = vld [vmem:[%s8306_s3 + $0x8] sm:$0xff] }
 0x122   : > { %1135 = vrot.lane.b32.xlu0 %v1064_v13, %s5759_s24  ;;  %4553 = vmatprep.mubr.msk.f32.mxu0 %vm1575_vm5, %v1490_v52  ;;  %v5196_v34 = vunpack.i.l.bf16 %v5195_v17  ;;  %v5197_v45 = vunpack.i.h.bf16 %v5195_v17  ;;  %v6633_v17 = vld [vmem:[%s5975_s26 + $0x118] sm:$0xff]  ;;  %v1073_v43 = vrot.slane %v6568_v40, 3 }
 0x123   : > { %1809 = vmatmul.mubr.f32.gmra.mxu0 %v1453_v57  ;;  %1319 = vrot.lane.b32.xlu1 %v1248_v22, %s5761_s29  ;;  %v1254_v30 = vsel %vm1187_vm2, %v1251_v51, %v1253_v16  ;;  %v1072_v51 = vsel %vm1005_vm0, %v1069_v5, %v1071_v20  ;;  %v1256_v50 = vsel %vm1187_vm2, %v1253_v16, %v1255_v32  ;;  %v2073_v5 = vld [vmem:[%s8306_s3 + $0xf0] sm:$0xff]  ;;  %v1257_v8 = vrot.slane %v6633_v17, 4 }
 0x124   : > { %v5190_v36 = vpop.permute.xlu0 %5189  ;;  %2100 = vmatpush1.msra.mxu1 %v2046_v61 }
 0x125   : > { %v5192_v37 = vunpack.i.h.bf16 %v5190_v36  ;;  %v5191_v42 = vunpack.i.l.bf16 %v5190_v36  ;;  %v1282_v38 = vpop.permute.xlu1 %1281  ;;  %2101 = vmatprep.subr.mxu1 %v8331_v24 }
 0x126   : > { %1137 = vrot.lane.b32.xlu0 %v1066_v23, %s5759_s24  ;;  %2102 = vmatpush1.msra.mxu1 %v2045_v12  ;;  %v5530_v23 = vld [vmem:[%s5975_s26 + $0x60] sm:$0xff] }
 0x127   : > { %5294 = vrot.lane.b32.xlu1 %v5293_v4, %s5762_s16  ;;  %v1380_v41 = vsel %vm1369_vm6, %v6094_v49, %v5191_v42  ;;  %v1381_v58 = vsel %vm1369_vm6, %v6123_v25, %v5192_v37  ;;  %v707_v25 = vrot.slane %v6565_v19, 1  ;;  %2103 = vmatprep.subr.mxu1 %v8331_v24  ;;  %v893_v37 = vrot.slane %v6633_v17, 2 }
 0x128   : > { %v1100_v46 = vpop.permute.xlu0 %1099  ;;  %v1417_v47 = vsel %vm1406_vm7, %v1380_v41, %v5196_v34  ;;  %v1418_v1 = vsel %vm1406_vm7, %v1381_v58, %v5197_v45  ;;  %2104 = vmatpush1.msra.mxu1 %v2044_v18  ;;  %v895_v42 = vrot.slane %v8331_v24, 2  ;;  %v713_v45 = vrot.slane %v8331_v24, 1 }
 0x129   : > { %v1491_v55 = vsel %vm1480_vm4, %v1100_v46, %v1282_v38  ;;  %v1454_v49 = vsel %vm1443_vm8, %v1417_v47, %v1100_v46  ;;  %v1284_v44 = vpop.permute.xlu1 %1283  ;;  %v708_v13 = vsel %vm641_vm1, %v705_v15, %v707_v25  ;;  %v710_v48 = vsel %vm641_vm1, %v707_v25, %v709_v62  ;;  %v2043_v15 = vld [vmem:[%s8306_s3] sm:$0xff]  ;;  %2105 = vmatprep.subr.mxu1 %v8331_v24 }
 0x12a   : > { %5289 = vrot.lane.b32.xlu0 %v5288_v35, %s5760_s18  ;;  %4554 = vmatprep.mubr.msk.f32.mxu0 %vm1575_vm5, %v1491_v55  ;;  %v5298_v29 = vpack.i.bf16 %v710_v48, %v708_v13  ;;  %v894_v55 = vsel %vm823_vm3, %v891_v54, %v893_v37  ;;  %v1074_v54 = vsel %vm1005_vm0, %v1071_v20, %v1073_v43  ;;  %v1075_v13 = vrot.slane %v6633_v17, 3 }
 0x12b   : > { %1815 = vmatmul.mubr.f32.gmra.mxu0 %v1454_v49  ;;  %1321 = vrot.lane.b32.xlu1 %v1250_v39, %s5761_s29  ;;  %v2074_v39 = vld [vmem:[%s8306_s3 + $0xf8] sm:$0xff]  ;;  %v896_v49 = vsel %vm823_vm3, %v893_v37, %v895_v42  ;;  %v2069_v42 = vld [vmem:[%s8306_s3 + $0xd0] sm:$0xff] }
 0x12c   : > { %v1102_v63 = vpop.permute.xlu0 %1101  ;;  %2106 = vmatpush1.msra.mxu1 %v2043_v15  ;;  %v5532_v15 = vld [vmem:[%s5975_s26 + $0x78] sm:$0xff] }
 0x12d   : > { %v1492_v21 = vsel %vm1480_vm4, %v1102_v63, %v1284_v44  ;;  %v1455_v0 = vsel %vm1443_vm8, %v1418_v1, %v1102_v63  ;;  %v5205_v11 = vpop.permute.xlu1 %5204  ;;  %2107 = vmatprep.subr.mxu1 %v8331_v24  ;;  %v2072_v1 = vld [vmem:[%s8306_s3 + $0xe8] sm:$0xff] }
 0x12e   : > { %1139 = vrot.lane.b32.xlu0 %v1068_v56, %s5759_s24  ;;  %4555 = vmatprep.mubr.msk.f32.mxu0 %vm1575_vm5, %v1492_v21  ;;  %v5206_v22 = vunpack.i.l.bf16 %v5205_v11  ;;  %v5207_v33 = vunpack.i.h.bf16 %v5205_v11  ;;  %v5313_v56 = vpack.i.bf16 %v896_v49, %v894_v55 }
 0x12f   : > { %1821 = vmatmul.mubr.f32.gmra.mxu0 %v1455_v0  ;;  %1323 = vrot.lane.b32.xlu1 %v1252_v2, %s5761_s29 }
 0x130   : > { %v5200_v3 = vpop.permute.xlu0 %5199  ;;  %2108 = vmatpush2.msra.mxu1 %v2074_v39 }
 0x131   : > { %v5202_v26 = vunpack.i.h.bf16 %v5200_v3  ;;  %v5201_v52 = vunpack.i.l.bf16 %v5200_v3  ;;  %v1286_v57 = vpop.permute.xlu1 %1285  ;;  %2109 = vmatprep.subr.mxu1 %v8331_v24  ;;  %v1259_v3 = vrot.slane %v8331_v24, 4 }
 0x132   : > { %1141 = vrot.lane.b32.xlu0 %v1070_v7, %s5759_s24  ;;  %2110 = vmatpush2.msra.mxu1 %v2073_v5  ;;  %v5531_v7 = vld [vmem:[%s5975_s26 + $0x70] sm:$0xff]  ;;  %v5534_v5 = vld [vmem:[%s5975_s26 + $0x88] sm:$0xff] }
 0x133   : > { %5304 = vrot.lane.b32.xlu1 %v5303_v6, %s5762_s16  ;;  %v1382_v4 = vsel %vm1369_vm6, %v5530_v23, %v5201_v52  ;;  %v1383_v41 = vsel %vm1369_vm6, %v6153_v53, %v5202_v26  ;;  %v711_v53 = vrot.slane %v6633_v17, 1  ;;  %2111 = vmatprep.subr.mxu1 %v8331_v24  ;;  %v2070_v23 = vld [vmem:[%s8306_s3 + $0xd8] sm:$0xff] }
 0x134   : > { %v1104_v34 = vpop.permute.xlu0 %1103  ;;  %v1419_v36 = vsel %vm1406_vm7, %v1382_v4, %v5206_v22  ;;  %v1420_v47 = vsel %vm1406_vm7, %v1383_v41, %v5207_v33  ;;  %2112 = vmatpush2.msra.mxu1 %v2072_v1  ;;  %v1258_v22 = vsel %vm1187_vm2, %v1255_v32, %v1257_v8  ;;  %v1076_v4 = vsel %vm1005_vm0, %v1073_v43, %v1075_v13 }
 0x135   : > { %v1493_v38 = vsel %vm1480_vm4, %v1104_v34, %v1286_v57  ;;  %v1456_v31 = vsel %vm1443_vm8, %v1419_v36, %v1104_v34  ;;  %v1288_v35 = vpop.permute.xlu1 %1287  ;;  %v712_v25 = vsel %vm641_vm1, %v709_v62, %v711_v53  ;;  %v714_v63 = vsel %vm641_vm1, %v711_v53, %v713_v45  ;;  %v2071_v62 = vld [vmem:[%s8306_s3 + $0xe0] sm:$0xff]  ;;  %2113 = vmatprep.subr.mxu1 %v8331_v24 }
 0x136   : > { %5299 = vrot.lane.b32.xlu0 %v5298_v29, %s5760_s18  ;;  %4556 = vmatprep.mubr.msk.f32.mxu0 %vm1575_vm5, %v1493_v38  ;;  %v5308_v12 = vpack.i.bf16 %v714_v63, %v712_v25  ;;  %v1260_v33 = vsel %vm1187_vm2, %v1257_v8, %v1259_v3  ;;  %v2067_v53 = vld [vmem:[%s8306_s3 + $0xc0] sm:$0xff]  ;;  %v2064_v25 = vld [vmem:[%s8306_s3 + $0xa8] sm:$0xff] }
 0x137   : > { %1827 = vmatmul.mubr.f32.gmra.mxu0 %v1456_v31  ;;  %1325 = vrot.lane.b32.xlu1 %v1254_v30, %s5761_s29  ;;  %v1077_v30 = vrot.slane %v8331_v24, 3  ;;  %v2068_v31 = vld [vmem:[%s8306_s3 + $0xc8] sm:$0xff]  ;;  %v5533_v45 = vld [vmem:[%s5975_s26 + $0x80] sm:$0xff] }
 0x138   : > { %v1106_v46 = vpop.permute.xlu0 %1105  ;;  %2114 = vmatpush2.msra.mxu1 %v2071_v62 }
 0x139   : > { %v1494_v44 = vsel %vm1480_vm4, %v1106_v46, %v1288_v35  ;;  %v1457_v58 = vsel %vm1443_vm8, %v1420_v47, %v1106_v46  ;;  %v5215_v61 = vpop.permute.xlu1 %5214  ;;  %2115 = vmatprep.subr.mxu1 %v8331_v24  ;;  %v1078_v38 = vsel %vm1005_vm0, %v1075_v13, %v1077_v30  ;;  %v2066_v47 = vld [vmem:[%s8306_s3 + $0xb8] sm:$0xff]  ;;  %v2061_v13 = vld [vmem:[%s8306_s3 + $0x90] sm:$0xff] }
 0x13a   : > { %1143 = vrot.lane.b32.xlu0 %v1072_v51, %s5759_s24  ;;  %4557 = vmatprep.mubr.msk.f32.mxu0 %vm1575_vm5, %v1494_v44  ;;  %v5216_v2 = vunpack.i.l.bf16 %v5215_v61  ;;  %v5217_v48 = vunpack.i.h.bf16 %v5215_v61 }
 0x13b   : > { %1833 = vmatmul.mubr.f32.gmra.mxu0 %v1457_v58  ;;  %1327 = vrot.lane.b32.xlu1 %v1256_v50, %s5761_s29 }
 0x13c   : > { %v5210_v14 = vpop.permute.xlu0 %5209  ;;  %2116 = vmatpush2.msra.mxu1 %v2070_v23 }
 0x13d   : > { %v5212_v21 = vunpack.i.h.bf16 %v5210_v14  ;;  %v5211_v0 = vunpack.i.l.bf16 %v5210_v14  ;;  %v1290_v11 = vpop.permute.xlu1 %1289  ;;  %2117 = vmatprep.subr.mxu1 %v8331_v24 }
 0x13e   : > { %1145 = vrot.lane.b32.xlu0 %v1074_v54, %s5759_s24  ;;  %2118 = vmatpush2.msra.mxu1 %v2069_v42 }
 0x13f   : > { %5314 = vrot.lane.b32.xlu1 %v5313_v56, %s5762_s16  ;;  %v1384_v6 = vsel %vm1369_vm6, %v5531_v7, %v5211_v0  ;;  %v1385_v29 = vsel %vm1369_vm6, %v5532_v15, %v5212_v21  ;;  %2119 = vmatprep.subr.mxu1 %v8331_v24  ;;  %v2065_v56 = vld [vmem:[%s8306_s3 + $0xb0] sm:$0xff]  ;;  %v2063_v21 = vld [vmem:[%s8306_s3 + $0xa0] sm:$0xff]  ;;  %v2062_v0 = vld [vmem:[%s8306_s3 + $0x98] sm:$0xff] }
 0x140   : > { %v1108_v16 = vpop.permute.xlu0 %1107  ;;  %v1421_v18 = vsel %vm1406_vm7, %v1384_v6, %v5216_v2  ;;  %v1422_v32 = vsel %vm1406_vm7, %v1385_v29, %v5217_v48  ;;  %2120 = vmatpush2.msra.mxu1 %v2068_v31  ;;  %v5535_v48 = vld [vmem:[%s5975_s26 + $0x90] sm:$0xff]  ;;  %v5536_v29 = vld [vmem:[%s5975_s26 + $0x98] sm:$0xff] }
 0x141   : > { %v1495_v26 = vsel %vm1480_vm4, %v1108_v16, %v1290_v11  ;;  %v1458_v52 = vsel %vm1443_vm8, %v1421_v18, %v1108_v16  ;;  %v1292_v57 = vpop.permute.xlu1 %1291  ;;  %2121 = vmatprep.subr.mxu1 %v8331_v24  ;;  %v2060_v18 = vld [vmem:[%s8306_s3 + $0x88] sm:$0xff] }
 0x142   : > { %5309 = vrot.lane.b32.xlu0 %v5308_v12, %s5760_s18  ;;  %4558 = vmatprep.mubr.msk.f32.mxu0 %vm1575_vm5, %v1495_v26  ;;  %s4601_s18 = sshll.u32 %s5867_s22, 7  ;;  %s5678_s22 = sshll.u32 %s5765_s14, 4  ;;  %s5679_s22 = int_to_ptr.vmem [resolvable:$false] %s5678_s22 }
 0x143   : > { %1839 = vmatmul.mubr.f32.gmra.mxu0 %v1458_v52  ;;  %1329 = vrot.lane.b32.xlu1 %v1258_v22, %s5761_s29  ;;  %s8268_s15 = scalar_lea.hbm %s8360_s21, %s4601_s18 }
 0x144   : > { %v1110_v20 = vpop.permute.xlu0 %1109  ;;  %2122 = vmatpush2.msra.mxu1 %v2067_v53 }
 0x145   : > { %v1496_v34 = vsel %vm1480_vm4, %v1110_v20, %v1292_v57  ;;  %v1459_v36 = vsel %vm1443_vm8, %v1422_v32, %v1110_v20  ;;  %v5225_v37 = vpop.permute.xlu1 %5224  ;;  %2123 = vmatprep.subr.mxu1 %v8331_v24 }
 0x146   : > { %1147 = vrot.lane.b32.xlu0 %v1076_v4, %s5759_s24  ;;  %4559 = vmatprep.mubr.msk.f32.mxu0 %vm1575_vm5, %v1496_v34  ;;  %v5226_v35 = vunpack.i.l.bf16 %v5225_v37  ;;  %v5227_v50 = vunpack.i.h.bf16 %v5225_v37  ;;  %v2059_v4 = vld [vmem:[%s8306_s3 + $0x80] sm:$0xff] }
 0x147   : > { %1845 = vmatmul.mubr.f32.gmra.mxu0 %v1459_v36  ;;  %1331 = vrot.lane.b32.xlu1 %v1260_v33, %s5761_s29  ;;  %s8361_s29 = smov %s8360_s21 }
 0x148   : > { %v5220_v41 = vpop.permute.xlu0 %5219  ;;  %2124 = vmatpush2.msra.mxu1 %v2066_v47  ;;  %v5538_v47 = vld [vmem:[%s5975_s26 + $0xa8] sm:$0xff] }
 0x149   : > { %v5222_v39 = vunpack.i.h.bf16 %v5220_v41  ;;  %v5221_v43 = vunpack.i.l.bf16 %v5220_v41  ;;  %v1294_v51 = vpop.permute.xlu1 %1293  ;;  %2125 = vmatprep.subr.mxu1 %v8331_v24 }
 0x14a   : > { %1149 = vrot.lane.b32.xlu0 %v1078_v38, %s5759_s24  ;;  %2126 = vmatpush2.msra.mxu1 %v2065_v56 }
 0x14b   : > { %v1386_v46 = vsel %vm1369_vm6, %v5533_v45, %v5221_v43  ;;  %v1387_v54 = vsel %vm1369_vm6, %v5534_v5, %v5222_v39  ;;  %2127 = vmatprep.subr.mxu1 %v8331_v24 }
 0x14c   : > { %v1112_v55 = vpop.permute.xlu0 %1111  ;;  %v1423_v49 = vsel %vm1406_vm7, %v1386_v46, %v5226_v35  ;;  %v1424_v1 = vsel %vm1406_vm7, %v1387_v54, %v5227_v50  ;;  %2128 = vmatpush2.msra.mxu1 %v2064_v25  ;;  %v5537_v35 = vld [vmem:[%s5975_s26 + $0xa0] sm:$0xff] }
 0x14d   : > { %v1497_v44 = vsel %vm1480_vm4, %v1112_v55, %v1294_v51  ;;  %v1460_v58 = vsel %vm1443_vm8, %v1423_v49, %v1112_v55  ;;  %v1296_v61 = vpop.permute.xlu1 %1295  ;;  %2129 = vmatprep.subr.mxu1 %v8331_v24 }
 0x14e   : > { %4560 = vmatprep.mubr.msk.f32.mxu0 %vm1575_vm5, %v1497_v44  ;;  %2130 = vmatpush2.msra.mxu1 %v2063_v21 }
 0x14f   : > { %1851 = vmatmul.mubr.f32.gmra.mxu0 %v1460_v58  ;;  %2131 = vmatprep.subr.mxu1 %v8331_v24 }
 0x150   : > { %v1114_v63 = vpop.permute.xlu0 %1113  ;;  %2132 = vmatpush2.msra.mxu1 %v2062_v0 }
 0x151   : > { %v1498_v2 = vsel %vm1480_vm4, %v1114_v63, %v1296_v61  ;;  %v1461_v14 = vsel %vm1443_vm8, %v1424_v1, %v1114_v63  ;;  %v5235_v8 = vpop.permute.xlu1 %5234  ;;  %2133 = vmatprep.subr.mxu1 %v8331_v24  ;;  %v5539_v1 = vld [vmem:[%s5975_s26 + $0xb0] sm:$0xff] }
 0x152   : > { %4561 = vmatprep.mubr.msk.f32.mxu0 %vm1575_vm5, %v1498_v2  ;;  %v5236_v11 = vunpack.i.l.bf16 %v5235_v8  ;;  %v5237_v22 = vunpack.i.h.bf16 %v5235_v8  ;;  %2134 = vmatpush2.msra.mxu1 %v2061_v13 }
 0x153   : > { %1857 = vmatmul.mubr.f32.gmra.mxu0 %v1461_v14  ;;  %2135 = vmatprep.subr.mxu1 %v8331_v24 }
 0x154   : > { %v5230_v62 = vpop.permute.xlu0 %5229  ;;  %2136 = vmatpush2.msra.mxu1 %v2060_v18 }
 0x155   : > { %v5232_v12 = vunpack.i.h.bf16 %v5230_v62  ;;  %v5231_v7 = vunpack.i.l.bf16 %v5230_v62  ;;  %v1298_v6 = vpop.permute.xlu1 %1297  ;;  %2137 = vmatprep.subr.mxu1 %v8331_v24 }
 0x156   : > { %2138 = vmatpush2.msra.mxu1 %v2059_v4 }
 0x157   : > { %v1388_v16 = vsel %vm1369_vm6, %v5535_v48, %v5231_v7  ;;  %v1389_v23 = vsel %vm1369_vm6, %v5536_v29, %v5232_v12  ;;  %4866 = vmatprep.subr.mxu1 %v8331_v24  ;;  %v5540_v12 = vld [vmem:[%s5975_s26 + $0xb8] sm:$0xff] }
 0x158   : > { %v1116_v3 = vpop.permute.xlu0 %1115  ;;  %v1425_v26 = vsel %vm1406_vm7, %v1388_v16, %v5236_v11  ;;  %v1426_v20 = vsel %vm1406_vm7, %v1389_v23, %v5237_v22 }
 0x159   : > { %v1499_v52 = vsel %vm1480_vm4, %v1116_v3, %v1298_v6  ;;  %v1462_v57 = vsel %vm1443_vm8, %v1425_v26, %v1116_v3  ;;  %v1300_v15 = vpop.permute.xlu1 %1299 }
 0x15a   : > { %4562 = vmatprep.mubr.msk.f32.mxu0 %vm1575_vm5, %v1499_v52 }
 0x15b   : > { %1863 = vmatmul.mubr.f32.gmra.mxu0 %v1462_v57 }
 0x15c   : > { %v1118_v30 = vpop.permute.xlu0 %1117 }
 0x15d   : > { %v1500_v32 = vsel %vm1480_vm4, %v1118_v30, %v1300_v15  ;;  %v1463_v33 = vsel %vm1443_vm8, %v1426_v20, %v1118_v30  ;;  %v5245_v34 = vpop.permute.xlu1 %5244  ;;  %v5541_v15 = vld [vmem:[%s5975_s26 + $0xc0] sm:$0xff] }
 0x15e   : > { %4563 = vmatprep.mubr.msk.f32.mxu0 %vm1575_vm5, %v1500_v32  ;;  %v5246_v36 = vunpack.i.l.bf16 %v5245_v34  ;;  %v5247_v39 = vunpack.i.h.bf16 %v5245_v34  ;;  %v5542_v34 = vld [vmem:[%s5975_s26 + $0xc8] sm:$0xff] }
 0x15f   : > { %1869 = vmatmul.mubr.f32.gmra.mxu0 %v1463_v33 }
 0x160   : > { %v5240_v37 = vpop.permute.xlu0 %5239 }
 0x161   : > { %v5242_v42 = vunpack.i.h.bf16 %v5240_v37  ;;  %v5241_v38 = vunpack.i.l.bf16 %v5240_v37  ;;  %v1302_v31 = vpop.permute.xlu1 %1301 }
 0x163   : > { %v1390_v41 = vsel %vm1369_vm6, %v5537_v35, %v5241_v38  ;;  %v1391_v50 = vsel %vm1369_vm6, %v5538_v47, %v5242_v42 }
 0x164   : > { %v1120_v43 = vpop.permute.xlu0 %1119  ;;  %v1427_v51 = vsel %vm1406_vm7, %v1390_v41, %v5246_v36  ;;  %v1428_v49 = vsel %vm1406_vm7, %v1391_v50, %v5247_v39 }
 0x165   : > { %v1501_v53 = vsel %vm1480_vm4, %v1120_v43, %v1302_v31  ;;  %v1464_v45 = vsel %vm1443_vm8, %v1427_v51, %v1120_v43  ;;  %v1304_v46 = vpop.permute.xlu1 %1303 }
 0x166   : > { %4564 = vmatprep.mubr.msk.f32.mxu0 %vm1575_vm5, %v1501_v53 }
 0x167   : > { %1875 = vmatmul.mubr.f32.gmra.mxu0 %v1464_v45  ;;  %v5543_v45 = vld [vmem:[%s5975_s26 + $0xd0] sm:$0xff]  ;;  %s559_s26 = sand.u32 1, %s5738_s19  }
 0x168   : > { %v1122_v55 = vpop.permute.xlu0 %1121  ;;  %s4540_s17 = sshll.u32 %s559_s26, 3  ;;  %s4404_s24 = scalar_lea.sflag [#allocation4], %s559_s26 }
 0x169   : > { %v1502_v44 = vsel %vm1480_vm4, %v1122_v55, %v1304_v46  ;;  %v1465_v58 = vsel %vm1443_vm8, %v1428_v49, %v1122_v55  ;;  %v5255_v61 = vpop.permute.xlu1 %5254  ;;  %s561_s27 = scalar_lea.vmem [#allocation11], %s4540_s17  ;;  %s5680_s17 = scalar_lea.vmem %s5679_s22, 256 }
 0x16a   : > { %4565 = vmatprep.mubr.msk.f32.mxu0 %vm1575_vm5, %v1502_v44  ;;  %v5256_v5 = vunpack.i.l.bf16 %v5255_v61  ;;  %v5257_v14 = vunpack.i.h.bf16 %v5255_v61  ;;  %s4417_s30 = sshll.u32 %s561_s27, 4  ;;  %s4418_s30 = int_to_ptr.vmem [resolvable:$true] %s4417_s30 }
 0x16b   : > { %1881 = vmatmul.mubr.f32.gmra.mxu0 %v1465_v58  ;;  %s5674_s0 = scalar_lea.vmem %s4418_s30, 128  ;;  %p5681_p11 = scmp.lt.s32.totalorder %s4418_s30, %s5679_s22 }
 0x16c   : > { %v5250_v54 = vpop.permute.xlu0 %5249  ;;  %p5675_p7 = scmp.ne.s32.totalorder %s4418_s30, %s5674_s0  ;;  %p5682_p1 = scmp.lt.s32.totalorder %s5680_s17, %s5674_s0 }
 0x16d   : > { %v5252_v56 = vunpack.i.h.bf16 %v5250_v54  ;;  %v5251_v25 = vunpack.i.l.bf16 %v5250_v54  ;;  %v1306_v63 = vpop.permute.xlu1 %1305 }
 0x16e   : > { %p5676_p8 = pnand %p5675_p7, %p5884_p5  ;;  %p5683_p13 = por %p5682_p1, %p5681_p11 }
 0x16f   : > { %v1392_v2 = vsel %vm1369_vm6, %v5539_v1, %v5251_v25  ;;  %v1393_v7 = vsel %vm1369_vm6, %v5540_v12, %v5252_v56 }
 0x170   : > { %v1124_v8 = vpop.permute.xlu0 %1123  ;;  %v1429_v21 = vsel %vm1406_vm7, %v1392_v2, %v5256_v5  ;;  %v1430_v13 = vsel %vm1406_vm7, %v1393_v7, %v5257_v14  ;;  %p5677_p0 = pneg %p5676_p8 }
 0x171   : > { %v1503_v0 = vsel %vm1480_vm4, %v1124_v8, %v1306_v63  ;;  %v1466_v11 = vsel %vm1443_vm8, %v1429_v21, %v1124_v8  ;;  %v1308_v62 = vpop.permute.xlu1 %1307 }
 0x172   : > { %4566 = vmatprep.mubr.msk.f32.mxu0 %vm1575_vm5, %v1503_v0  ;;  %p5684_p3 = pnand %p5683_p13, %p5677_p0 }
 0x173   : > { %1887 = vmatmul.mubr.f32.gmra.mxu0 %v1466_v11 }
 0x174   : > { %v1126_v6 = vpop.permute.xlu0 %1125 }
 0x175   : > { %v1504_v48 = vsel %vm1480_vm4, %v1126_v6, %v1308_v62  ;;  %v1467_v16 = vsel %vm1443_vm8, %v1430_v13, %v1126_v6  ;;  %v5265_v18 = vpop.permute.xlu1 %5264 }
 0x176   : > { %4567 = vmatprep.mubr.msk.f32.mxu0 %vm1575_vm5, %v1504_v48  ;;  %v5266_v22 = vunpack.i.l.bf16 %v5265_v18  ;;  %v5267_v23 = vunpack.i.h.bf16 %v5265_v18 }
 0x177   : > { %1893 = vmatmul.mubr.f32.gmra.mxu0 %v1467_v16 }
 0x178   : > { %v5260_v3 = vpop.permute.xlu0 %5259 }
 0x179   : > { %v5262_v26 = vunpack.i.h.bf16 %v5260_v3  ;;  %v5261_v52 = vunpack.i.l.bf16 %v5260_v3  ;;  %v1310_v57 = vpop.permute.xlu1 %1309 }
 0x17b   : > { %v1394_v29 = vsel %vm1369_vm6, %v5541_v15, %v5261_v52  ;;  %v1395_v36 = vsel %vm1369_vm6, %v5542_v34, %v5262_v26  ;;  %v1565_v34 = vlaneseq }
 0x17c   : > { %v1128_v4 = vpop.permute.xlu0 %1127  ;;  %v1431_v30 = vsel %vm1406_vm7, %v1394_v29, %v5266_v22  ;;  %v1432_v42 = vsel %vm1406_vm7, %v1395_v36, %v5267_v23 }
 0x17d   : > { %v1505_v20 = vsel %vm1480_vm4, %v1128_v4, %v1310_v57  ;;  %v1468_v32 = vsel %vm1443_vm8, %v1431_v30, %v1128_v4  ;;  %v1312_v33 = vpop.permute.xlu1 %1311 }
 0x17e   : > { %4568 = vmatprep.mubr.msk.f32.mxu0 %vm1575_vm5, %v1505_v20 }
 0x17f   : > { %1899 = vmatmul.mubr.f32.gmra.mxu0 %v1468_v32 }
 0x180   : > { %v1130_v37 = vpop.permute.xlu0 %1129 }
 0x181   : > { %v1506_v38 = vsel %vm1480_vm4, %v1130_v37, %v1312_v33  ;;  %v1469_v31 = vsel %vm1443_vm8, %v1432_v42, %v1130_v37  ;;  %v5275_v35 = vpop.permute.xlu1 %5274 }
 0x182   : > { %4569 = vmatprep.mubr.msk.f32.mxu0 %vm1575_vm5, %v1506_v38  ;;  %v5276_v41 = vunpack.i.l.bf16 %v5275_v35  ;;  %v5277_v47 = vunpack.i.h.bf16 %v5275_v35 }
 0x183   : > { %1905 = vmatmul.mubr.f32.gmra.mxu0 %v1469_v31  ;;  %v6871_v31 = vshrl.u32 %v1565_v34, 7 }
 0x184   : > { %v5270_v39 = vpop.permute.xlu0 %5269 }
 0x185   : > { %v5272_v43 = vunpack.i.h.bf16 %v5270_v39  ;;  %v5271_v51 = vunpack.i.l.bf16 %v5270_v39  ;;  %v1314_v53 = vpop.permute.xlu1 %1313 }
 0x187   : > { %v1396_v46 = vsel %vm1369_vm6, %v5543_v45, %v5271_v51  ;;  %v1397_v61 = vsel %vm1369_vm6, %v6369_v27, %v5272_v43 }
 0x188   : > { %v1132_v50 = vpop.permute.xlu0 %1131  ;;  %v1433_v55 = vsel %vm1406_vm7, %v1396_v46, %v5276_v41  ;;  %v1434_v54 = vsel %vm1406_vm7, %v1397_v61, %v5277_v47 }
 0x189   : > { %v1507_v49 = vsel %vm1480_vm4, %v1132_v50, %v1314_v53  ;;  %v1470_v44 = vsel %vm1443_vm8, %v1433_v55, %v1132_v50  ;;  %v1316_v58 = vpop.permute.xlu1 %1315  ;;  %v1567_v53 = vsub.s32 0, %v6871_v31  ;;  %v1563_v50 = vld [vmem:[%s8305_s2] sm:$0x3]  ;;  %v1571_v55 = vsub.s32 1, %v6871_v31 }
 0x18a   : > { %4570 = vmatprep.mubr.msk.f32.mxu0 %vm1575_vm5, %v1507_v49 }
 0x18b   : > { %1911 = vmatmul.mubr.f32.gmra.mxu0 %v1470_v44  ;;  %v6888_v61 = vrot.slane %v1563_v50, %v1567_v53 }
 0x18c   : > { %v1134_v5 = vpop.permute.xlu0 %1133 }
 0x18d   : > { %v1508_v56 = vsel %vm1480_vm4, %v1134_v5, %v1316_v58  ;;  %v1471_v25 = vsel %vm1443_vm8, %v1434_v54, %v1134_v5  ;;  %v5285_v63 = vpop.permute.xlu1 %5284  ;;  %v6892_v54 = vrot.slane %v1563_v50, %v1571_v55 }
 0x18e   : > { %4571 = vmatprep.mubr.msk.f32.mxu0 %vm1575_vm5, %v1508_v56  ;;  %v5286_v1 = vunpack.i.l.bf16 %v5285_v63  ;;  %v5287_v0 = vunpack.i.h.bf16 %v5285_v63 }
 0x18f   : > { %1917 = vmatmul.mubr.f32.gmra.mxu0 %v1471_v25 }
 0x190   : > { %v5280_v2 = vpop.permute.xlu0 %5279 }
 0x191   : > { %v5282_v14 = vunpack.i.h.bf16 %v5280_v2  ;;  %v5281_v8 = vunpack.i.l.bf16 %v5280_v2  ;;  %v1318_v21 = vpop.permute.xlu1 %1317 }
 0x193   : > { %v1398_v27 = vsel %vm1369_vm6, %v6372_v28, %v5281_v8  ;;  %v1399_v13 = vsel %vm1369_vm6, %v6429_v9, %v5282_v14 }
 0x194   : > { %v1136_v11 = vpop.permute.xlu0 %1135  ;;  %v1435_v62 = vsel %vm1406_vm7, %v1398_v27, %v5286_v1  ;;  %v1436_v16 = vsel %vm1406_vm7, %v1399_v13, %v5287_v0 }
 0x195   : > { %v1509_v12 = vsel %vm1480_vm4, %v1136_v11, %v1318_v21  ;;  %v1472_v7 = vsel %vm1443_vm8, %v1435_v62, %v1136_v11  ;;  %v1320_v6 = vpop.permute.xlu1 %1319 }
 0x196   : > { %4572 = vmatprep.mubr.msk.f32.mxu0 %vm1575_vm5, %v1509_v12 }
 0x197   : > { %1923 = vmatmul.mubr.f32.gmra.mxu0 %v1472_v7 }
 0x198   : > { %v1138_v48 = vpop.permute.xlu0 %1137 }
 0x199   : > { %v1510_v28 = vsel %vm1480_vm4, %v1138_v48, %v1320_v6  ;;  %v1473_v18 = vsel %vm1443_vm8, %v1436_v16, %v1138_v48  ;;  %v5295_v22 = vpop.permute.xlu1 %5294 }
 0x19a   : > { %4573 = vmatprep.mubr.msk.f32.mxu0 %vm1575_vm5, %v1510_v28  ;;  %v5296_v3 = vunpack.i.l.bf16 %v5295_v22  ;;  %v5297_v29 = vunpack.i.h.bf16 %v5295_v22 }
 0x19b   : > { %1929 = vmatmul.mubr.f32.gmra.mxu0 %v1473_v18 }
 0x19c   : > { %v5290_v26 = vpop.permute.xlu0 %5289 }
 0x19d   : > { %v5292_v52 = vunpack.i.h.bf16 %v5290_v26  ;;  %v5291_v57 = vunpack.i.l.bf16 %v5290_v26  ;;  %v1322_v15 = vpop.permute.xlu1 %1321 }
 0x19f   : > { %v1400_v9 = vsel %vm1369_vm6, %v6432_v10, %v5291_v57  ;;  %v1401_v33 = vsel %vm1369_vm6, %v6497_v59, %v5292_v52 }
 0x1a0   : > { %v1140_v23 = vpop.permute.xlu0 %1139  ;;  %v1437_v4 = vsel %vm1406_vm7, %v1400_v9, %v5296_v3  ;;  %v1438_v37 = vsel %vm1406_vm7, %v1401_v33, %v5297_v29 }
 0x1a1   : > { %v1511_v30 = vsel %vm1480_vm4, %v1140_v23, %v1322_v15  ;;  %v1474_v20 = vsel %vm1443_vm8, %v1437_v4, %v1140_v23  ;;  %v1324_v32 = vpop.permute.xlu1 %1323 }
 0x1a2   : > { %4574 = vmatprep.mubr.msk.f32.mxu0 %vm1575_vm5, %v1511_v30 }
 0x1a3   : > { %1935 = vmatmul.mubr.f32.gmra.mxu0 %v1474_v20 }
 0x1a4   : > { %v1142_v36 = vpop.permute.xlu0 %1141 }
 0x1a5   : > { %v1512_v10 = vsel %vm1480_vm4, %v1142_v36, %v1324_v32  ;;  %v1475_v42 = vsel %vm1443_vm8, %v1438_v37, %v1142_v36  ;;  %v5305_v38 = vpop.permute.xlu1 %5304 }
 0x1a6   : > { %4575 = vmatprep.mubr.msk.f32.mxu0 %vm1575_vm5, %v1512_v10  ;;  %v5306_v35 = vunpack.i.l.bf16 %v5305_v38  ;;  %v5307_v45 = vunpack.i.h.bf16 %v5305_v38 }
 0x1a7   : > { %1941 = vmatmul.mubr.f32.gmra.mxu0 %v1475_v42 }
 0x1a8   : > { %v5300_v41 = vpop.permute.xlu0 %5299 }
 0x1a9   : > { %v5302_v59 = vunpack.i.h.bf16 %v5300_v41  ;;  %v5301_v39 = vunpack.i.l.bf16 %v5300_v41  ;;  %v1326_v43 = vpop.permute.xlu1 %1325 }
 0x1ab   : > { %v1402_v51 = vsel %vm1369_vm6, %v6500_v60, %v5301_v39  ;;  %v1403_v60 = vsel %vm1369_vm6, %v6565_v19, %v5302_v59 }
 0x1ac   : > { %v1144_v46 = vpop.permute.xlu0 %1143  ;;  %v1439_v47 = vsel %vm1406_vm7, %v1402_v51, %v5306_v35  ;;  %v1440_v56 = vsel %vm1406_vm7, %v1403_v60, %v5307_v45 }
 0x1ad   : > { %v1513_v49 = vsel %vm1480_vm4, %v1144_v46, %v1326_v43  ;;  %v1476_v44 = vsel %vm1443_vm8, %v1439_v47, %v1144_v46  ;;  %v1328_v58 = vpop.permute.xlu1 %1327 }
 0x1ae   : > { %4576 = vmatprep.mubr.msk.f32.mxu0 %vm1575_vm5, %v1513_v49 }
 0x1af   : > { %1947 = vmatmul.mubr.f32.gmra.mxu0 %v1476_v44 }
 0x1b0   : > { %v1146_v5 = vpop.permute.xlu0 %1145 }
 0x1b1   : > { %v1514_v25 = vsel %vm1480_vm4, %v1146_v5, %v1328_v58  ;;  %v1756_v63 = vpop.f32.mrf.mxu0  ;;  %v1477_v1 = vsel %vm1443_vm8, %v1440_v56, %v1146_v5  ;;  %v5315_v19 = vpop.permute.xlu1 %5314 }
 0x1b2   : > { %4577 = vmatprep.mubr.msk.f32.mxu0 %vm1575_vm5, %v1514_v25  ;;  %v1757_v2 = vadd.f32 %v1756_v63, %v6888_v61  ;;  %v5316_v21 = vunpack.i.l.bf16 %v5315_v19  ;;  %v5317_v48 = vunpack.i.h.bf16 %v5315_v19 }
 0x1b3   : > { %v1758_v14 = vpop.f32.mrf.mxu0  ;;  %1953 = vmatmul.mubr.f32.gmra.mxu0 %v1477_v1 }
 0x1b4   : > { %v1759_v8 = vadd.f32 %v1758_v14, %v6892_v54  ;;  %v5310_v27 = vpop.permute.xlu0 %5309 }
 0x1b5   : > { %v5312_v0 = vunpack.i.h.bf16 %v5310_v27  ;;  %v5311_v11 = vunpack.i.l.bf16 %v5310_v27  ;;  %v1762_v62 = vpop.f32.mrf.mxu0  ;;  %v1330_v12 = vpop.permute.xlu1 %1329 }
 0x1b6   : > { %5318 = vtanh.f32 %v1759_v8  ;;  %v1763_v7 = vadd.f32 %v1762_v62, %v6888_v61 }
 0x1b7   : > { %5320 = vtanh.f32 %v1757_v2  ;;  %v1764_v6 = vpop.f32.mrf.mxu0  ;;  %v1404_v13 = vsel %vm1369_vm6, %v6568_v40, %v5311_v11  ;;  %v1405_v26 = vsel %vm1369_vm6, %v6633_v17, %v5312_v0 }
 0x1b8   : > { %v1765_v16 = vadd.f32 %v1764_v6, %v6892_v54  ;;  %v1148_v28 = vpop.permute.xlu0 %1147  ;;  %v1441_v18 = vsel %vm1406_vm7, %v1404_v13, %v5316_v21  ;;  %v1442_v15 = vsel %vm1406_vm7, %v1405_v26, %v5317_v48 }
 0x1b9   : > { %v1515_v22 = vsel %vm1480_vm4, %v1148_v28, %v1330_v12  ;;  %v1478_v3 = vsel %vm1443_vm8, %v1441_v18, %v1148_v28  ;;  %v1332_v52 = vpop.permute.xlu1 %1331 }
 0x1ba   : > { %5322 = vtanh.f32 %v1765_v16  ;;  %4578 = vmatprep.mubr.msk.f32.mxu0 %vm1575_vm5, %v1515_v22 }
 0x1bb   : > { %5324 = vtanh.f32 %v1763_v7  ;;  %v1768_v57 = vpop.f32.mrf.mxu0  ;;  %1959 = vmatmul.mubr.f32.gmra.mxu0 %v1478_v3 }
 0x1bc   : > { %v1150_v40 = vpop.permute.xlu0 %1149  ;;  %v1769_v9 = vadd.f32 %v1768_v57, %v6888_v61 }
 0x1bd   : > { %v1516_v29 = vsel %vm1480_vm4, %v1150_v40, %v1332_v52  ;;  %v1770_v23 = vpop.f32.mrf.mxu0  ;;  %v1479_v4 = vsel %vm1443_vm8, %v1442_v15, %v1150_v40 }
 0x1be   : > { %v1771_v30 = vadd.f32 %v1770_v23, %v6892_v54  ;;  %4579 = vmatprep.mubr.msk.f32.mxu0 %vm1575_vm5, %v1516_v29 }
 0x1bf   : > { %v1774_v17 = vpop.f32.mrf.mxu0  ;;  %1965 = vmatmul.mubr.f32.gmra.mxu0 %v1479_v4 }
 0x1c0   : > { %5326 = vtanh.f32 %v1771_v30  ;;  %v1775_v20 = vadd.f32 %v1774_v17, %v6888_v61 }
 0x1c1   : > { %5328 = vtanh.f32 %v1769_v9  ;;  %v1776_v32 = vpop.f32.mrf.mxu0 }
 0x1c2   : > { %v1777_v33 = vadd.f32 %v1776_v32, %v6892_v54 }
 0x1c3   : > { %v5319_v34 = vpop.eup %5318 }
 0x1c4   : > { %v5321_v36 = vpop.eup %5320  ;;  %5330 = vtanh.f32 %v1777_v33  ;;  %2139 = vmatprep.mubr.f32.mxu1 %v5319_v34 }
 0x1c5   : > { %5332 = vtanh.f32 %v1775_v20  ;;  %2140 = vmatmul.mubr.f32.vlgmr.msra.gmra.mxu1 %v5321_v36 }
 0x1c7   : > { %v5323_v37 = vpop.eup %5322  ;;  %v1780_v10 = vpop.f32.mrf.mxu0 }
 0x1c8   : > { %v5325_v42 = vpop.eup %5324  ;;  %2144 = vmatprep.mubr.f32.mxu1 %v5323_v37  ;;  %v1781_v38 = vadd.f32 %v1780_v10, %v6888_v61 }
 0x1c9   : > { %v1782_v35 = vpop.f32.mrf.mxu0  ;;  %2145 = vmatmul.mubr.f32.gmra.mxu1 %v5325_v42 }
 0x1ca   : > { %v1783_v41 = vadd.f32 %v1782_v35, %v6892_v54 }
 0x1cb   : > { %v1786_v59 = vpop.f32.mrf.mxu0 }
 0x1cc   : > { %5334 = vtanh.f32 %v1783_v41  ;;  %v1787_v43 = vadd.f32 %v1786_v59, %v6888_v61 }
 0x1cd   : > { %v5327_v39 = vpop.eup %5326  ;;  %5336 = vtanh.f32 %v1781_v38  ;;  %v1788_v51 = vpop.f32.mrf.mxu0 }
 0x1ce   : > { %v5329_v45 = vpop.eup %5328  ;;  %v1789_v46 = vadd.f32 %v1788_v51, %v6892_v54  ;;  %2149 = vmatprep.mubr.f32.mxu1 %v5327_v39 }
 0x1cf   : > { %2150 = vmatmul.mubr.f32.gmra.mxu1 %v5329_v45 }
 0x1d0   : > { %5338 = vtanh.f32 %v1789_v46 }
 0x1d1   : > { %v5331_v47 = vpop.eup %5330  ;;  %5340 = vtanh.f32 %v1787_v43 }
 0x1d2   : > { %v5333_v50 = vpop.eup %5332  ;;  %2154 = vmatprep.mubr.f32.mxu1 %v5331_v47 }
 0x1d3   : > { %v1792_v49 = vpop.f32.mrf.mxu0  ;;  %2155 = vmatmul.mubr.f32.gmra.mxu1 %v5333_v50 }
 0x1d4   : > { %v1793_v44 = vadd.f32 %v1792_v49, %v6888_v61 }
 0x1d5   : > { %v1794_v58 = vpop.f32.mrf.mxu0 }
 0x1d6   : > { %v1795_v60 = vadd.f32 %v1794_v58, %v6892_v54 }
 0x1d7   : > { %v1798_v5 = vpop.f32.mrf.mxu0 }
 0x1d8   : > { %5342 = vtanh.f32 %v1795_v60  ;;  %v1799_v25 = vadd.f32 %v1798_v5, %v6888_v61 }
 0x1d9   : > { %v5335_v56 = vpop.eup %5334  ;;  %5344 = vtanh.f32 %v1793_v44  ;;  %v1800_v63 = vpop.f32.mrf.mxu0 }
 0x1da   : > { %v5337_v1 = vpop.eup %5336  ;;  %v1801_v19 = vadd.f32 %v1800_v63, %v6892_v54  ;;  %2159 = vmatprep.mubr.f32.mxu1 %v5335_v56 }
 0x1db   : > { %2160 = vmatmul.mubr.f32.gmra.mxu1 %v5337_v1 }
 0x1dc   : > { %5346 = vtanh.f32 %v1801_v19 }
 0x1dd   : > { %v5339_v2 = vpop.eup %5338  ;;  %5348 = vtanh.f32 %v1799_v25 }
 0x1de   : > { %v5341_v14 = vpop.eup %5340  ;;  %2164 = vmatprep.mubr.f32.mxu1 %v5339_v2 }
 0x1df   : > { %v1804_v8 = vpop.f32.mrf.mxu0  ;;  %2165 = vmatmul.mubr.f32.gmra.mxu1 %v5341_v14 }
 0x1e0   : > { %v1805_v21 = vadd.f32 %v1804_v8, %v6888_v61 }
 0x1e1   : > { %v1806_v27 = vpop.f32.mrf.mxu0 }
 0x1e2   : > { %v1807_v0 = vadd.f32 %v1806_v27, %v6892_v54 }
 0x1e3   : > { %v1810_v11 = vpop.f32.mrf.mxu0 }
 0x1e4   : > { %5350 = vtanh.f32 %v1807_v0  ;;  %v1811_v12 = vadd.f32 %v1810_v11, %v6888_v61 }
 0x1e5   : > { %v5343_v62 = vpop.eup %5342  ;;  %5352 = vtanh.f32 %v1805_v21  ;;  %v1812_v7 = vpop.f32.mrf.mxu0 }
 0x1e6   : > { %v5345_v6 = vpop.eup %5344  ;;  %v1813_v13 = vadd.f32 %v1812_v7, %v6892_v54  ;;  %2169 = vmatprep.mubr.f32.mxu1 %v5343_v62 }
 0x1e7   : > { %2170 = vmatmul.mubr.f32.gmra.mxu1 %v5345_v6 }
 0x1e8   : > { %5354 = vtanh.f32 %v1813_v13 }
 0x1e9   : > { %v5347_v48 = vpop.eup %5346  ;;  %5356 = vtanh.f32 %v1811_v12 }
 0x1ea   : > { %v5349_v16 = vpop.eup %5348  ;;  %2174 = vmatprep.mubr.f32.mxu1 %v5347_v48 }
 0x1eb   : > { %v1816_v28 = vpop.f32.mrf.mxu0  ;;  %2175 = vmatmul.mubr.f32.gmra.mxu1 %v5349_v16 }
 0x1ec   : > { %v1817_v18 = vadd.f32 %v1816_v28, %v6888_v61 }
 0x1ed   : > { %v1818_v22 = vpop.f32.mrf.mxu0 }
 0x1ee   : > { %v1819_v3 = vadd.f32 %v1818_v22, %v6892_v54 }
 0x1ef   : > { %v1822_v26 = vpop.f32.mrf.mxu0 }
 0x1f0   : > { %5358 = vtanh.f32 %v1819_v3  ;;  %v1823_v57 = vadd.f32 %v1822_v26, %v6888_v61 }
 0x1f1   : > { %v5351_v52 = vpop.eup %5350  ;;  %5360 = vtanh.f32 %v1817_v18  ;;  %v1824_v40 = vpop.f32.mrf.mxu0 }
 0x1f2   : > { %v5353_v15 = vpop.eup %5352  ;;  %v1825_v9 = vadd.f32 %v1824_v40, %v6892_v54  ;;  %2179 = vmatprep.mubr.f32.mxu1 %v5351_v52 }
 0x1f3   : > { %2180 = vmatmul.mubr.f32.gmra.mxu1 %v5353_v15 }
 0x1f4   : > { %5362 = vtanh.f32 %v1825_v9 }
 0x1f5   : > { %v5355_v29 = vpop.eup %5354  ;;  %5364 = vtanh.f32 %v1823_v57 }
 0x1f6   : > { %v5357_v23 = vpop.eup %5356  ;;  %2184 = vmatprep.mubr.f32.mxu1 %v5355_v29 }
 0x1f7   : > { %v1828_v4 = vpop.f32.mrf.mxu0  ;;  %2185 = vmatmul.mubr.f32.gmra.mxu1 %v5357_v23 }
 0x1f8   : > { %v1829_v30 = vadd.f32 %v1828_v4, %v6888_v61 }
 0x1f9   : > { %v1830_v17 = vpop.f32.mrf.mxu0 }
 0x1fa   : > { %v1831_v20 = vadd.f32 %v1830_v17, %v6892_v54 }
 0x1fb   : > { %v1834_v32 = vpop.f32.mrf.mxu0 }
 0x1fc   : > { %5366 = vtanh.f32 %v1831_v20  ;;  %v1835_v34 = vadd.f32 %v1834_v32, %v6888_v61 }
 0x1fd   : > { %v5359_v33 = vpop.eup %5358  ;;  %5368 = vtanh.f32 %v1829_v30  ;;  %v1836_v36 = vpop.f32.mrf.mxu0 }
 0x1fe   : > { %v5361_v37 = vpop.eup %5360  ;;  %v1837_v10 = vadd.f32 %v1836_v36, %v6892_v54  ;;  %2189 = vmatprep.mubr.f32.mxu1 %v5359_v33 }
 0x1ff   : > { %2190 = vmatmul.mubr.f32.gmra.mxu1 %v5361_v37 }
 0x200   : > { %5370 = vtanh.f32 %v1837_v10 }
 0x201   : > { %v5363_v42 = vpop.eup %5362  ;;  %5372 = vtanh.f32 %v1835_v34 }
 0x202   : > { %v5365_v38 = vpop.eup %5364  ;;  %2194 = vmatprep.mubr.f32.mxu1 %v5363_v42 }
 0x203   : > { %v1840_v35 = vpop.f32.mrf.mxu0  ;;  %2195 = vmatmul.mubr.f32.gmra.mxu1 %v5365_v38 }
 0x204   : > { %v1841_v41 = vadd.f32 %v1840_v35, %v6888_v61 }
 0x205   : > { %v1842_v59 = vpop.f32.mrf.mxu0 }
 0x206   : > { %v1843_v39 = vadd.f32 %v1842_v59, %v6892_v54 }
 0x207   : > { %v1846_v43 = vpop.f32.mrf.mxu0 }
 0x208   : > { %5374 = vtanh.f32 %v1843_v39  ;;  %v1847_v45 = vadd.f32 %v1846_v43, %v6888_v61 }
 0x209   : > { %v5367_v51 = vpop.eup %5366  ;;  %5376 = vtanh.f32 %v1841_v41  ;;  %v1848_v46 = vpop.f32.mrf.mxu0 }
 0x20a   : > { %v5369_v47 = vpop.eup %5368  ;;  %v1849_v50 = vadd.f32 %v1848_v46, %v6892_v54  ;;  %2199 = vmatprep.mubr.f32.mxu1 %v5367_v51 }
 0x20b   : > { %2200 = vmatmul.mubr.f32.gmra.mxu1 %v5369_v47 }
 0x20c   : > { %5378 = vtanh.f32 %v1849_v50 }
 0x20d   : > { %v5371_v49 = vpop.eup %5370  ;;  %5380 = vtanh.f32 %v1847_v45 }
 0x20e   : > { %v5373_v44 = vpop.eup %5372  ;;  %2204 = vmatprep.mubr.f32.mxu1 %v5371_v49 }
 0x20f   : > { %v1852_v58 = vpop.f32.mrf.mxu0  ;;  %2205 = vmatmul.mubr.f32.gmra.mxu1 %v5373_v44 }
 0x210   : > { %v1853_v60 = vadd.f32 %v1852_v58, %v6888_v61 }
 0x211   : > { %v1854_v5 = vpop.f32.mrf.mxu0 }
 0x212   : > { %v1855_v56 = vadd.f32 %v1854_v5, %v6892_v54 }
 0x213   : > { %v1858_v25 = vpop.f32.mrf.mxu0 }
 0x214   : > { %5382 = vtanh.f32 %v1855_v56  ;;  %v1859_v1 = vadd.f32 %v1858_v25, %v6888_v61 }
 0x215   : > { %v5375_v63 = vpop.eup %5374  ;;  %5384 = vtanh.f32 %v1853_v60  ;;  %v1860_v19 = vpop.f32.mrf.mxu0 }
 0x216   : > { %v5377_v2 = vpop.eup %5376  ;;  %v1861_v14 = vadd.f32 %v1860_v19, %v6892_v54  ;;  %2209 = vmatprep.mubr.f32.mxu1 %v5375_v63 }
 0x217   : > { %2210 = vmatmul.mubr.f32.gmra.mxu1 %v5377_v2 }
 0x218   : > { %5386 = vtanh.f32 %v1861_v14 }
 0x219   : > { %v5379_v8 = vpop.eup %5378  ;;  %5388 = vtanh.f32 %v1859_v1 }
 0x21a   : > { %v5381_v21 = vpop.eup %5380  ;;  %2214 = vmatprep.mubr.f32.mxu1 %v5379_v8 }
 0x21b   : > { %v1864_v27 = vpop.f32.mrf.mxu0  ;;  %2215 = vmatmul.mubr.f32.gmra.mxu1 %v5381_v21 }
 0x21c   : > { %v1865_v0 = vadd.f32 %v1864_v27, %v6888_v61 }
 0x21d   : > { %v1866_v11 = vpop.f32.mrf.mxu0 }
 0x21e   : > { %v1867_v62 = vadd.f32 %v1866_v11, %v6892_v54 }
 0x21f   : > { %v1870_v12 = vpop.f32.mrf.mxu0 }
 0x220   : > { %5390 = vtanh.f32 %v1867_v62  ;;  %v1871_v6 = vadd.f32 %v1870_v12, %v6888_v61 }
 0x221   : > { %v5383_v7 = vpop.eup %5382  ;;  %5392 = vtanh.f32 %v1865_v0  ;;  %v1872_v13 = vpop.f32.mrf.mxu0 }
 0x222   : > { %v5385_v48 = vpop.eup %5384  ;;  %v1873_v16 = vadd.f32 %v1872_v13, %v6892_v54  ;;  %2219 = vmatprep.mubr.f32.mxu1 %v5383_v7 }
 0x223   : > { %2220 = vmatmul.mubr.f32.gmra.mxu1 %v5385_v48 }
 0x224   : > { %5394 = vtanh.f32 %v1873_v16 }
 0x225   : > { %v5387_v28 = vpop.eup %5386  ;;  %5396 = vtanh.f32 %v1871_v6 }
 0x226   : > { %v5389_v18 = vpop.eup %5388  ;;  %2224 = vmatprep.mubr.f32.mxu1 %v5387_v28 }
 0x227   : > { %v1876_v22 = vpop.f32.mrf.mxu0  ;;  %2225 = vmatmul.mubr.f32.gmra.mxu1 %v5389_v18 }
 0x228   : > { %v1877_v3 = vadd.f32 %v1876_v22, %v6888_v61 }
 0x229   : > { %v1878_v26 = vpop.f32.mrf.mxu0 }
 0x22a   : > { %v1879_v52 = vadd.f32 %v1878_v26, %v6892_v54 }
 0x22b   : > { %v1882_v57 = vpop.f32.mrf.mxu0 }
 0x22c   : > { %5398 = vtanh.f32 %v1879_v52  ;;  %v1883_v15 = vadd.f32 %v1882_v57, %v6888_v61 }
 0x22d   : > { %v5391_v40 = vpop.eup %5390  ;;  %5400 = vtanh.f32 %v1877_v3  ;;  %v1884_v9 = vpop.f32.mrf.mxu0 }
 0x22e   : > { %v5393_v29 = vpop.eup %5392  ;;  %v1885_v23 = vadd.f32 %v1884_v9, %v6892_v54  ;;  %2229 = vmatprep.mubr.f32.mxu1 %v5391_v40 }
 0x22f   : > { %2230 = vmatmul.mubr.f32.gmra.mxu1 %v5393_v29 }
 0x230   : > { %5402 = vtanh.f32 %v1885_v23 }
 0x231   : > { %v5395_v4 = vpop.eup %5394  ;;  %5404 = vtanh.f32 %v1883_v15 }
 0x232   : > { %v5397_v30 = vpop.eup %5396  ;;  %2234 = vmatprep.mubr.f32.mxu1 %v5395_v4 }
 0x233   : > { %v1888_v17 = vpop.f32.mrf.mxu0  ;;  %2235 = vmatmul.mubr.f32.gmra.mxu1 %v5397_v30 }
 0x234   : > { %v1889_v20 = vadd.f32 %v1888_v17, %v6888_v61 }
 0x235   : > { %v1890_v32 = vpop.f32.mrf.mxu0 }
 0x236   : > { %v1891_v33 = vadd.f32 %v1890_v32, %v6892_v54 }
 0x237   : > { %v1894_v34 = vpop.f32.mrf.mxu0 }
 0x238   : > { %5406 = vtanh.f32 %v1891_v33  ;;  %v1895_v37 = vadd.f32 %v1894_v34, %v6888_v61 }
 0x239   : > { %v5399_v36 = vpop.eup %5398  ;;  %5408 = vtanh.f32 %v1889_v20  ;;  %v1896_v10 = vpop.f32.mrf.mxu0 }
 0x23a   : > { %v5401_v42 = vpop.eup %5400  ;;  %v1897_v38 = vadd.f32 %v1896_v10, %v6892_v54  ;;  %2239 = vmatprep.mubr.f32.mxu1 %v5399_v36 }
 0x23b   : > { %2240 = vmatmul.mubr.f32.gmra.mxu1 %v5401_v42 }
 0x23c   : > { %5410 = vtanh.f32 %v1897_v38 }
 0x23d   : > { %v5403_v35 = vpop.eup %5402  ;;  %5412 = vtanh.f32 %v1895_v37 }
 0x23e   : > { %v5405_v41 = vpop.eup %5404  ;;  %2244 = vmatprep.mubr.f32.mxu1 %v5403_v35 }
 0x23f   : > { %v1900_v59 = vpop.f32.mrf.mxu0  ;;  %2245 = vmatmul.mubr.f32.gmra.mxu1 %v5405_v41 }
 0x240   : > { %v1901_v39 = vadd.f32 %v1900_v59, %v6888_v61 }
 0x241   : > { %v1902_v43 = vpop.f32.mrf.mxu0 }
 0x242   : > { %v1903_v51 = vadd.f32 %v1902_v43, %v6892_v54 }
 0x243   : > { %v1906_v45 = vpop.f32.mrf.mxu0 }
 0x244   : > { %5414 = vtanh.f32 %v1903_v51  ;;  %v1907_v47 = vadd.f32 %v1906_v45, %v6888_v61 }
 0x245   : > { %v5407_v46 = vpop.eup %5406  ;;  %5416 = vtanh.f32 %v1901_v39  ;;  %v1908_v50 = vpop.f32.mrf.mxu0 }
 0x246   : > { %v5409_v49 = vpop.eup %5408  ;;  %v1909_v44 = vadd.f32 %v1908_v50, %v6892_v54  ;;  %2249 = vmatprep.mubr.f32.mxu1 %v5407_v46 }
 0x247   : > { %2250 = vmatmul.mubr.f32.gmra.mxu1 %v5409_v49 }
 0x248   : > { %5418 = vtanh.f32 %v1909_v44 }
 0x249   : > { %v5411_v58 = vpop.eup %5410  ;;  %5420 = vtanh.f32 %v1907_v47 }
 0x24a   : > { %v5413_v60 = vpop.eup %5412  ;;  %2254 = vmatprep.mubr.f32.mxu1 %v5411_v58 }
 0x24b   : > { %v1912_v5 = vpop.f32.mrf.mxu0  ;;  %2255 = vmatmul.mubr.f32.gmra.mxu1 %v5413_v60 }
 0x24c   : > { %v1913_v56 = vadd.f32 %v1912_v5, %v6888_v61 }
 0x24d   : > { %v1914_v25 = vpop.f32.mrf.mxu0 }
 0x24e   : > { %v1915_v63 = vadd.f32 %v1914_v25, %v6892_v54 }
 0x24f   : > { %v1918_v1 = vpop.f32.mrf.mxu0 }
 0x250   : > { %5422 = vtanh.f32 %v1915_v63  ;;  %v1919_v2 = vadd.f32 %v1918_v1, %v6888_v61 }
 0x251   : > { %v5415_v19 = vpop.eup %5414  ;;  %5424 = vtanh.f32 %v1913_v56  ;;  %v1920_v14 = vpop.f32.mrf.mxu0 }
 0x252   : > { %v5417_v8 = vpop.eup %5416  ;;  %v1921_v21 = vadd.f32 %v1920_v14, %v6892_v54  ;;  %2259 = vmatprep.mubr.f32.mxu1 %v5415_v19 }
 0x253   : > { %2260 = vmatmul.mubr.f32.gmra.mxu1 %v5417_v8 }
 0x254   : > { %5426 = vtanh.f32 %v1921_v21 }
 0x255   : > { %v5419_v27 = vpop.eup %5418  ;;  %5428 = vtanh.f32 %v1919_v2 }
 0x256   : > { %v5421_v0 = vpop.eup %5420  ;;  %2264 = vmatprep.mubr.f32.mxu1 %v5419_v27 }
 0x257   : > { %v1924_v11 = vpop.f32.mrf.mxu0  ;;  %2265 = vmatmul.mubr.f32.gmra.mxu1 %v5421_v0 }
 0x258   : > { %v1925_v62 = vadd.f32 %v1924_v11, %v6888_v61 }
 0x259   : > { %v1926_v12 = vpop.f32.mrf.mxu0 }
 0x25a   : > { %v1927_v7 = vadd.f32 %v1926_v12, %v6892_v54 }
 0x25b   : > { %v1930_v6 = vpop.f32.mrf.mxu0 }
 0x25c   : > { %5430 = vtanh.f32 %v1927_v7  ;;  %v1931_v48 = vadd.f32 %v1930_v6, %v6888_v61 }
 0x25d   : > { %v5423_v13 = vpop.eup %5422  ;;  %5432 = vtanh.f32 %v1925_v62  ;;  %v1932_v16 = vpop.f32.mrf.mxu0 }
 0x25e   : > { %v5425_v28 = vpop.eup %5424  ;;  %v1933_v18 = vadd.f32 %v1932_v16, %v6892_v54  ;;  %2269 = vmatprep.mubr.f32.mxu1 %v5423_v13 }
 0x25f   : > { %2270 = vmatmul.mubr.f32.gmra.mxu1 %v5425_v28 }
 0x260   : > { %5434 = vtanh.f32 %v1933_v18 }
 0x261   : > { %v5427_v22 = vpop.eup %5426  ;;  %5436 = vtanh.f32 %v1931_v48 }
 0x262   : > { %v5429_v3 = vpop.eup %5428  ;;  %2274 = vmatprep.mubr.f32.mxu1 %v5427_v22 }
 0x263   : > { %v1936_v26 = vpop.f32.mrf.mxu0  ;;  %2275 = vmatmul.mubr.f32.gmra.mxu1 %v5429_v3 }
 0x264   : > { %v1937_v52 = vadd.f32 %v1936_v26, %v6888_v61 }
 0x265   : > { %v1938_v57 = vpop.f32.mrf.mxu0 }
 0x266   : > { %v1939_v40 = vadd.f32 %v1938_v57, %v6892_v54 }
 0x267   : > { %v1942_v15 = vpop.f32.mrf.mxu0 }
 0x268   : > { %5438 = vtanh.f32 %v1939_v40  ;;  %v1943_v29 = vadd.f32 %v1942_v15, %v6888_v61 }
 0x269   : > { %v5431_v9 = vpop.eup %5430  ;;  %5440 = vtanh.f32 %v1937_v52  ;;  %v1944_v23 = vpop.f32.mrf.mxu0 }
 0x26a   : > { %v5433_v4 = vpop.eup %5432  ;;  %v1945_v30 = vadd.f32 %v1944_v23, %v6892_v54  ;;  %2279 = vmatprep.mubr.f32.mxu1 %v5431_v9 }
 0x26b   : > { %2280 = vmatmul.mubr.f32.gmra.mxu1 %v5433_v4 }
 0x26c   : > { %5442 = vtanh.f32 %v1945_v30 }
 0x26d   : > { %v5435_v17 = vpop.eup %5434  ;;  %5444 = vtanh.f32 %v1943_v29 }
 0x26e   : > { %v5437_v20 = vpop.eup %5436  ;;  %2284 = vmatprep.mubr.f32.mxu1 %v5435_v17  ;;  %v2321_v17 = vld [vmem:[#allocation5 + $0x8] sm:$0xff] }
 0x26f   : > { %v1948_v32 = vpop.f32.mrf.mxu0  ;;  %2285 = vmatmul.mubr.f32.gmra.mxu1 %v5437_v20  ;;  %2487 = vmatprep.mubr.f32.mxu0 %v2321_v17  ;;  %v2333_v17 = vld [vmem:[#allocation5 + $0x68] sm:$0xff] }
 0x270   : > { %v1949_v33 = vadd.f32 %v1948_v32, %v6888_v61 }
 0x271   : > { %v1950_v34 = vpop.f32.mrf.mxu0 }
 0x272   : > { %v1951_v36 = vadd.f32 %v1950_v34, %v6892_v54 }
 0x273   : > { %v1954_v37 = vpop.f32.mrf.mxu0 }
 0x274   : > { %5446 = vtanh.f32 %v1951_v36  ;;  %v1955_v42 = vadd.f32 %v1954_v37, %v6888_v61 }
 0x275   : > { %v5439_v10 = vpop.eup %5438  ;;  %5448 = vtanh.f32 %v1949_v33  ;;  %v1956_v38 = vpop.f32.mrf.mxu0 }
 0x276   : > { %v5441_v35 = vpop.eup %5440  ;;  %v1957_v41 = vadd.f32 %v1956_v38, %v6892_v54  ;;  %2289 = vmatprep.mubr.f32.mxu1 %v5439_v10 }
 0x277   : > { %2290 = vmatmul.mubr.f32.gmra.mxu1 %v5441_v35 }
 0x278   : > { %5450 = vtanh.f32 %v1957_v41 }
 0x279   : > { %v5443_v59 = vpop.eup %5442  ;;  %5452 = vtanh.f32 %v1955_v42 }
 0x27a   : > { %v5445_v39 = vpop.eup %5444  ;;  %2294 = vmatprep.mubr.f32.mxu1 %v5443_v59 }
 0x27b   : > { %v1960_v43 = vpop.f32.mrf.mxu0  ;;  %2295 = vmatmul.mubr.f32.gmra.mxu1 %v5445_v39 }
 0x27c   : > { %v1961_v51 = vadd.f32 %v1960_v43, %v6888_v61 }
 0x27d   : > { %v1962_v45 = vpop.f32.mrf.mxu0 }
 0x27e   : > { %v1963_v46 = vadd.f32 %v1962_v45, %v6892_v54 }
 0x27f   : > { %v1966_v47 = vpop.f32.mrf.mxu0 }
 0x280   : > { %5454 = vtanh.f32 %v1963_v46  ;;  %v1967_v49 = vadd.f32 %v1966_v47, %v6888_v61 }
 0x281   : > { %v5447_v50 = vpop.eup %5446  ;;  %5456 = vtanh.f32 %v1961_v51  ;;  %v1968_v44 = vpop.f32.mrf.mxu0 }
 0x282   : > { %v5449_v58 = vpop.eup %5448  ;;  %v1969_v60 = vadd.f32 %v1968_v44, %v6892_v54  ;;  %2299 = vmatprep.mubr.f32.mxu1 %v5447_v50 }
 0x283   : > { %2300 = vmatmul.mubr.f32.gmra.mxu1 %v5449_v58 }
 0x284   : > { %5458 = vtanh.f32 %v1969_v60 }
 0x285   : > { %v5451_v5 = vpop.eup %5450  ;;  %5460 = vtanh.f32 %v1967_v49  ;;  %v6982_v56 = vpop.f32.mrf.mxu1 }
 0x286   : > { %v5453_v25 = vpop.eup %5452  ;;  %2304 = vmatprep.mubr.f32.mxu1 %v5451_v5 }
 0x287   : > { %v2143_v63 = vpop.f32.mrf.mxu1  ;;  %2305 = vmatmul.mubr.f32.gmra.mxu1 %v5453_v25 }
 0x289   : > { %v6984_v1 = vpop.f32.mrf.mxu1 }
 0x28b   : > { %v2148_v19 = vpop.f32.mrf.mxu1 }
 0x28d   : > { %v5455_v2 = vpop.eup %5454 }
 0x28e   : > { %v5457_v61 = vpop.eup %5456  ;;  %2309 = vmatprep.mubr.f32.mxu1 %v5455_v2 }
 0x28f   : > { %v6986_v14 = vpop.f32.mrf.mxu1  ;;  %2310 = vmatmul.mubr.f32.gmra.mxu1 %v5457_v61 }
 0x291   : > { %v5459_v54 = vpop.eup %5458  ;;  %v2153_v8 = vpop.f32.mrf.mxu1 }
 0x292   : > { %v5461_v21 = vpop.eup %5460  ;;  %2314 = vmatprep.mubr.f32.mxu1 %v5459_v54 }
 0x293   : > { %v2156_v27 = vpop.f32.mrf.mxu1  ;;  %2315 = vmatmul.mubr.f32.gmra.mxu1 %v5461_v21 }
 0x294   : > { %4874 = vmatprep.mubr.msk.f32.mxu1 %vm5764_vm9, %v8331_v24 }
 0x295   : > { %v2158_v0 = vpop.f32.mrf.mxu1 }
 0x29b   : > { %v2161_v11 = vpop.f32.mrf.mxu1 }
 0x29d   : > { %v2163_v62 = vpop.f32.mrf.mxu1 }
 0x29f   : > { %v2166_v12 = vpop.f32.mrf.mxu1 }
 0x2a1   : > { %v2168_v7 = vpop.f32.mrf.mxu1 }
 0x2a7   : > { %v2171_v6 = vpop.f32.mrf.mxu1 }
 0x2a9   : > { %v2173_v13 = vpop.f32.mrf.mxu1 }
 0x2aa   : > { %v2320_v13 = vld [vmem:[#allocation5] sm:$0xff] }
 0x2ab   : > { %v2176_v48 = vpop.f32.mrf.mxu1 }
 0x2ad   : > { %v2178_v16 = vpop.f32.mrf.mxu1 }
 0x2ae   : > { %v2324_v16 = vld [vmem:[#allocation5 + $0x20] sm:$0xff] }
 0x2b3   : > { %v2181_v28 = vpop.f32.mrf.mxu1 }
 0x2b5   : > { %v2183_v18 = vpop.f32.mrf.mxu1 }
 0x2b6   : > { %v2966_v18 = vld [vmem:[%s8308_s5 + $0xf0] sm:$0xff] }
 0x2b7   : > { %v2186_v22 = vpop.f32.mrf.mxu1 }
 0x2b9   : > { %v2188_v3 = vpop.f32.mrf.mxu1 }
 0x2ba   : > { %v2325_v3 = vld [vmem:[#allocation5 + $0x28] sm:$0xff] }
 0x2bf   : > { %v2191_v26 = vpop.f32.mrf.mxu1 }
 0x2c1   : > { %v2193_v52 = vpop.f32.mrf.mxu1 }
 0x2c2   : > { %v2965_v52 = vld [vmem:[%s8308_s5 + $0xe8] sm:$0xff] }
 0x2c3   : > { %v2196_v57 = vpop.f32.mrf.mxu1 }
 0x2c5   : > { %v2198_v40 = vpop.f32.mrf.mxu1 }
 0x2c6   : > { %v2326_v40 = vld [vmem:[#allocation5 + $0x30] sm:$0xff] }
 0x2cb   : > { %v2201_v15 = vpop.f32.mrf.mxu1 }
 0x2cd   : > { %v2203_v9 = vpop.f32.mrf.mxu1 }
 0x2ce   : > { %v2330_v9 = vld [vmem:[#allocation5 + $0x50] sm:$0xff] }
 0x2cf   : > { %v2206_v29 = vpop.f32.mrf.mxu1 }
 0x2d1   : > { %v2208_v23 = vpop.f32.mrf.mxu1 }
 0x2d2   : > { %v2962_v23 = vld [vmem:[%s8308_s5 + $0xd0] sm:$0xff] }
 0x2d7   : > { %v2211_v4 = vpop.f32.mrf.mxu1 }
 0x2d9   : > { %v2213_v30 = vpop.f32.mrf.mxu1 }
 0x2da   : > { %v2331_v30 = vld [vmem:[#allocation5 + $0x58] sm:$0xff] }
 0x2db   : > { %v2216_v20 = vpop.f32.mrf.mxu1 }
 0x2dc   : > { %2424 = vmatpush1.msra.mxu0 %v2216_v20  ;;  %v3031_v20 = vld [vmem:[%s8308_s5 + $0x2f8] sm:$0xff] }
 0x2dd   : > { %v2218_v32 = vpop.f32.mrf.mxu1  ;;  %2425 = vmatprep.subr.mxu0 %v8331_v24 }
 0x2de   : > { %2426 = vmatpush1.msra.mxu0 %v2211_v4  ;;  %v2329_v4 = vld [vmem:[#allocation5 + $0x48] sm:$0xff]  ;;  %v2961_v32 = vld [vmem:[%s8308_s5 + $0xc8] sm:$0xff] }
 0x2df   : > { %2427 = vmatprep.subr.mxu0 %v8331_v24 }
 0x2e0   : > { %2428 = vmatpush1.msra.mxu0 %v2206_v29  ;;  %v2963_v29 = vld [vmem:[%s8308_s5 + $0xd8] sm:$0xff] }
 0x2e1   : > { %2429 = vmatprep.subr.mxu0 %v8331_v24 }
 0x2e2   : > { %2430 = vmatpush1.msra.mxu0 %v2201_v15  ;;  %v2328_v15 = vld [vmem:[#allocation5 + $0x40] sm:$0xff] }
 0x2e3   : > { %v6993_v33 = vpop.f32.mrf.mxu1  ;;  %2431 = vmatprep.subr.mxu0 %v8331_v24 }
 0x2e4   : > { %2432 = vmatpush1.msra.mxu0 %v2196_v57  ;;  %v2964_v57 = vld [vmem:[%s8308_s5 + $0xe0] sm:$0xff] }
 0x2e5   : > { %v2223_v34 = vpop.f32.mrf.mxu1  ;;  %2433 = vmatprep.subr.mxu0 %v8331_v24 }
 0x2e6   : > { %2434 = vmatpush1.msra.mxu0 %v2191_v26  ;;  %v2327_v26 = vld [vmem:[#allocation5 + $0x38] sm:$0xff]  ;;  %v2960_v34 = vld [vmem:[%s8308_s5 + $0xc0] sm:$0xff] }
 0x2e7   : > { %v6997_v36 = vpop.f32.mrf.mxu1  ;;  %2435 = vmatprep.subr.mxu0 %v8331_v24 }
 0x2e8   : > { %2436 = vmatpush1.msra.mxu0 %v2186_v22  ;;  %v2323_v22 = vld [vmem:[#allocation5 + $0x18] sm:$0xff] }
 0x2e9   : > { %v2228_v37 = vpop.f32.mrf.mxu1  ;;  %2437 = vmatprep.subr.mxu0 %v8331_v24 }
 0x2ea   : > { %2438 = vmatpush1.msra.mxu0 %v2181_v28  ;;  %v2967_v28 = vld [vmem:[%s8308_s5 + $0xf8] sm:$0xff]  ;;  %v2332_v37 = vld [vmem:[#allocation5 + $0x60] sm:$0xff] }
 0x2eb   : > { %2439 = vmatprep.subr.mxu0 %v8331_v24 }
 0x2ec   : > { %2440 = vmatpush1.msra.mxu0 %v2176_v48  ;;  %v2322_v48 = vld [vmem:[#allocation5 + $0x10] sm:$0xff] }
 0x2ed   : > { %2441 = vmatprep.subr.mxu0 %v8331_v24 }
 0x2ee   : > { %2442 = vmatpush1.msra.mxu0 %v2171_v6 }
 0x2ef   : > { %v7003_v10 = vpop.f32.mrf.mxu1  ;;  %2443 = vmatprep.subr.mxu0 %v8331_v24 }
 0x2f0   : > { %2444 = vmatpush1.msra.mxu0 %v2166_v12 }
 0x2f1   : > { %v2233_v42 = vpop.f32.mrf.mxu1  ;;  %2445 = vmatprep.subr.mxu0 %v8331_v24 }
 0x2f2   : > { %2446 = vmatpush1.msra.mxu0 %v2161_v11  ;;  %v2336_v42 = vld [vmem:[#allocation5 + $0x80] sm:$0xff] }
 0x2f3   : > { %v7007_v38 = vpop.f32.mrf.mxu1  ;;  %2447 = vmatprep.subr.mxu0 %v8331_v24 }
 0x2f4   : > { %2448 = vmatpush1.msra.mxu0 %v2156_v27 }
 0x2f5   : > { %v2238_v35 = vpop.f32.mrf.mxu1  ;;  %2449 = vmatprep.subr.mxu0 %v8331_v24 }
 0x2f6   : > { %2450 = vmatpush1.msra.mxu0 %v6986_v14  ;;  %v3028_v35 = vld [vmem:[%s8308_s5 + $0x2e0] sm:$0xff] }
 0x2f7   : > { %2451 = vmatprep.subr.mxu0 %v8331_v24 }
 0x2f8   : > { %2452 = vmatpush1.msra.mxu0 %v6984_v1 }
 0x2f9   : > { %2453 = vmatprep.subr.mxu0 %v8331_v24 }
 0x2fa   : > { %2454 = vmatpush1.msra.mxu0 %v6982_v56 }
 0x2fb   : > { %v2241_v41 = vpop.f32.mrf.mxu1  ;;  %2455 = vmatprep.subr.mxu0 %v8331_v24 }
 0x2fd   : > { %v2243_v59 = vpop.f32.mrf.mxu1 }
 0x2fe   : > { %v3027_v59 = vld [vmem:[%s8308_s5 + $0x2d8] sm:$0xff] }
 0x2ff   : > { %v2246_v39 = vpop.f32.mrf.mxu1 }
 0x301   : > { %v2248_v43 = vpop.f32.mrf.mxu1 }
 0x302   : > { %v2337_v43 = vld [vmem:[#allocation5 + $0x88] sm:$0xff] }
 0x307   : > { %v2251_v51 = vpop.f32.mrf.mxu1 }
 0x309   : > { %v2253_v45 = vpop.f32.mrf.mxu1 }
 0x30a   : > { %v2957_v45 = vld [vmem:[%s8308_s5 + $0xa8] sm:$0xff] }
 0x30b   : > { %v2256_v46 = vpop.f32.mrf.mxu1 }
 0x30d   : > { %v2258_v47 = vpop.f32.mrf.mxu1 }
 0x30e   : > { %v2956_v47 = vld [vmem:[%s8308_s5 + $0xa0] sm:$0xff] }
 0x313   : > { %v2261_v50 = vpop.f32.mrf.mxu1 }
 0x315   : > { %v2263_v49 = vpop.f32.mrf.mxu1 }
 0x316   : > { %v2338_v49 = vld [vmem:[#allocation5 + $0x90] sm:$0xff] }
 0x317   : > { %v2266_v44 = vpop.f32.mrf.mxu1 }
 0x319   : > { %v2268_v58 = vpop.f32.mrf.mxu1 }
 0x31a   : > { %v2342_v58 = vld [vmem:[#allocation5 + $0xb0] sm:$0xff] }
 0x31f   : > { %v2271_v60 = vpop.f32.mrf.mxu1 }
 0x321   : > { %v2273_v5 = vpop.f32.mrf.mxu1 }
 0x322   : > { %v3024_v5 = vld [vmem:[%s8308_s5 + $0x2c0] sm:$0xff] }
 0x323   : > { %v2276_v25 = vpop.f32.mrf.mxu1 }
 0x325   : > { %v2278_v63 = vpop.f32.mrf.mxu1 }
 0x326   : > { %v3023_v63 = vld [vmem:[%s8308_s5 + $0x2b8] sm:$0xff] }
 0x32b   : > { %v2281_v1 = vpop.f32.mrf.mxu1 }
 0x32d   : > { %v2283_v56 = vpop.f32.mrf.mxu1 }
 0x32e   : > { %v2343_v56 = vld [vmem:[#allocation5 + $0xb8] sm:$0xff] }
 0x32f   : > { %v2286_v19 = vpop.f32.mrf.mxu1 }
 0x331   : > { %v2288_v2 = vpop.f32.mrf.mxu1 }
 0x332   : > { %v2953_v2 = vld [vmem:[%s8308_s5 + $0x88] sm:$0xff] }
 0x337   : > { %v2291_v61 = vpop.f32.mrf.mxu1 }
 0x339   : > { %v2293_v14 = vpop.f32.mrf.mxu1 }
 0x33a   : > { %v2952_v14 = vld [vmem:[%s8308_s5 + $0x80] sm:$0xff] }
 0x33b   : > { %v2296_v54 = vpop.f32.mrf.mxu1 }
 0x33c   : > { %2456 = vmatpush2.msra.mxu0 %v2296_v54  ;;  %v3021_v54 = vld [vmem:[%s8308_s5 + $0x2a8] sm:$0xff] }
 0x33d   : > { %v2298_v8 = vpop.f32.mrf.mxu1  ;;  %2457 = vmatprep.subr.mxu0 %v8331_v24 }
 0x33e   : > { %2458 = vmatpush2.msra.mxu0 %v2291_v61  ;;  %v3022_v61 = vld [vmem:[%s8308_s5 + $0x2b0] sm:$0xff] }
 0x33f   : > { %2459 = vmatprep.subr.mxu0 %v8331_v24  ;;  %v2344_v8 = vld [vmem:[#allocation5 + $0xc0] sm:$0xff] }
 0x340   : > { %2460 = vmatpush2.msra.mxu0 %v2286_v19  ;;  %v2345_v19 = vld [vmem:[#allocation5 + $0xc8] sm:$0xff] }
 0x341   : > { %2461 = vmatprep.subr.mxu0 %v8331_v24 }
 0x342   : > { %2462 = vmatpush2.msra.mxu0 %v2281_v1  ;;  %v2341_v1 = vld [vmem:[#allocation5 + $0xa8] sm:$0xff] }
 0x343   : > { %v2301_v21 = vpop.f32.mrf.mxu1  ;;  %2463 = vmatprep.subr.mxu0 %v8331_v24 }
 0x344   : > { %2464 = vmatpush2.msra.mxu0 %v2276_v25  ;;  %v2954_v25 = vld [vmem:[%s8308_s5 + $0x90] sm:$0xff] }
 0x345   : > { %v2303_v27 = vpop.f32.mrf.mxu1  ;;  %2465 = vmatprep.subr.mxu0 %v8331_v24 }
 0x346   : > { %2466 = vmatpush2.msra.mxu0 %v2271_v60  ;;  %v2955_v60 = vld [vmem:[%s8308_s5 + $0x98] sm:$0xff]  ;;  %v2348_v27 = vld [vmem:[#allocation5 + $0xe0] sm:$0xff] }
 0x347   : > { %v2306_v0 = vpop.f32.mrf.mxu1  ;;  %2467 = vmatprep.subr.mxu0 %v8331_v24 }
 0x348   : > { %2468 = vmatpush2.msra.mxu0 %v2266_v44  ;;  %v2340_v44 = vld [vmem:[#allocation5 + $0xa0] sm:$0xff] }
 0x349   : > { %v2308_v11 = vpop.f32.mrf.mxu1  ;;  %2469 = vmatprep.subr.mxu0 %v8331_v24 }
 0x34a   : > { %2470 = vmatpush2.msra.mxu0 %v2261_v50  ;;  %v3025_v50 = vld [vmem:[%s8308_s5 + $0x2c8] sm:$0xff]  ;;  %v3020_v11 = vld [vmem:[%s8308_s5 + $0x2a0] sm:$0xff] }
 0x34b   : > { %2471 = vmatprep.subr.mxu0 %v8331_v24 }
 0x34c   : > { %2472 = vmatpush2.msra.mxu0 %v2256_v46  ;;  %v3026_v46 = vld [vmem:[%s8308_s5 + $0x2d0] sm:$0xff] }
 0x34d   : > { %2473 = vmatprep.subr.mxu0 %v8331_v24 }
 0x34e   : > { %2474 = vmatpush2.msra.mxu0 %v2251_v51  ;;  %v2339_v51 = vld [vmem:[#allocation5 + $0x98] sm:$0xff] }
 0x34f   : > { %v2311_v62 = vpop.f32.mrf.mxu1  ;;  %2475 = vmatprep.subr.mxu0 %v8331_v24 }
 0x350   : > { %2476 = vmatpush2.msra.mxu0 %v2246_v39  ;;  %v2335_v39 = vld [vmem:[#allocation5 + $0x78] sm:$0xff] }
 0x351   : > { %v2313_v12 = vpop.f32.mrf.mxu1  ;;  %2477 = vmatprep.subr.mxu0 %v8331_v24 }
 0x352   : > { %2478 = vmatpush2.msra.mxu0 %v2241_v41  ;;  %v2958_v41 = vld [vmem:[%s8308_s5 + $0xb0] sm:$0xff]  ;;  %v3019_v12 = vld [vmem:[%s8308_s5 + $0x298] sm:$0xff] }
 0x353   : > { %v2316_v7 = vpop.f32.mrf.mxu1  ;;  %2479 = vmatprep.subr.mxu0 %v8331_v24 }
 0x354   : > { %2480 = vmatpush2.msra.mxu0 %v7007_v38  ;;  %4867 = vmatpush3.msra.mxu1 %v2316_v7  ;;  %v2959_v38 = vld [vmem:[%s8308_s5 + $0xb8] sm:$0xff]  ;;  %v2347_v7 = vld [vmem:[#allocation5 + $0xd8] sm:$0xff] }
 0x355   : > { %v2318_v6 = vpop.f32.mrf.mxu1  ;;  %2481 = vmatprep.subr.mxu0 %v8331_v24  ;;  %4868 = vmatprep.subr.mxu1 %v8331_v24 }
 0x356   : > { %2482 = vmatpush2.msra.mxu0 %v7003_v10  ;;  %4869 = vmatpush3.msra.mxu1 %v2311_v62  ;;  %v2334_v10 = vld [vmem:[#allocation5 + $0x70] sm:$0xff]  ;;  %v2950_v62 = vld [vmem:[%s8308_s5 + $0x70] sm:$0xff]  ;;  %v2349_v6 = vld [vmem:[#allocation5 + $0xe8] sm:$0xff] }
 0x357   : > { %2483 = vmatprep.subr.mxu0 %v8331_v24  ;;  %4870 = vmatprep.subr.mxu1 %v8331_v24 }
 0x358   : > { %2484 = vmatpush2.msra.mxu0 %v6997_v36  ;;  %4871 = vmatpush3.msra.mxu1 %v2306_v0  ;;  %v3029_v36 = vld [vmem:[%s8308_s5 + $0x2e8] sm:$0xff]  ;;  %v2951_v0 = vld [vmem:[%s8308_s5 + $0x78] sm:$0xff] }
 0x359   : > { %2485 = vmatprep.subr.mxu0 %v8331_v24  ;;  %4872 = vmatprep.subr.mxu1 %v8331_v24 }
 0x35a   : > { %2486 = vmatpush2.msra.mxu0 %v6993_v33  ;;  %4873 = vmatpush3.msra.mxu1 %v2301_v21  ;;  %v3030_v33 = vld [vmem:[%s8308_s5 + $0x2f0] sm:$0xff]  ;;  %v2346_v21 = vld [vmem:[#allocation5 + $0xd0] sm:$0xff] }
 0x35b   : > { %2488 = vmatmul.mubr.f32.vlgmr.msra.gmra.mxu0 %v2320_v13  ;;  %4875 = vmatmul.mubr.msk.f32.vlgmr.msra.gmra.mxu1 %vm2371_vm10, %v2322_v48  ;;  %v2351_v13 = vld [vmem:[#allocation5 + $0xf8] sm:$0xff] }
 0x35c   : > { %2492 = vmatprep.mubr.f32.mxu0 %v2324_v16  ;;  %4877 = vmatprep.mubr.msk.f32.mxu1 %vm5764_vm9, %v8331_v24  ;;  %v2949_v48 = vld [vmem:[%s8308_s5 + $0x68] sm:$0xff]  ;;  %v3018_v16 = vld [vmem:[%s8308_s5 + $0x290] sm:$0xff] }
 0x35d   : > { %3108 = vmatprep.subr.mxu0 %v2967_v28  ;;  %3269 = vmatprep.subr.mxu1 %v3031_v20  ;;  %v2948_v28 = vld [vmem:[%s8308_s5 + $0x60] sm:$0xff]  ;;  %v3013_v20 = vld [vmem:[%s8308_s5 + $0x268] sm:$0xff] }
 0x35e   : > { %3109 = vmatpush1.msra.mxu0 %v2966_v18  ;;  %3270 = vmatpush1.msra.mxu1 %v3030_v33  ;;  %v3017_v18 = vld [vmem:[%s8308_s5 + $0x288] sm:$0xff]  ;;  %v2358_v33 = vld [vmem:[#allocation5 + $0x130] sm:$0xff] }
 0x35f   : > { %2493 = vmatmul.mubr.f32.gmra.mxu0 %v2323_v22  ;;  %4878 = vmatmul.mubr.msk.f32.gmra.mxu1 %vm2371_vm10, %v2325_v3  ;;  %v2350_v22 = vld [vmem:[#allocation5 + $0xf0] sm:$0xff]  ;;  %v2352_v3 = vld [vmem:[#allocation5 + $0x100] sm:$0xff] }
 0x360   : > { %2497 = vmatprep.mubr.f32.mxu0 %v2327_v26  ;;  %4880 = vmatprep.mubr.msk.f32.mxu1 %vm5764_vm9, %v8331_v24  ;;  %v2354_v26 = vld [vmem:[#allocation5 + $0x110] sm:$0xff] }
 0x361   : > { %3110 = vmatprep.subr.mxu0 %v2965_v52  ;;  %3271 = vmatprep.subr.mxu1 %v3029_v36  ;;  %v2947_v52 = vld [vmem:[%s8308_s5 + $0x58] sm:$0xff] }
 0x362   : > { %3111 = vmatpush1.msra.mxu0 %v2964_v57  ;;  %3272 = vmatpush1.msra.mxu1 %v3028_v35  ;;  %v3016_v57 = vld [vmem:[%s8308_s5 + $0x280] sm:$0xff]  ;;  %v2943_v36 = vld [vmem:[%s8308_s5 + $0x38] sm:$0xff] }
 0x363   : > { %2498 = vmatmul.mubr.f32.gmra.mxu0 %v2326_v40  ;;  %4881 = vmatmul.mubr.msk.f32.gmra.mxu1 %vm2371_vm10, %v2328_v15  ;;  %v2946_v40 = vld [vmem:[%s8308_s5 + $0x50] sm:$0xff]  ;;  %v3015_v15 = vld [vmem:[%s8308_s5 + $0x278] sm:$0xff] }
 0x364   : > { %2502 = vmatprep.mubr.f32.mxu0 %v2330_v9  ;;  %4883 = vmatprep.mubr.msk.f32.mxu1 %vm5764_vm9, %v8331_v24  ;;  %v2353_v9 = vld [vmem:[#allocation5 + $0x108] sm:$0xff] }
 0x365   : > { %3112 = vmatprep.subr.mxu0 %v2963_v29  ;;  %3273 = vmatprep.subr.mxu1 %v3027_v59  ;;  %v2355_v29 = vld [vmem:[#allocation5 + $0x118] sm:$0xff]  ;;  %v2361_v35 = vld [vmem:[#allocation5 + $0x148] sm:$0xff] }
 0x366   : > { %3113 = vmatpush1.msra.mxu0 %v2962_v23  ;;  %3274 = vmatpush1.msra.mxu1 %v3026_v46  ;;  %v2357_v23 = vld [vmem:[#allocation5 + $0x128] sm:$0xff]  ;;  %v2941_v59 = vld [vmem:[%s8308_s5 + $0x28] sm:$0xff]  ;;  %v2364_v46 = vld [vmem:[#allocation5 + $0x160] sm:$0xff] }
 0x367   : > { %2503 = vmatmul.mubr.f32.gmra.mxu0 %v2329_v4  ;;  %4884 = vmatmul.mubr.msk.f32.gmra.mxu1 %vm2371_vm10, %v2331_v30  ;;  %v2945_v4 = vld [vmem:[%s8308_s5 + $0x48] sm:$0xff]  ;;  %v3014_v30 = vld [vmem:[%s8308_s5 + $0x270] sm:$0xff] }
 0x368   : > { %2507 = vmatprep.mubr.f32.mxu0 %v2333_v17  ;;  %4886 = vmatprep.mubr.msk.f32.mxu1 %vm5764_vm9, %v8331_v24  ;;  %v2944_v17 = vld [vmem:[%s8308_s5 + $0x40] sm:$0xff] }
 0x369   : > { %3114 = vmatprep.subr.mxu0 %v2961_v32  ;;  %3275 = vmatprep.subr.mxu1 %v3025_v50  ;;  %v2356_v32 = vld [vmem:[#allocation5 + $0x120] sm:$0xff]  ;;  %v2939_v50 = vld [vmem:[%s8308_s5 + $0x18] sm:$0xff] }
 0x36a   : > { %3115 = vmatpush1.msra.mxu0 %v2960_v34  ;;  %3276 = vmatpush1.msra.mxu1 %v3024_v5  ;;  %v2360_v34 = vld [vmem:[#allocation5 + $0x140] sm:$0xff]  ;;  %v2367_v5 = vld [vmem:[#allocation5 + $0x178] sm:$0xff] }
 0x36b   : > { %2508 = vmatmul.mubr.f32.gmra.mxu0 %v2332_v37  ;;  %4887 = vmatmul.mubr.msk.f32.gmra.mxu1 %vm2371_vm10, %v2334_v10  ;;  %v3012_v37 = vld [vmem:[%s8308_s5 + $0x260] sm:$0xff]  ;;  %v2942_v10 = vld [vmem:[%s8308_s5 + $0x30] sm:$0xff] }
 0x36c   : > { %2512 = vmatprep.mubr.f32.mxu0 %v2336_v42  ;;  %4889 = vmatprep.mubr.msk.f32.mxu1 %vm5764_vm9, %v8331_v24  ;;  %v3011_v42 = vld [vmem:[%s8308_s5 + $0x258] sm:$0xff] }
 0x36d   : > { %3116 = vmatprep.subr.mxu0 %v2959_v38  ;;  %3277 = vmatprep.subr.mxu1 %v3023_v63  ;;  %v2359_v38 = vld [vmem:[#allocation5 + $0x138] sm:$0xff] }
 0x36e   : > { %3117 = vmatpush1.msra.mxu0 %v2958_v41  ;;  %3278 = vmatpush1.msra.mxu1 %v3022_v61  ;;  %v2363_v41 = vld [vmem:[#allocation5 + $0x158] sm:$0xff]  ;;  %v2370_v61 = vld [vmem:[#allocation5 + $0x190] sm:$0xff] }
 0x36f   : > { %2513 = vmatmul.mubr.f32.gmra.mxu0 %v2335_v39  ;;  %4890 = vmatmul.mubr.msk.f32.gmra.mxu1 %vm2371_vm10, %v2337_v43  ;;  %v3010_v39 = vld [vmem:[%s8308_s5 + $0x250] sm:$0xff]  ;;  %v2940_v43 = vld [vmem:[%s8308_s5 + $0x20] sm:$0xff]  ;;  %v2937_v63 = vld [vmem:[%s8308_s5 + $0x8] sm:$0xff] }
 0x370   : > { %2517 = vmatprep.mubr.f32.mxu0 %v2339_v51  ;;  %4892 = vmatprep.mubr.msk.f32.mxu1 %vm5764_vm9, %v8331_v24  ;;  %v3009_v51 = vld [vmem:[%s8308_s5 + $0x248] sm:$0xff] }
 0x371   : > { %3118 = vmatprep.subr.mxu0 %v2957_v45  ;;  %3279 = vmatprep.subr.mxu1 %v3021_v54  ;;  %v2362_v45 = vld [vmem:[#allocation5 + $0x150] sm:$0xff] }
 0x372   : > { %3119 = vmatpush1.msra.mxu0 %v2956_v47  ;;  %3280 = vmatpush1.msra.mxu1 %v3020_v11  ;;  %v2366_v47 = vld [vmem:[#allocation5 + $0x170] sm:$0xff] }
 0x373   : > { %2518 = vmatmul.mubr.f32.gmra.mxu0 %v2338_v49  ;;  %4893 = vmatmul.mubr.msk.f32.gmra.mxu1 %vm2371_vm10, %v2340_v44  ;;  %v3008_v49 = vld [vmem:[%s8308_s5 + $0x240] sm:$0xff]  ;;  %v2938_v44 = vld [vmem:[%s8308_s5 + $0x10] sm:$0xff] }
 0x374   : > { %2522 = vmatprep.mubr.f32.mxu0 %v2342_v58  ;;  %4895 = vmatprep.mubr.msk.f32.mxu1 %vm5764_vm9, %v8331_v24  ;;  %v3007_v58 = vld [vmem:[%s8308_s5 + $0x238] sm:$0xff]  ;;  %v3004_v54 = vld [vmem:[%s8308_s5 + $0x220] sm:$0xff] }
 0x375   : > { %3120 = vmatprep.subr.mxu0 %v2955_v60  ;;  %3281 = vmatprep.subr.mxu1 %v3019_v12  ;;  %v2365_v60 = vld [vmem:[#allocation5 + $0x168] sm:$0xff]  ;;  %v2996_v11 = vld [vmem:[%s8308_s5 + $0x1e0] sm:$0xff] }
 0x376   : > { %3121 = vmatpush1.msra.mxu0 %v2954_v25  ;;  %3282 = vmatpush1.msra.mxu1 %v3018_v16  ;;  %v2369_v25 = vld [vmem:[#allocation5 + $0x188] sm:$0xff]  ;;  %v3062_v16 = vld [vmem:[%s8308_s5 + $0x3f0] sm:$0xff] }
 0x377   : > { %2523 = vmatmul.mubr.f32.gmra.mxu0 %v2341_v1  ;;  %4896 = vmatmul.mubr.msk.f32.gmra.mxu1 %vm2371_vm10, %v2343_v56  ;;  %v3006_v1 = vld [vmem:[%s8308_s5 + $0x230] sm:$0xff]  ;;  %v2936_v56 = vld [vmem:[%s8308_s5] sm:$0xff]  ;;  %v2995_v12 = vld [vmem:[%s8308_s5 + $0x1d8] sm:$0xff] }
 0x378   : > { %2527 = vmatprep.mubr.f32.mxu0 %v2345_v19  ;;  %4898 = vmatprep.mubr.msk.f32.mxu1 %vm5764_vm9, %v8331_v24  ;;  %v3005_v19 = vld [vmem:[%s8308_s5 + $0x228] sm:$0xff] }
 0x379   : > { %3122 = vmatprep.subr.mxu0 %v2953_v2  ;;  %3283 = vmatprep.subr.mxu1 %v3017_v18  ;;  %v2368_v2 = vld [vmem:[#allocation5 + $0x180] sm:$0xff]  ;;  %v3061_v18 = vld [vmem:[%s8308_s5 + $0x3e8] sm:$0xff] }
 0x37a   : > { %3123 = vmatpush1.msra.mxu0 %v2952_v14  ;;  %3284 = vmatpush1.msra.mxu1 %v3016_v57  ;;  %v2999_v14 = vld [vmem:[%s8308_s5 + $0x1f8] sm:$0xff]  ;;  %v2989_v57 = vld [vmem:[%s8308_s5 + $0x1a8] sm:$0xff] }
 0x37b   : > { %2528 = vmatmul.mubr.f32.gmra.mxu0 %v2344_v8  ;;  %4899 = vmatmul.mubr.msk.f32.gmra.mxu1 %vm2371_vm10, %v2346_v21  ;;  %v2998_v8 = vld [vmem:[%s8308_s5 + $0x1f0] sm:$0xff]  ;;  %v3003_v21 = vld [vmem:[%s8308_s5 + $0x218] sm:$0xff] }
 0x37c   : > { %2532 = vmatprep.mubr.f32.mxu0 %v2348_v27  ;;  %4901 = vmatprep.mubr.msk.f32.mxu1 %vm5764_vm9, %v8331_v24  ;;  %v2997_v27 = vld [vmem:[%s8308_s5 + $0x1e8] sm:$0xff] }
 0x37d   : > { %3124 = vmatprep.subr.mxu0 %v2951_v0  ;;  %3285 = vmatprep.subr.mxu1 %v3015_v15  ;;  %v3002_v0 = vld [vmem:[%s8308_s5 + $0x210] sm:$0xff]  ;;  %v2988_v15 = vld [vmem:[%s8308_s5 + $0x1a0] sm:$0xff] }
 0x37e   : > { %3125 = vmatpush1.msra.mxu0 %v2950_v62  ;;  %3286 = vmatpush1.msra.mxu1 %v3014_v30  ;;  %v3001_v62 = vld [vmem:[%s8308_s5 + $0x208] sm:$0xff]  ;;  %v3055_v30 = vld [vmem:[%s8308_s5 + $0x3b8] sm:$0xff] }
 0x37f   : > { %2533 = vmatmul.mubr.f32.gmra.mxu0 %v2347_v7  ;;  %4902 = vmatmul.mubr.msk.f32.gmra.mxu1 %vm2371_vm10, %v2349_v6  ;;  %v3000_v7 = vld [vmem:[%s8308_s5 + $0x200] sm:$0xff]  ;;  %v2994_v6 = vld [vmem:[%s8308_s5 + $0x1d0] sm:$0xff] }
 0x380   : > { %2537 = vmatprep.mubr.f32.mxu0 %v2351_v13  ;;  %4904 = vmatprep.mubr.msk.f32.mxu1 %vm5764_vm9, %v8331_v24  ;;  %v3063_v13 = vld [vmem:[%s8308_s5 + $0x3f8] sm:$0xff] }
 0x381   : > { %3126 = vmatprep.subr.mxu0 %v2949_v48  ;;  %3287 = vmatprep.subr.mxu1 %v3013_v20  ;;  %v2993_v48 = vld [vmem:[%s8308_s5 + $0x1c8] sm:$0xff]  ;;  %v3054_v20 = vld [vmem:[%s8308_s5 + $0x3b0] sm:$0xff] }
 0x382   : > { %3127 = vmatpush1.msra.mxu0 %v2948_v28  ;;  %3288 = vmatpush1.msra.mxu1 %v3012_v37  ;;  %v2992_v28 = vld [vmem:[%s8308_s5 + $0x1c0] sm:$0xff]  ;;  %v2982_v37 = vld [vmem:[%s8308_s5 + $0x170] sm:$0xff] }
 0x383   : > { %2538 = vmatmul.mubr.f32.gmra.mxu0 %v2350_v22  ;;  %4905 = vmatmul.mubr.msk.f32.gmra.mxu1 %vm2371_vm10, %v2352_v3  ;;  %v2991_v22 = vld [vmem:[%s8308_s5 + $0x1b8] sm:$0xff]  ;;  %v3060_v3 = vld [vmem:[%s8308_s5 + $0x3e0] sm:$0xff] }
 0x384   : > { %2542 = vmatprep.mubr.f32.mxu0 %v2354_v26  ;;  %4907 = vmatprep.mubr.msk.f32.mxu1 %vm5764_vm9, %v8331_v24  ;;  %v2990_v26 = vld [vmem:[%s8308_s5 + $0x1b0] sm:$0xff] }
 0x385   : > { %3128 = vmatprep.subr.mxu0 %v2947_v52  ;;  %3289 = vmatprep.subr.mxu1 %v3011_v42  ;;  %v3059_v52 = vld [vmem:[%s8308_s5 + $0x3d8] sm:$0xff]  ;;  %v2981_v42 = vld [vmem:[%s8308_s5 + $0x168] sm:$0xff] }
 0x386   : > { %3129 = vmatpush1.msra.mxu0 %v2946_v40  ;;  %3290 = vmatpush1.msra.mxu1 %v3010_v39  ;;  %v3058_v40 = vld [vmem:[%s8308_s5 + $0x3d0] sm:$0xff]  ;;  %v3048_v39 = vld [vmem:[%s8308_s5 + $0x380] sm:$0xff] }
 0x387   : > { %2543 = vmatmul.mubr.f32.gmra.mxu0 %v2353_v9  ;;  %4908 = vmatmul.mubr.msk.f32.gmra.mxu1 %vm2371_vm10, %v2355_v29  ;;  %v3057_v9 = vld [vmem:[%s8308_s5 + $0x3c8] sm:$0xff]  ;;  %v2987_v29 = vld [vmem:[%s8308_s5 + $0x198] sm:$0xff] }
 0x388   : > { %2547 = vmatprep.mubr.f32.mxu0 %v2357_v23  ;;  %4910 = vmatprep.mubr.msk.f32.mxu1 %vm5764_vm9, %v8331_v24  ;;  %v3056_v23 = vld [vmem:[%s8308_s5 + $0x3c0] sm:$0xff] }
 0x389   : > { %3130 = vmatprep.subr.mxu0 %v2945_v4  ;;  %3291 = vmatprep.subr.mxu1 %v3009_v51  ;;  %v2986_v4 = vld [vmem:[%s8308_s5 + $0x190] sm:$0xff]  ;;  %v3047_v51 = vld [vmem:[%s8308_s5 + $0x378] sm:$0xff] }
 0x38a   : > { %3131 = vmatpush1.msra.mxu0 %v2944_v17  ;;  %3292 = vmatpush1.msra.mxu1 %v3008_v49  ;;  %v2985_v17 = vld [vmem:[%s8308_s5 + $0x188] sm:$0xff]  ;;  %v2975_v49 = vld [vmem:[%s8308_s5 + $0x138] sm:$0xff] }
 0x38b   : > { %2548 = vmatmul.mubr.f32.gmra.mxu0 %v2356_v32  ;;  %4911 = vmatmul.mubr.msk.f32.gmra.mxu1 %vm2371_vm10, %v2358_v33  ;;  %v2984_v32 = vld [vmem:[%s8308_s5 + $0x180] sm:$0xff]  ;;  %v3053_v33 = vld [vmem:[%s8308_s5 + $0x3a8] sm:$0xff] }
 0x38c   : > { %2552 = vmatprep.mubr.f32.mxu0 %v2360_v34  ;;  %4913 = vmatprep.mubr.msk.f32.mxu1 %vm5764_vm9, %v8331_v24  ;;  %v2983_v34 = vld [vmem:[%s8308_s5 + $0x178] sm:$0xff] }
 0x38d   : > { %3132 = vmatprep.subr.mxu0 %v2943_v36  ;;  %3293 = vmatprep.subr.mxu1 %v3007_v58  ;;  %v3052_v36 = vld [vmem:[%s8308_s5 + $0x3a0] sm:$0xff]  ;;  %v2974_v58 = vld [vmem:[%s8308_s5 + $0x130] sm:$0xff] }
 0x38e   : > { %3133 = vmatpush1.msra.mxu0 %v2942_v10  ;;  %3294 = vmatpush1.msra.mxu1 %v3006_v1  ;;  %v3051_v10 = vld [vmem:[%s8308_s5 + $0x398] sm:$0xff]  ;;  %v3041_v1 = vld [vmem:[%s8308_s5 + $0x348] sm:$0xff] }
 0x38f   : > { %2553 = vmatmul.mubr.f32.gmra.mxu0 %v2359_v38  ;;  %4914 = vmatmul.mubr.msk.f32.gmra.mxu1 %vm2371_vm10, %v2361_v35  ;;  %v3050_v38 = vld [vmem:[%s8308_s5 + $0x390] sm:$0xff]  ;;  %v2980_v35 = vld [vmem:[%s8308_s5 + $0x160] sm:$0xff] }
 0x390   : > { %2557 = vmatprep.mubr.f32.mxu0 %v2363_v41  ;;  %4916 = vmatprep.mubr.msk.f32.mxu1 %vm5764_vm9, %v8331_v24  ;;  %v3049_v41 = vld [vmem:[%s8308_s5 + $0x388] sm:$0xff] }
 0x391   : > { %3134 = vmatprep.subr.mxu0 %v2941_v59  ;;  %3295 = vmatprep.subr.mxu1 %v3005_v19  ;;  %v2979_v59 = vld [vmem:[%s8308_s5 + $0x158] sm:$0xff]  ;;  %v3040_v19 = vld [vmem:[%s8308_s5 + $0x340] sm:$0xff] }
 0x392   : > { %3135 = vmatpush1.msra.mxu0 %v2940_v43  ;;  %3296 = vmatpush1.msra.mxu1 %v3004_v54  ;;  %v2978_v43 = vld [vmem:[%s8308_s5 + $0x150] sm:$0xff] }
 0x393   : > { %2558 = vmatmul.mubr.f32.gmra.mxu0 %v2362_v45  ;;  %4917 = vmatmul.mubr.msk.f32.gmra.mxu1 %vm2371_vm10, %v2364_v46  ;;  %v2977_v45 = vld [vmem:[%s8308_s5 + $0x148] sm:$0xff]  ;;  %v3046_v46 = vld [vmem:[%s8308_s5 + $0x370] sm:$0xff] }
 0x394   : > { %2562 = vmatprep.mubr.f32.mxu0 %v2366_v47  ;;  %4919 = vmatprep.mubr.msk.f32.mxu1 %vm5764_vm9, %v8331_v24  ;;  %v2976_v47 = vld [vmem:[%s8308_s5 + $0x140] sm:$0xff]  ;;  %v3038_v54 = vld [vmem:[%s8308_s5 + $0x330] sm:$0xff] }
 0x395   : > { %3136 = vmatprep.subr.mxu0 %v2939_v50  ;;  %3297 = vmatprep.subr.mxu1 %v3003_v21  ;;  %v3045_v50 = vld [vmem:[%s8308_s5 + $0x368] sm:$0xff] }
 0x396   : > { %3137 = vmatpush1.msra.mxu0 %v2938_v44  ;;  %3298 = vmatpush1.msra.mxu1 %v3002_v0  ;;  %v3044_v44 = vld [vmem:[%s8308_s5 + $0x360] sm:$0xff]  ;;  %v3037_v21 = vld [vmem:[%s8308_s5 + $0x328] sm:$0xff]  ;;  %v3035_v0 = vld [vmem:[%s8308_s5 + $0x318] sm:$0xff] }
 0x397   : > { %2563 = vmatmul.mubr.f32.gmra.mxu0 %v2365_v60  ;;  %4920 = vmatmul.mubr.msk.f32.gmra.mxu1 %vm2371_vm10, %v2367_v5  ;;  %v3043_v60 = vld [vmem:[%s8308_s5 + $0x358] sm:$0xff]  ;;  %v2973_v5 = vld [vmem:[%s8308_s5 + $0x128] sm:$0xff] }
 0x398   : > { %2567 = vmatprep.mubr.f32.mxu0 %v2369_v25  ;;  %4922 = vmatprep.mubr.msk.f32.mxu1 %vm5764_vm9, %v8331_v24  ;;  %v3042_v25 = vld [vmem:[%s8308_s5 + $0x350] sm:$0xff] }
 0x399   : > { %3138 = vmatprep.subr.mxu0 %v2937_v63  ;;  %3299 = vmatprep.subr.mxu1 %v3001_v62  ;;  %v2972_v63 = vld [vmem:[%s8308_s5 + $0x120] sm:$0xff]  ;;  %v3033_v62 = vld [vmem:[%s8308_s5 + $0x308] sm:$0xff] }
 0x39a   : > { %3139 = vmatpush1.msra.mxu0 %v2936_v56  ;;  %3300 = vmatpush1.msra.mxu1 %v3000_v7  ;;  %v2971_v56 = vld [vmem:[%s8308_s5 + $0x118] sm:$0xff] }
 0x39b   : > { %2568 = vmatmul.mubr.f32.gmra.mxu0 %v2368_v2  ;;  %4923 = vmatmul.mubr.msk.f32.gmra.mxu1 %vm2371_vm10, %v2370_v61  ;;  %v2970_v2 = vld [vmem:[%s8308_s5 + $0x110] sm:$0xff]  ;;  %v3039_v61 = vld [vmem:[%s8308_s5 + $0x338] sm:$0xff] }
 0x39c   : > { %3140 = vmatprep.subr.mxu0 %v2999_v14  ;;  %3301 = vmatprep.subr.mxu1 %v3063_v13  ;;  %v2969_v14 = vld [vmem:[%s8308_s5 + $0x108] sm:$0xff]  ;;  %v3095_v7 = vld [vmem:[%s8308_s5 + $0x4f8] sm:$0xff] }
 0x39d   : > { %3141 = vmatpush2.msra.mxu0 %v2998_v8  ;;  %3302 = vmatpush2.msra.mxu1 %v3062_v16  ;;  %v2968_v8 = vld [vmem:[%s8308_s5 + $0x100] sm:$0xff] }
 0x39e   : > { %3142 = vmatprep.subr.mxu0 %v2997_v27  ;;  %3303 = vmatprep.subr.mxu1 %v3061_v18  ;;  %v3036_v27 = vld [vmem:[%s8308_s5 + $0x320] sm:$0xff] }
 0x39f   : > { %3143 = vmatpush2.msra.mxu0 %v2996_v11  ;;  %3304 = vmatpush2.msra.mxu1 %v3060_v3  ;;  %v3034_v11 = vld [vmem:[%s8308_s5 + $0x310] sm:$0xff] }
 0x3a0   : > { %3144 = vmatprep.subr.mxu0 %v2995_v12  ;;  %3305 = vmatprep.subr.mxu1 %v3059_v52  ;;  %v3032_v12 = vld [vmem:[%s8308_s5 + $0x300] sm:$0xff] }
 0x3a1   : > { %3145 = vmatpush2.msra.mxu0 %v2994_v6  ;;  %3306 = vmatpush2.msra.mxu1 %v3058_v40 }
 0x3a2   : > { %3146 = vmatprep.subr.mxu0 %v2993_v48  ;;  %3307 = vmatprep.subr.mxu1 %v3057_v9 }
 0x3a3   : > { %3147 = vmatpush2.msra.mxu0 %v2992_v28  ;;  %3308 = vmatpush2.msra.mxu1 %v3056_v23 }
 0x3a4   : > { %3148 = vmatprep.subr.mxu0 %v2991_v22  ;;  %3309 = vmatprep.subr.mxu1 %v3055_v30 }
 0x3a5   : > { %3149 = vmatpush2.msra.mxu0 %v2990_v26  ;;  %3310 = vmatpush2.msra.mxu1 %v3054_v20 }
 0x3a6   : > { %3150 = vmatprep.subr.mxu0 %v2989_v57  ;;  %3311 = vmatprep.subr.mxu1 %v3053_v33 }
 0x3a7   : > { %3151 = vmatpush2.msra.mxu0 %v2988_v15  ;;  %3312 = vmatpush2.msra.mxu1 %v3052_v36 }
 0x3a8   : > { %3152 = vmatprep.subr.mxu0 %v2987_v29  ;;  %3313 = vmatprep.subr.mxu1 %v3051_v10 }
 0x3a9   : > { %3153 = vmatpush2.msra.mxu0 %v2986_v4  ;;  %3314 = vmatpush2.msra.mxu1 %v3050_v38  ;;  %v3093_v38 = vld [vmem:[%s8308_s5 + $0x4e8] sm:$0xff] }
 0x3aa   : > { %3154 = vmatprep.subr.mxu0 %v2985_v17  ;;  %3315 = vmatprep.subr.mxu1 %v3049_v41 }
 0x3ab   : > { %3155 = vmatpush2.msra.mxu0 %v2984_v32  ;;  %3316 = vmatpush2.msra.mxu1 %v3048_v39 }
 0x3ac   : > { %3156 = vmatprep.subr.mxu0 %v2983_v34  ;;  %3317 = vmatprep.subr.mxu1 %v3047_v51  ;;  %v3094_v34 = vld [vmem:[%s8308_s5 + $0x4f0] sm:$0xff] }
 0x3ad   : > { %3157 = vmatpush2.msra.mxu0 %v2982_v37  ;;  %3318 = vmatpush2.msra.mxu1 %v3046_v46 }
 0x3ae   : > { %3158 = vmatprep.subr.mxu0 %v2981_v42  ;;  %3319 = vmatprep.subr.mxu1 %v3045_v50 }
 0x3af   : > { %3159 = vmatpush2.msra.mxu0 %v2980_v35  ;;  %3320 = vmatpush2.msra.mxu1 %v3044_v44  ;;  %v3090_v44 = vld [vmem:[%s8308_s5 + $0x4d0] sm:$0xff] }
 0x3b0   : > { %3160 = vmatprep.subr.mxu0 %v2979_v59  ;;  %3321 = vmatprep.subr.mxu1 %v3043_v60  ;;  %v3092_v59 = vld [vmem:[%s8308_s5 + $0x4e0] sm:$0xff] }
 0x3b1   : > { %3161 = vmatpush2.msra.mxu0 %v2978_v43  ;;  %3322 = vmatpush2.msra.mxu1 %v3042_v25  ;;  %v3089_v25 = vld [vmem:[%s8308_s5 + $0x4c8] sm:$0xff] }
 0x3b2   : > { %3162 = vmatprep.subr.mxu0 %v2977_v45  ;;  %3323 = vmatprep.subr.mxu1 %v3041_v1 }
 0x3b3   : > { %3163 = vmatpush2.msra.mxu0 %v2976_v47  ;;  %3324 = vmatpush2.msra.mxu1 %v3040_v19  ;;  %v3091_v47 = vld [vmem:[%s8308_s5 + $0x4d8] sm:$0xff]  ;;  %v3088_v19 = vld [vmem:[%s8308_s5 + $0x4c0] sm:$0xff] }
 0x3b4   : > { %3164 = vmatprep.subr.mxu0 %v2975_v49  ;;  %3325 = vmatprep.subr.mxu1 %v3039_v61 }
 0x3b5   : > { %3165 = vmatpush2.msra.mxu0 %v2974_v58  ;;  %3326 = vmatpush2.msra.mxu1 %v3038_v54 }
 0x3b6   : > { %3166 = vmatprep.subr.mxu0 %v2973_v5  ;;  %3327 = vmatprep.subr.mxu1 %v3037_v21  ;;  %v3087_v21 = vld [vmem:[%s8308_s5 + $0x4b8] sm:$0xff] }
 0x3b7   : > { %3167 = vmatpush2.msra.mxu0 %v2972_v63  ;;  %3328 = vmatpush2.msra.mxu1 %v3036_v27 }
 0x3b8   : > { %3168 = vmatprep.subr.mxu0 %v2971_v56  ;;  %3329 = vmatprep.subr.mxu1 %v3035_v0 }
 0x3b9   : > { %3169 = vmatpush2.msra.mxu0 %v2970_v2  ;;  %3330 = vmatpush2.msra.mxu1 %v3034_v11  ;;  %v3086_v11 = vld [vmem:[%s8308_s5 + $0x4b0] sm:$0xff] }
 0x3ba   : > { %3170 = vmatprep.subr.mxu0 %v2969_v14  ;;  %3331 = vmatprep.subr.mxu1 %v3033_v62 }
 0x3bb   : > { %3171 = vmatpush2.msra.mxu0 %v2968_v8  ;;  %3332 = vmatpush2.msra.mxu1 %v3032_v12 }
 0x3bc   : > { %3430 = vmatprep.subr.mxu0 %v3095_v7 }
 0x41b   : > { %v2489_v6 = vpop.f32.mrf.mxu0  ;;  %v2639_v13 = vpop.f32.mrf.mxu1 }
 0x41c   : > { %v2640_v48 = vadd.f32 %v2639_v13, %v2489_v6  ;;  %v3085_v6 = vld [vmem:[%s8308_s5 + $0x4a8] sm:$0xff] }
 0x41d   : > { %v2491_v16 = vpop.f32.mrf.mxu0  ;;  %v4876_v28 = vpop.f32.mrf.mxu1 }
 0x41e   : > { %v2740_v57 = vrot.slane %v2640_v48, 1  ;;  %v2838_v40 = vrot.slane %v2640_v48, 3  ;;  %v2789_v15 = vrot.slane %v2640_v48, 2  ;;  %v2887_v20 = vrot.slane %v2640_v48, 4  ;;  %v3084_v28 = vld [vmem:[%s8308_s5 + $0x4a0] sm:$0xff] }
 0x41f   : > { %v2494_v18 = vpop.f32.mrf.mxu0  ;;  %v2644_v22 = vpop.f32.mrf.mxu1 }
 0x420   : > { %v2645_v3 = vadd.f32 %v2644_v22, %v2494_v18 }
 0x421   : > { %v2496_v26 = vpop.f32.mrf.mxu0  ;;  %v4879_v52 = vpop.f32.mrf.mxu1 }
 0x422   : > { %v2741_v9 = vrot.slane %v2645_v3, 1  ;;  %v2839_v29 = vrot.slane %v2645_v3, 3  ;;  %v2790_v23 = vrot.slane %v2645_v3, 2  ;;  %v2888_v4 = vrot.slane %v2645_v3, 4 }
 0x423   : > { %v2499_v30 = vpop.f32.mrf.mxu0  ;;  %v2649_v17 = vpop.f32.mrf.mxu1 }
 0x424   : > { %v2650_v32 = vadd.f32 %v2649_v17, %v2499_v30  ;;  %v2742_v33 = vsel %vm641_vm1, %v2740_v57, %v2741_v9  ;;  %v2840_v36 = vsel %vm1005_vm0, %v2838_v40, %v2839_v29  ;;  %v2791_v37 = vsel %vm823_vm3, %v2789_v15, %v2790_v23  ;;  %v3083_v57 = vld [vmem:[%s8308_s5 + $0x498] sm:$0xff]  ;;  %v3081_v30 = vld [vmem:[%s8308_s5 + $0x488] sm:$0xff] }
 0x425   : > { %v2501_v10 = vpop.f32.mrf.mxu0  ;;  %v4882_v42 = vpop.f32.mrf.mxu1  ;;  %3172 = vmatprep.mubr.f32.mxu0 %v2742_v33  ;;  %3333 = vmatprep.mubr.f32.mxu1 %v2840_v36  ;;  %v7485_v35 = vsel %vm1187_vm2, %v2887_v20, %v2888_v4  ;;  %v3080_v33 = vld [vmem:[%s8308_s5 + $0x480] sm:$0xff] }
 0x426   : > { %3173 = vmatmul.mubr.f32.vlgmr.msra.gmra.mxu0 %v2640_v48  ;;  %v2743_v41 = vrot.slane %v2650_v32, 1  ;;  %3334 = vmatmul.mubr.f32.vlgmr.msra.gmra.mxu1 %v2791_v37  ;;  %v2841_v39 = vrot.slane %v2650_v32, 3  ;;  %v2792_v43 = vrot.slane %v2650_v32, 2  ;;  %v2890_v51 = vrot.slane %v2650_v32, 4 }
 0x427   : > { %v2504_v45 = vpop.f32.mrf.mxu0  ;;  %v2654_v46 = vpop.f32.mrf.mxu1  ;;  %3431 = vmatpush1.msra.mxu0 %v3094_v34 }
 0x428   : > { %v7493_v50 = vadd.f32 %v2654_v46, %v2504_v45  ;;  %v2744_v49 = vsel %vm641_vm1, %v2741_v9, %v2743_v41  ;;  %3432 = vmatprep.subr.mxu0 %v3093_v38  ;;  %v2842_v58 = vsel %vm1005_vm0, %v2839_v29, %v2841_v39  ;;  %v2793_v63 = vsel %vm823_vm3, %v2790_v23, %v2792_v43  ;;  %v3082_v9 = vld [vmem:[%s8308_s5 + $0x490] sm:$0xff]  ;;  %v3079_v38 = vld [vmem:[%s8308_s5 + $0x478] sm:$0xff]  ;;  %v3077_v46 = vld [vmem:[%s8308_s5 + $0x468] sm:$0xff] }
 0x429   : > { %v2506_v60 = vpop.f32.mrf.mxu0  ;;  %v4885_v5 = vpop.f32.mrf.mxu1  ;;  %3178 = vmatprep.mubr.f32.mxu0 %v2744_v49  ;;  %3433 = vmatpush1.msra.mxu0 %v3092_v59  ;;  %v7505_v1 = vsel %vm1187_vm2, %v2888_v4, %v2890_v51 }
 0x42a   : > { %3179 = vmatmul.mubr.f32.gmra.mxu0 %v2645_v3  ;;  %v2745_v56 = vrot.slane %v7493_v50, 1  ;;  %3434 = vmatprep.subr.mxu0 %v3091_v47  ;;  %v2843_v2 = vrot.slane %v7493_v50, 3  ;;  %v2794_v61 = vrot.slane %v7493_v50, 2  ;;  %v2892_v14 = vrot.slane %v7493_v50, 4 }
 0x42b   : > { %v2509_v54 = vpop.f32.mrf.mxu0  ;;  %v2659_v8 = vpop.f32.mrf.mxu1  ;;  %3435 = vmatpush1.msra.mxu0 %v3090_v44  ;;  %3339 = vmatprep.mubr.f32.mxu1 %v2842_v58  ;;  %v3076_v44 = vld [vmem:[%s8308_s5 + $0x460] sm:$0xff] }
 0x42c   : > { %v7517_v27 = vadd.f32 %v2659_v8, %v2509_v54  ;;  %v2746_v0 = vsel %vm641_vm1, %v2743_v41, %v2745_v56  ;;  %3436 = vmatprep.subr.mxu0 %v3089_v25  ;;  %3340 = vmatmul.mubr.f32.gmra.mxu1 %v2793_v63  ;;  %v2844_v62 = vsel %vm1005_vm0, %v2841_v39, %v2843_v2  ;;  %v3078_v39 = vld [vmem:[%s8308_s5 + $0x470] sm:$0xff] }
 0x42d   : > { %v2511_v12 = vpop.f32.mrf.mxu0  ;;  %v4888_v7 = vpop.f32.mrf.mxu1  ;;  %3184 = vmatprep.mubr.f32.mxu0 %v2746_v0  ;;  %3437 = vmatpush1.msra.mxu0 %v3088_v19  ;;  %v2795_v13 = vsel %vm823_vm3, %v2792_v43, %v2794_v61  ;;  %v7529_v48 = vsel %vm1187_vm2, %v2890_v51, %v2892_v14 }
 0x42e   : > { %3185 = vmatmul.mubr.f32.gmra.mxu0 %v2650_v32  ;;  %v2747_v16 = vrot.slane %v7517_v27, 1  ;;  %3438 = vmatprep.subr.mxu0 %v3087_v21  ;;  %v2845_v18 = vrot.slane %v7517_v27, 3  ;;  %v2796_v22 = vrot.slane %v7517_v27, 2  ;;  %v2894_v3 = vrot.slane %v7517_v27, 4  ;;  %v3073_v21 = vld [vmem:[%s8308_s5 + $0x448] sm:$0xff] }
 0x42f   : > { %v2514_v26 = vpop.f32.mrf.mxu0  ;;  %v2664_v52 = vpop.f32.mrf.mxu1  ;;  %3439 = vmatpush1.msra.mxu0 %v3086_v11  ;;  %3345 = vmatprep.mubr.f32.mxu1 %v2844_v62  ;;  %v3072_v62 = vld [vmem:[%s8308_s5 + $0x440] sm:$0xff] }
 0x430   : > { %v7541_v40 = vadd.f32 %v2664_v52, %v2514_v26  ;;  %v2748_v15 = vsel %vm641_vm1, %v2745_v56, %v2747_v16  ;;  %3440 = vmatprep.subr.mxu0 %v3085_v6  ;;  %3346 = vmatmul.mubr.f32.gmra.mxu1 %v2795_v13  ;;  %v2846_v29 = vsel %vm1005_vm0, %v2843_v2, %v2845_v18  ;;  %v3075_v56 = vld [vmem:[%s8308_s5 + $0x458] sm:$0xff] }
 0x431   : > { %v2516_v23 = vpop.f32.mrf.mxu0  ;;  %v4891_v4 = vpop.f32.mrf.mxu1  ;;  %3190 = vmatprep.mubr.f32.mxu0 %v2748_v15  ;;  %3441 = vmatpush1.msra.mxu0 %v3084_v28  ;;  %v2797_v17 = vsel %vm823_vm3, %v2794_v61, %v2796_v22  ;;  %v7553_v20 = vsel %vm1187_vm2, %v2892_v14, %v2894_v3  ;;  %v3074_v61 = vld [vmem:[%s8308_s5 + $0x450] sm:$0xff]  ;;  %v3071_v28 = vld [vmem:[%s8308_s5 + $0x438] sm:$0xff] }
 0x432   : > { %3191 = vmatmul.mubr.f32.gmra.mxu0 %v7493_v50  ;;  %v2749_v32 = vrot.slane %v7541_v40, 1  ;;  %3442 = vmatprep.subr.mxu0 %v3083_v57  ;;  %v2847_v34 = vrot.slane %v7541_v40, 3  ;;  %v2798_v36 = vrot.slane %v7541_v40, 2  ;;  %v2896_v37 = vrot.slane %v7541_v40, 4  ;;  %v3068_v23 = vld [vmem:[%s8308_s5 + $0x420] sm:$0xff] }
 0x433   : > { %v2519_v10 = vpop.f32.mrf.mxu0  ;;  %v2669_v42 = vpop.f32.mrf.mxu1  ;;  %3443 = vmatpush1.msra.mxu0 %v3082_v9  ;;  %3351 = vmatprep.mubr.f32.mxu1 %v2846_v29 }
 0x434   : > { %v7566_v41 = vadd.f32 %v2669_v42, %v2519_v10  ;;  %v2750_v59 = vsel %vm641_vm1, %v2747_v16, %v2749_v32  ;;  %3444 = vmatprep.subr.mxu0 %v3081_v30  ;;  %3352 = vmatmul.mubr.f32.gmra.mxu1 %v2797_v17  ;;  %v2848_v43 = vsel %vm1005_vm0, %v2845_v18, %v2847_v34  ;;  %v3066_v10 = vld [vmem:[%s8308_s5 + $0x410] sm:$0xff] }
 0x435   : > { %v2521_v51 = vpop.f32.mrf.mxu0  ;;  %v4894_v45 = vpop.f32.mrf.mxu1  ;;  %3196 = vmatprep.mubr.f32.mxu0 %v2750_v59  ;;  %3445 = vmatpush1.msra.mxu0 %v3080_v33  ;;  %v2799_v47 = vsel %vm823_vm3, %v2796_v22, %v2798_v36  ;;  %v7578_v50 = vsel %vm1187_vm2, %v2894_v3, %v2896_v37  ;;  %v3070_v3 = vld [vmem:[%s8308_s5 + $0x430] sm:$0xff]  ;;  %v3065_v59 = vld [vmem:[%s8308_s5 + $0x408] sm:$0xff] }
 0x436   : > { %3197 = vmatmul.mubr.f32.gmra.mxu0 %v7517_v27  ;;  %v2751_v49 = vrot.slane %v7566_v41, 1  ;;  %3446 = vmatprep.subr.mxu0 %v3079_v38  ;;  %v2849_v58 = vrot.slane %v7566_v41, 3  ;;  %v2800_v60 = vrot.slane %v7566_v41, 2  ;;  %v2898_v5 = vrot.slane %v7566_v41, 4  ;;  %v3064_v45 = vld [vmem:[%s8308_s5 + $0x400] sm:$0xff] }
 0x437   : > { %v2524_v25 = vpop.f32.mrf.mxu0  ;;  %v2674_v63 = vpop.f32.mrf.mxu1  ;;  %3447 = vmatpush1.msra.mxu0 %v3078_v39  ;;  %3357 = vmatprep.mubr.f32.mxu1 %v2848_v43 }
 0x438   : > { %v7591_v19 = vadd.f32 %v2674_v63, %v2524_v25  ;;  %v2752_v2 = vsel %vm641_vm1, %v2749_v32, %v2751_v49  ;;  %3448 = vmatprep.subr.mxu0 %v3077_v46  ;;  %3358 = vmatmul.mubr.f32.gmra.mxu1 %v2799_v47  ;;  %v2850_v14 = vsel %vm1005_vm0, %v2847_v34, %v2849_v58  ;;  %v3067_v34 = vld [vmem:[%s8308_s5 + $0x418] sm:$0xff] }
 0x439   : > { %v2526_v54 = vpop.f32.mrf.mxu0  ;;  %v4897_v8 = vpop.f32.mrf.mxu1  ;;  %3202 = vmatprep.mubr.f32.mxu0 %v2752_v2  ;;  %3449 = vmatpush1.msra.mxu0 %v3076_v44  ;;  %v2801_v27 = vsel %vm823_vm3, %v2798_v36, %v2800_v60  ;;  %v7603_v0 = vsel %vm1187_vm2, %v2896_v37, %v2898_v5 }
 0x43a   : > { %3203 = vmatmul.mubr.f32.gmra.mxu0 %v7541_v40  ;;  %v2753_v11 = vrot.slane %v7591_v19, 1  ;;  %3450 = vmatprep.subr.mxu0 %v3075_v56  ;;  %v2851_v12 = vrot.slane %v7591_v19, 3  ;;  %v2802_v7 = vrot.slane %v7591_v19, 2  ;;  %v2900_v6 = vrot.slane %v7591_v19, 4  ;;  %v3069_v40 = vld [vmem:[%s8308_s5 + $0x428] sm:$0xff] }
 0x43b   : > { %v2529_v13 = vpop.f32.mrf.mxu0  ;;  %v2679_v16 = vpop.f32.mrf.mxu1  ;;  %3451 = vmatpush1.msra.mxu0 %v3074_v61  ;;  %3363 = vmatprep.mubr.f32.mxu1 %v2850_v14 }
 0x43c   : > { %v2680_v18 = vadd.f32 %v2679_v16, %v2529_v13  ;;  %v2754_v22 = vsel %vm641_vm1, %v2751_v49, %v2753_v11  ;;  %3452 = vmatprep.subr.mxu0 %v3073_v21  ;;  %3364 = vmatmul.mubr.f32.gmra.mxu1 %v2801_v27  ;;  %v2852_v26 = vsel %vm1005_vm0, %v2849_v58, %v2851_v12 }
 0x43d   : > { %v2531_v52 = vpop.f32.mrf.mxu0  ;;  %v4900_v57 = vpop.f32.mrf.mxu1  ;;  %3208 = vmatprep.mubr.f32.mxu0 %v2754_v22  ;;  %3453 = vmatpush1.msra.mxu0 %v3072_v62  ;;  %v2803_v15 = vsel %vm823_vm3, %v2800_v60, %v2802_v7  ;;  %v7626_v9 = vsel %vm1187_vm2, %v2898_v5, %v2900_v6 }
 0x43e   : > { %3209 = vmatmul.mubr.f32.gmra.mxu0 %v7566_v41  ;;  %v2755_v29 = vrot.slane %v2680_v18, 1  ;;  %3454 = vmatprep.subr.mxu0 %v3071_v28  ;;  %v2853_v4 = vrot.slane %v2680_v18, 3  ;;  %v2804_v30 = vrot.slane %v2680_v18, 2  ;;  %v2902_v17 = vrot.slane %v2680_v18, 4 }
 0x43f   : > { %v2534_v32 = vpop.f32.mrf.mxu0  ;;  %v2684_v33 = vpop.f32.mrf.mxu1  ;;  %3455 = vmatpush1.msra.mxu0 %v3070_v3  ;;  %3369 = vmatprep.mubr.f32.mxu1 %v2852_v26 }
 0x440   : > { %v2685_v36 = vadd.f32 %v2684_v33, %v2534_v32  ;;  %v2756_v37 = vsel %vm641_vm1, %v2753_v11, %v2755_v29  ;;  %3456 = vmatprep.subr.mxu0 %v3069_v40  ;;  %3370 = vmatmul.mubr.f32.gmra.mxu1 %v2803_v15  ;;  %v2854_v42 = vsel %vm1005_vm0, %v2851_v12, %v2853_v4 }
 0x441   : > { %v2536_v38 = vpop.f32.mrf.mxu0  ;;  %v4903_v41 = vpop.f32.mrf.mxu1  ;;  %3214 = vmatprep.mubr.f32.mxu0 %v2756_v37  ;;  %3457 = vmatpush1.msra.mxu0 %v3068_v23  ;;  %v2805_v39 = vsel %vm823_vm3, %v2802_v7, %v2804_v30  ;;  %v7645_v43 = vsel %vm1187_vm2, %v2900_v6, %v2902_v17 }
 0x442   : > { %3215 = vmatmul.mubr.f32.gmra.mxu0 %v7591_v19  ;;  %v2757_v51 = vrot.slane %v2685_v36, 1  ;;  %3458 = vmatprep.subr.mxu0 %v3067_v34  ;;  %v2855_v46 = vrot.slane %v2685_v36, 3  ;;  %v2806_v47 = vrot.slane %v2685_v36, 2  ;;  %v2904_v49 = vrot.slane %v2685_v36, 4 }
 0x443   : > { %v2539_v44 = vpop.f32.mrf.mxu0  ;;  %v2689_v58 = vpop.f32.mrf.mxu1  ;;  %3459 = vmatpush1.msra.mxu0 %v3066_v10  ;;  %3375 = vmatprep.mubr.f32.mxu1 %v2854_v42 }
 0x444   : > { %v2690_v60 = vadd.f32 %v2689_v58, %v2539_v44  ;;  %v2758_v5 = vsel %vm641_vm1, %v2755_v29, %v2757_v51  ;;  %3460 = vmatprep.subr.mxu0 %v3065_v59  ;;  %3376 = vmatmul.mubr.f32.gmra.mxu1 %v2805_v39  ;;  %v2856_v25 = vsel %vm1005_vm0, %v2853_v4, %v2855_v46 }
 0x445   : > { %v2541_v63 = vpop.f32.mrf.mxu0  ;;  %v4906_v56 = vpop.f32.mrf.mxu1  ;;  %3220 = vmatprep.mubr.f32.mxu0 %v2758_v5  ;;  %3461 = vmatpush1.msra.mxu0 %v3064_v45  ;;  %v2807_v19 = vsel %vm823_vm3, %v2804_v30, %v2806_v47  ;;  %v7655_v2 = vsel %vm1187_vm2, %v2902_v17, %v2904_v49 }
 0x446   : > { %3221 = vmatmul.mubr.f32.gmra.mxu0 %v2680_v18  ;;  %v2759_v61 = vrot.slane %v2690_v60, 1  ;;  %3381 = vmatprep.mubr.f32.mxu1 %v2856_v25  ;;  %v2857_v14 = vrot.slane %v2690_v60, 3  ;;  %v2808_v54 = vrot.slane %v2690_v60, 2  ;;  %v2906_v8 = vrot.slane %v2690_v60, 4 }
 0x447   : > { %v2544_v21 = vpop.f32.mrf.mxu0  ;;  %v2694_v27 = vpop.f32.mrf.mxu1 }
 0x448   : > { %v2695_v11 = vadd.f32 %v2694_v27, %v2544_v21  ;;  %v2760_v62 = vsel %vm641_vm1, %v2757_v51, %v2759_v61  ;;  %3382 = vmatmul.mubr.f32.gmra.mxu1 %v2807_v19  ;;  %v2858_v12 = vsel %vm1005_vm0, %v2855_v46, %v2857_v14  ;;  %v2809_v13 = vsel %vm823_vm3, %v2806_v47, %v2808_v54 }
 0x449   : > { %v2546_v7 = vpop.f32.mrf.mxu0  ;;  %v4909_v6 = vpop.f32.mrf.mxu1  ;;  %3226 = vmatprep.mubr.f32.mxu0 %v2760_v62  ;;  %3387 = vmatprep.mubr.f32.mxu1 %v2858_v12  ;;  %v7661_v16 = vsel %vm1187_vm2, %v2904_v49, %v2906_v8 }
 0x44a   : > { %3227 = vmatmul.mubr.f32.gmra.mxu0 %v2685_v36  ;;  %v2761_v28 = vrot.slane %v2695_v11, 1  ;;  %v2859_v18 = vrot.slane %v2695_v11, 3  ;;  %v2810_v22 = vrot.slane %v2695_v11, 2  ;;  %v2908_v3 = vrot.slane %v2695_v11, 4 }
 0x44b   : > { %v2549_v26 = vpop.f32.mrf.mxu0  ;;  %v2699_v52 = vpop.f32.mrf.mxu1 }
 0x44c   : > { %v2700_v57 = vadd.f32 %v2699_v52, %v2549_v26  ;;  %v2762_v40 = vsel %vm641_vm1, %v2759_v61, %v2761_v28  ;;  %3388 = vmatmul.mubr.f32.gmra.mxu1 %v2809_v13  ;;  %v2860_v15 = vsel %vm1005_vm0, %v2857_v14, %v2859_v18  ;;  %v2811_v4 = vsel %vm823_vm3, %v2808_v54, %v2810_v22 }
 0x44d   : > { %v2551_v29 = vpop.f32.mrf.mxu0  ;;  %v4912_v23 = vpop.f32.mrf.mxu1  ;;  %3232 = vmatprep.mubr.f32.mxu0 %v2762_v40  ;;  %3393 = vmatprep.mubr.f32.mxu1 %v2860_v15  ;;  %v7667_v30 = vsel %vm1187_vm2, %v2906_v8, %v2908_v3 }
 0x44e   : > { %3233 = vmatmul.mubr.f32.gmra.mxu0 %v2690_v60  ;;  %v2763_v17 = vrot.slane %v2700_v57, 1  ;;  %v2861_v32 = vrot.slane %v2700_v57, 3  ;;  %v2812_v33 = vrot.slane %v2700_v57, 2  ;;  %v2910_v34 = vrot.slane %v2700_v57, 4 }
 0x44f   : > { %v2554_v36 = vpop.f32.mrf.mxu0  ;;  %v2704_v37 = vpop.f32.mrf.mxu1 }
 0x450   : > { %v2705_v10 = vadd.f32 %v2704_v37, %v2554_v36  ;;  %v2764_v42 = vsel %vm641_vm1, %v2761_v28, %v2763_v17  ;;  %3394 = vmatmul.mubr.f32.gmra.mxu1 %v2811_v4  ;;  %v2862_v38 = vsel %vm1005_vm0, %v2859_v18, %v2861_v32  ;;  %v2813_v39 = vsel %vm823_vm3, %v2810_v22, %v2812_v33 }
 0x451   : > { %v2556_v41 = vpop.f32.mrf.mxu0  ;;  %v4915_v59 = vpop.f32.mrf.mxu1  ;;  %3238 = vmatprep.mubr.f32.mxu0 %v2764_v42  ;;  %3399 = vmatprep.mubr.f32.mxu1 %v2862_v38  ;;  %v7673_v51 = vsel %vm1187_vm2, %v2908_v3, %v2910_v34 }
 0x452   : > { %3239 = vmatmul.mubr.f32.gmra.mxu0 %v2695_v11  ;;  %v2765_v45 = vrot.slane %v2705_v10, 1  ;;  %v2863_v46 = vrot.slane %v2705_v10, 3  ;;  %v2814_v47 = vrot.slane %v2705_v10, 2  ;;  %v2912_v49 = vrot.slane %v2705_v10, 4 }
 0x453   : > { %v2559_v44 = vpop.f32.mrf.mxu0  ;;  %v2709_v58 = vpop.f32.mrf.mxu1 }
 0x454   : > { %v2710_v60 = vadd.f32 %v2709_v58, %v2559_v44  ;;  %v2766_v5 = vsel %vm641_vm1, %v2763_v17, %v2765_v45  ;;  %3400 = vmatmul.mubr.f32.gmra.mxu1 %v2813_v39  ;;  %v2864_v25 = vsel %vm1005_vm0, %v2861_v32, %v2863_v46  ;;  %v2815_v19 = vsel %vm823_vm3, %v2812_v33, %v2814_v47  ;;  %v3633_v39 = vld [vmem:[#allocation7 + $0x50] sm:$0xff]  ;;  %v3630_v44 = vld [vmem:[#allocation7 + $0x38] sm:$0xff] }
 0x455   : > { %v2561_v63 = vpop.f32.mrf.mxu0  ;;  %v4918_v56 = vpop.f32.mrf.mxu1  ;;  %3244 = vmatprep.mubr.f32.mxu0 %v2766_v5  ;;  %3405 = vmatprep.mubr.f32.mxu1 %v2864_v25  ;;  %v7679_v61 = vsel %vm1187_vm2, %v2910_v34, %v2912_v49  ;;  %v3645_v58 = vld [vmem:[#allocation7 + $0xb0] sm:$0xff]  ;;  %v3644_v5 = vld [vmem:[#allocation7 + $0xa8] sm:$0xff] }
 0x456   : > { %3245 = vmatmul.mubr.f32.gmra.mxu0 %v2700_v57  ;;  %v2767_v14 = vrot.slane %v2710_v60, 1  ;;  %v2865_v54 = vrot.slane %v2710_v60, 3  ;;  %v2816_v8 = vrot.slane %v2710_v60, 2  ;;  %v2914_v21 = vrot.slane %v2710_v60, 4  ;;  %v3628_v25 = vld [vmem:[#allocation7 + $0x28] sm:$0xff]  ;;  %v3643_v63 = vld [vmem:[#allocation7 + $0xa0] sm:$0xff] }
 0x457   : > { %v2564_v27 = vpop.f32.mrf.mxu0  ;;  %v2714_v11 = vpop.f32.mrf.mxu1  ;;  %v3627_v56 = vld [vmem:[#allocation7 + $0x20] sm:$0xff] }
 0x458   : > { %v2715_v62 = vadd.f32 %v2714_v11, %v2564_v27  ;;  %v2768_v12 = vsel %vm641_vm1, %v2765_v45, %v2767_v14  ;;  %3406 = vmatmul.mubr.f32.gmra.mxu1 %v2815_v19  ;;  %v2866_v7 = vsel %vm1005_vm0, %v2863_v46, %v2865_v54  ;;  %v2817_v28 = vsel %vm823_vm3, %v2814_v47, %v2816_v8  ;;  %v3632_v45 = vld [vmem:[#allocation7 + $0x48] sm:$0xff]  ;;  %v3647_v46 = vld [vmem:[#allocation7 + $0xc0] sm:$0xff]  ;;  %v3642_v19 = vld [vmem:[#allocation7 + $0x98] sm:$0xff] }
 0x459   : > { %v2566_v6 = vpop.f32.mrf.mxu0  ;;  %v4921_v13 = vpop.f32.mrf.mxu1  ;;  %3250 = vmatprep.mubr.f32.mxu0 %v2768_v12  ;;  %3411 = vmatprep.mubr.f32.mxu1 %v2866_v7  ;;  %v2915_v18 = vsel %vm1187_vm2, %v2912_v49, %v2914_v21  ;;  %v3631_v47 = vld [vmem:[#allocation7 + $0x40] sm:$0xff]  ;;  %v3646_v49 = vld [vmem:[#allocation7 + $0xb8] sm:$0xff] }
 0x45a   : > { %3251 = vmatmul.mubr.f32.gmra.mxu0 %v2705_v10  ;;  %v2769_v22 = vrot.slane %v2715_v62, 1  ;;  %v2867_v3 = vrot.slane %v2715_v62, 3  ;;  %v2818_v26 = vrot.slane %v2715_v62, 2  ;;  %v2916_v52 = vrot.slane %v2715_v62, 4  ;;  %v3639_v27 = vld [vmem:[#allocation7 + $0x80] sm:$0xff] }
 0x45b   : > { %v2569_v57 = vpop.f32.mrf.mxu0  ;;  %v2719_v40 = vpop.f32.mrf.mxu1  ;;  %v3623_v11 = vld [vmem:[#allocation7] sm:$0xff] }
 0x45c   : > { %v2720_v15 = vadd.f32 %v2719_v40, %v2569_v57  ;;  %v2770_v29 = vsel %vm641_vm1, %v2767_v14, %v2769_v22  ;;  %3412 = vmatmul.mubr.f32.gmra.mxu1 %v2817_v28  ;;  %v2868_v23 = vsel %vm1005_vm0, %v2865_v54, %v2867_v3  ;;  %v2819_v4 = vsel %vm823_vm3, %v2816_v8, %v2818_v26  ;;  %v3641_v14 = vld [vmem:[#allocation7 + $0x90] sm:$0xff]  ;;  %v3640_v8 = vld [vmem:[#allocation7 + $0x88] sm:$0xff] }
 0x45d   : > { %3256 = vmatprep.mubr.f32.mxu0 %v2770_v29  ;;  %3417 = vmatprep.mubr.f32.mxu1 %v2868_v23  ;;  %v2917_v17 = vsel %vm1187_vm2, %v2914_v21, %v2916_v52  ;;  %v2571_v32 = vpop.f32.mrf.mxu0  ;;  %v4924_v33 = vpop.f32.mrf.mxu1  ;;  %v3625_v54 = vld [vmem:[#allocation7 + $0x10] sm:$0xff]  ;;  %v3624_v21 = vld [vmem:[#allocation7 + $0x8] sm:$0xff] }
 0x45e   : > { %3257 = vmatmul.mubr.f32.gmra.mxu0 %v2710_v60  ;;  %v2771_v34 = vrot.slane %v2720_v15, 1  ;;  %v2869_v36 = vrot.slane %v2720_v15, 3  ;;  %v2820_v37 = vrot.slane %v2720_v15, 2  ;;  %v2918_v10 = vrot.slane %v2720_v15, 4  ;;  %v3629_v60 = vld [vmem:[#allocation7 + $0x30] sm:$0xff] }
 0x460   : > { %v2772_v42 = vsel %vm641_vm1, %v2769_v22, %v2771_v34  ;;  %3418 = vmatmul.mubr.f32.gmra.mxu1 %v2819_v4  ;;  %v2870_v38 = vsel %vm1005_vm0, %v2867_v3, %v2869_v36  ;;  %v2919_v41 = vsel %vm1187_vm2, %v2916_v52, %v2918_v10  ;;  %v2821_v59 = vsel %vm823_vm3, %v2818_v26, %v2820_v37 }
 0x461   : > { %3262 = vmatprep.mubr.f32.mxu0 %v2772_v42  ;;  %3423 = vmatprep.mubr.f32.mxu1 %v2870_v38 }
 0x462   : > { %3263 = vmatmul.mubr.f32.gmra.mxu0 %v2715_v62 }
 0x463   : > { %3494 = vmatprep.mubr.f32.mxu0 %v8331_v24 }
 0x464   : > { %3424 = vmatmul.mubr.f32.gmra.mxu1 %v2821_v59 }
 0x466   : > { %3495 = vmatmul.mubr.f32.vlgmr.msra.gmra.mxu0 %v7485_v35  ;;  %v3654_v35 = vld [vmem:[#allocation7 + $0xf8] sm:$0xff] }
 0x467   : > { %3500 = vmatprep.mubr.f32.mxu0 %v8331_v24  ;;  %4625 = vmatprep.subr.mxu1 %v3654_v35 }
 0x46a   : > { %3501 = vmatmul.mubr.f32.gmra.mxu0 %v7505_v1  ;;  %v3638_v1 = vld [vmem:[#allocation7 + $0x78] sm:$0xff] }
 0x46b   : > { %3506 = vmatprep.mubr.f32.mxu0 %v8331_v24  ;;  %4626 = vmatpush3.msra.mxu1 %v3638_v1 }
 0x46e   : > { %3507 = vmatmul.mubr.f32.gmra.mxu0 %v7529_v48  ;;  %v3653_v48 = vld [vmem:[#allocation7 + $0xf0] sm:$0xff] }
 0x46f   : > { %3512 = vmatprep.mubr.f32.mxu0 %v8331_v24  ;;  %4627 = vmatprep.subr.mxu1 %v3653_v48 }
 0x472   : > { %3513 = vmatmul.mubr.f32.gmra.mxu0 %v7553_v20  ;;  %v3637_v20 = vld [vmem:[#allocation7 + $0x70] sm:$0xff] }
 0x473   : > { %3518 = vmatprep.mubr.f32.mxu0 %v8331_v24  ;;  %4628 = vmatpush3.msra.mxu1 %v3637_v20 }
 0x476   : > { %3519 = vmatmul.mubr.f32.gmra.mxu0 %v7578_v50  ;;  %v3652_v50 = vld [vmem:[#allocation7 + $0xe8] sm:$0xff] }
 0x477   : > { %3524 = vmatprep.mubr.f32.mxu0 %v8331_v24  ;;  %4629 = vmatprep.subr.mxu1 %v3652_v50 }
 0x47a   : > { %3525 = vmatmul.mubr.f32.gmra.mxu0 %v7603_v0  ;;  %v3636_v0 = vld [vmem:[#allocation7 + $0x68] sm:$0xff] }
 0x47b   : > { %3530 = vmatprep.mubr.f32.mxu0 %v8331_v24  ;;  %4630 = vmatpush3.msra.mxu1 %v3636_v0 }
 0x47e   : > { %3531 = vmatmul.mubr.f32.gmra.mxu0 %v7626_v9  ;;  %v3651_v9 = vld [vmem:[#allocation7 + $0xe0] sm:$0xff] }
 0x47f   : > { %3536 = vmatprep.mubr.f32.mxu0 %v8331_v24  ;;  %4631 = vmatprep.subr.mxu1 %v3651_v9 }
 0x482   : > { %3537 = vmatmul.mubr.f32.gmra.mxu0 %v7645_v43  ;;  %v3635_v43 = vld [vmem:[#allocation7 + $0x60] sm:$0xff] }
 0x483   : > { %3542 = vmatprep.mubr.f32.mxu0 %v8331_v24  ;;  %4632 = vmatpush3.msra.mxu1 %v3635_v43 }
 0x486   : > { %3543 = vmatmul.mubr.f32.gmra.mxu0 %v7655_v2  ;;  %v3650_v2 = vld [vmem:[#allocation7 + $0xd8] sm:$0xff] }
 0x487   : > { %3548 = vmatprep.mubr.f32.mxu0 %v8331_v24  ;;  %4633 = vmatprep.subr.mxu1 %v3650_v2 }
 0x48a   : > { %3549 = vmatmul.mubr.f32.gmra.mxu0 %v7661_v16  ;;  %v3634_v16 = vld [vmem:[#allocation7 + $0x58] sm:$0xff] }
 0x48b   : > { %3554 = vmatprep.mubr.f32.mxu0 %v8331_v24  ;;  %4634 = vmatpush3.msra.mxu1 %v3634_v16 }
 0x48e   : > { %3555 = vmatmul.mubr.f32.gmra.mxu0 %v7667_v30  ;;  %v3649_v30 = vld [vmem:[#allocation7 + $0xd0] sm:$0xff] }
 0x48f   : > { %3560 = vmatprep.mubr.f32.mxu0 %v8331_v24  ;;  %4635 = vmatprep.subr.mxu1 %v3649_v30 }
 0x490   : > { %4636 = vmatpush3.msra.mxu1 %v3633_v39 }
 0x492   : > { %3561 = vmatmul.mubr.f32.gmra.mxu0 %v7673_v51  ;;  %v3648_v51 = vld [vmem:[#allocation7 + $0xc8] sm:$0xff] }
 0x493   : > { %3566 = vmatprep.mubr.f32.mxu0 %v8331_v24  ;;  %4637 = vmatprep.subr.mxu1 %v3648_v51 }
 0x494   : > { %4638 = vmatpush3.msra.mxu1 %v3632_v45  ;;  %v3096_v45 = vld [vmem:[%s8309_s6] sm:$0x3] }
 0x495   : > { %4639 = vmatprep.subr.mxu1 %v3647_v46 }
 0x496   : > { %3567 = vmatmul.mubr.f32.gmra.mxu0 %v7679_v61  ;;  %4640 = vmatpush3.msra.mxu1 %v3631_v47  ;;  %v3626_v61 = vld [vmem:[#allocation7 + $0x18] sm:$0xff]  ;;  %v7789_v47 = vrot.slane %v3096_v45, %v1567_v53 }
 0x497   : > { %3572 = vmatprep.mubr.f32.mxu0 %v8331_v24  ;;  %4641 = vmatprep.subr.mxu1 %v3646_v49 }
 0x498   : > { %4642 = vmatpush3.msra.mxu1 %v3630_v44 }
 0x499   : > { %4643 = vmatprep.subr.mxu1 %v3645_v58  ;;  %v7797_v58 = vrot.slane %v3096_v45, %v1571_v55 }
 0x49a   : > { %3573 = vmatmul.mubr.f32.gmra.mxu0 %v2915_v18  ;;  %4644 = vmatpush3.msra.mxu1 %v3629_v60 }
 0x49b   : > { %3578 = vmatprep.mubr.f32.mxu0 %v8331_v24  ;;  %4645 = vmatprep.subr.mxu1 %v3644_v5 }
 0x49c   : > { %4646 = vmatpush3.msra.mxu1 %v3628_v25 }
 0x49d   : > { %4647 = vmatprep.subr.mxu1 %v3643_v63 }
 0x49e   : > { %3579 = vmatmul.mubr.f32.gmra.mxu0 %v2917_v17  ;;  %4648 = vmatpush3.msra.mxu1 %v3627_v56 }
 0x49f   : > { %3584 = vmatprep.mubr.f32.mxu0 %v8331_v24  ;;  %4649 = vmatprep.subr.mxu1 %v3642_v19 }
 0x4a0   : > { %4650 = vmatpush3.msra.mxu1 %v3626_v61 }
 0x4a1   : > { %4651 = vmatprep.subr.mxu1 %v3641_v14 }
 0x4a2   : > { %3585 = vmatmul.mubr.f32.gmra.mxu0 %v2919_v41  ;;  %4652 = vmatpush3.msra.mxu1 %v3625_v54 }
 0x4a3   : > { %4653 = vmatprep.subr.mxu1 %v3640_v8 }
 0x4a4   : > { %4654 = vmatpush3.msra.mxu1 %v3624_v21 }
 0x4a5   : > { %4655 = vmatprep.subr.mxu1 %v3639_v27 }
 0x4a6   : > { %4656 = vmatpush3.msra.mxu1 %v3623_v11 }
 0x4e6   : > { %v3174_v62 = vpop.f32.mrf.mxu0  ;;  %v3335_v12 = vpop.f32.mrf.mxu1 }
 0x4e7   : > { %v3175_v5 = vadd.f32 %v3174_v62, %v7789_v47 }
 0x4e8   : > { %v3176_v7 = vpop.f32.mrf.mxu0  ;;  %v3337_v13 = vpop.f32.mrf.mxu1 }
 0x4e9   : > { %v3177_v56 = vadd.f32 %v3176_v7, %v7797_v58  ;;  %v3336_v61 = vadd.f32 %v3335_v12, %v3175_v5 }
 0x4ea   : > { %v3180_v6 = vpop.f32.mrf.mxu0 }
 0x4eb   : > { %v3181_v19 = vadd.f32 %v3180_v6, %v7789_v47  ;;  %v3338_v55 = vadd.f32 %v3337_v13, %v3177_v56 }
 0x4ec   : > { %v3182_v28 = vpop.f32.mrf.mxu0  ;;  %v3341_v22 = vpop.f32.mrf.mxu1 }
 0x4ed   : > { %v3183_v31 = vadd.f32 %v3182_v28, %v7797_v58  ;;  %v3342_v62 = vadd.f32 %v3341_v22, %v3181_v19 }
 0x4ee   : > { %v3186_v18 = vpop.f32.mrf.mxu0  ;;  %v3343_v52 = vpop.f32.mrf.mxu1 }
 0x4ef   : > { %v3187_v11 = vadd.f32 %v3186_v18, %v7789_v47  ;;  %v3344_v6 = vadd.f32 %v3343_v52, %v3183_v31 }
 0x4f0   : > { %v3188_v3 = vpop.f32.mrf.mxu0  ;;  %v3347_v15 = vpop.f32.mrf.mxu1 }
 0x4f1   : > { %v3189_v7 = vadd.f32 %v3188_v3, %v7797_v58  ;;  %v3348_v28 = vadd.f32 %v3347_v15, %v3187_v11 }
 0x4f2   : > { %v7722_v26 = vpop.f32.mrf.mxu0  ;;  %v7732_v4 = vpop.f32.mrf.mxu1 }
 0x4f3   : > { %v3193_v13 = vadd.f32 %v7722_v26, %v7789_v47  ;;  %v3350_v22 = vadd.f32 %v7732_v4, %v3189_v7 }
 0x4f4   : > { %v7724_v57 = vpop.f32.mrf.mxu0  ;;  %v7738_v33 = vpop.f32.mrf.mxu1 }
 0x4f5   : > { %v3195_v18 = vadd.f32 %v7724_v57, %v7797_v58  ;;  %v3354_v31 = vadd.f32 %v7738_v33, %v3193_v13 }
 0x4f6   : > { %v7726_v40 = vpop.f32.mrf.mxu0  ;;  %v7744_v37 = vpop.f32.mrf.mxu1 }
 0x4f7   : > { %v3356_v57 = vadd.f32 %v7744_v37, %v3195_v18 }
 0x4f8   : > { %v7728_v29 = vpop.f32.mrf.mxu0  ;;  %v7750_v38 = vpop.f32.mrf.mxu1 }
 0x4fa   : > { %v7730_v23 = vpop.f32.mrf.mxu0  ;;  %v7756_v35 = vpop.f32.mrf.mxu1 }
 0x4fc   : > { %v7734_v17 = vpop.f32.mrf.mxu0  ;;  %v7762_v20 = vpop.f32.mrf.mxu1 }
 0x4fd   : > { %v3207_v11 = vadd.f32 %v7734_v17, %v7797_v58 }
 0x4fe   : > { %v7736_v32 = vpop.f32.mrf.mxu0  ;;  %v7768_v9 = vpop.f32.mrf.mxu1 }
 0x500   : > { %v7740_v34 = vpop.f32.mrf.mxu0  ;;  %v7774_v16 = vpop.f32.mrf.mxu1 }
 0x501   : > { %v3213_v17 = vadd.f32 %v7740_v34, %v7797_v58 }
 0x502   : > { %v7742_v36 = vpop.f32.mrf.mxu0  ;;  %v7780_v51 = vpop.f32.mrf.mxu1 }
 0x504   : > { %v7746_v10 = vpop.f32.mrf.mxu0  ;;  %v7793_v44 = vpop.f32.mrf.mxu1 }
 0x505   : > { %v3219_v34 = vadd.f32 %v7746_v10, %v7797_v58 }
 0x506   : > { %v7748_v42 = vpop.f32.mrf.mxu0  ;;  %v7804_v63 = vpop.f32.mrf.mxu1 }
 0x508   : > { %v7752_v41 = vpop.f32.mrf.mxu0  ;;  %v7810_v54 = vpop.f32.mrf.mxu1 }
 0x509   : > { %v3225_v10 = vadd.f32 %v7752_v41, %v7797_v58 }
 0x50a   : > { %v7754_v59 = vpop.f32.mrf.mxu0  ;;  %v7814_v24 = vpop.f32.mrf.mxu1 }
 0x50c   : > { %v7758_v1 = vpop.f32.mrf.mxu0 }
 0x50d   : > { %v3231_v41 = vadd.f32 %v7758_v1, %v7797_v58 }
 0x50e   : > { %v7760_v48 = vpop.f32.mrf.mxu0 }
 0x510   : > { %v7764_v50 = vpop.f32.mrf.mxu0 }
 0x511   : > { %v3237_v1 = vadd.f32 %v7764_v50, %v7797_v58 }
 0x512   : > { %v7766_v0 = vpop.f32.mrf.mxu0 }
 0x514   : > { %v7770_v43 = vpop.f32.mrf.mxu0 }
 0x515   : > { %v3243_v50 = vadd.f32 %v7770_v43, %v7797_v58 }
 0x516   : > { %v7772_v2 = vpop.f32.mrf.mxu0 }
 0x518   : > { %v7776_v30 = vpop.f32.mrf.mxu0 }
 0x519   : > { %v3249_v43 = vadd.f32 %v7776_v30, %v7797_v58 }
 0x51a   : > { %v7778_v39 = vpop.f32.mrf.mxu0 }
 0x51c   : > { %v7785_v46 = vpop.f32.mrf.mxu0 }
 0x51d   : > { %v3255_v30 = vadd.f32 %v7785_v46, %v7797_v58 }
 0x51e   : > { %v7791_v49 = vpop.f32.mrf.mxu0 }
 0x520   : > { %v7799_v60 = vpop.f32.mrf.mxu0 }
 0x522   : > { %v7802_v25 = vpop.f32.mrf.mxu0 }
 0x524   : > { %v7807_v53 = vpop.f32.mrf.mxu0 }
 0x525   : > { %8356 = vst [vmem:[#allocation22_spill] sm:$0xff] %v7807_v53 }
 0x526   : > { %v3496_v14 = vpop.f32.mrf.mxu0 }
 0x527   : > { %v3497_v8 = vadd.f32 %v3496_v14, %v3336_v61  ;;  %v7819_v61 = vpop.f32.mrf.mxu1  ;;  %v3199_v14 = vadd.f32 %v7726_v40, %v7789_v47 }
 0x528   : > { %v3498_v21 = vpop.f32.mrf.mxu0 }
 0x529   : > { %v3499_v27 = vadd.f32 %v3498_v21, %v3338_v55  ;;  %v7827_v15 = vpop.f32.mrf.mxu1  ;;  %v3201_v55 = vadd.f32 %v7728_v29, %v7797_v58  ;;  %v3205_v21 = vadd.f32 %v7730_v23, %v7789_v47  ;;  %v3360_v40 = vadd.f32 %v7750_v38, %v3199_v14 }
 0x52a   : > { %v3502_v45 = vpop.f32.mrf.mxu0  ;;  %v3211_v23 = vadd.f32 %v7736_v32, %v7789_v47  ;;  %v3217_v32 = vadd.f32 %v7742_v36, %v7789_v47  ;;  %v3223_v36 = vadd.f32 %v7748_v42, %v7789_v47  ;;  %v3229_v42 = vadd.f32 %v7754_v59, %v7789_v47 }
 0x52b   : > { %5462 = vtanh.f32 %v3499_v27  ;;  %v3503_v12 = vadd.f32 %v3502_v45, %v3342_v62  ;;  %v7835_v33 = vpop.f32.mrf.mxu1  ;;  %v3362_v29 = vadd.f32 %v7756_v35, %v3201_v55  ;;  %v3366_v38 = vadd.f32 %v7762_v20, %v3205_v21 }
 0x52c   : > { %5464 = vtanh.f32 %v3497_v8  ;;  %v3504_v5 = vpop.f32.mrf.mxu0  ;;  %v3368_v35 = vadd.f32 %v7768_v9, %v3207_v11  ;;  %v3372_v20 = vadd.f32 %v7774_v16, %v3211_v23  ;;  %v3374_v9 = vadd.f32 %v7780_v51, %v3213_v17 }
 0x52d   : > { %v3505_v53 = vadd.f32 %v3504_v5, %v3344_v6  ;;  %v7843_v5 = vpop.f32.mrf.mxu1  ;;  %v3378_v16 = vadd.f32 %v7793_v44, %v3217_v32  ;;  %v3380_v51 = vadd.f32 %v7804_v63, %v3219_v34  ;;  %v3384_v44 = vadd.f32 %v7810_v54, %v3223_v36 }
 0x52e   : > { %v3508_v56 = vpop.f32.mrf.mxu0  ;;  %v3386_v63 = vadd.f32 %v7814_v24, %v3225_v10  ;;  %v3235_v59 = vadd.f32 %v7760_v48, %v7789_v47  ;;  %v3390_v54 = vadd.f32 %v7819_v61, %v3229_v42  ;;  %v3392_v24 = vadd.f32 %v7827_v15, %v3231_v41 }
 0x52f   : > { %5466 = vtanh.f32 %v3505_v53  ;;  %v3509_v3 = vadd.f32 %v3508_v56, %v3348_v28  ;;  %v3241_v48 = vadd.f32 %v7766_v0, %v7789_v47  ;;  %v3398_v15 = vadd.f32 %v7843_v5, %v3237_v1 }
 0x530   : > { %5468 = vtanh.f32 %v3503_v12  ;;  %v3510_v52 = vpop.f32.mrf.mxu0  ;;  %v3396_v61 = vadd.f32 %v7835_v33, %v3235_v59  ;;  %v3247_v0 = vadd.f32 %v7772_v2, %v7789_v47  ;;  %v3253_v2 = vadd.f32 %v7778_v39, %v7789_v47 }
 0x531   : > { %v3511_v19 = vadd.f32 %v3510_v52, %v3350_v22  ;;  %v7851_v52 = vpop.f32.mrf.mxu1 }
 0x532   : > { %v3514_v26 = vpop.f32.mrf.mxu0  ;;  %v3402_v33 = vadd.f32 %v7851_v52, %v3241_v48 }
 0x533   : > { %5470 = vtanh.f32 %v3511_v19  ;;  %v3515_v4 = vadd.f32 %v3514_v26, %v3354_v31 }
 0x534   : > { %5472 = vtanh.f32 %v3509_v3  ;;  %v3516_v53 = vpop.f32.mrf.mxu0 }
 0x535   : > { %v3517_v8 = vadd.f32 %v3516_v53, %v3356_v57 }
 0x536   : > { %v3520_v27 = vpop.f32.mrf.mxu0 }
 0x537   : > { %5474 = vtanh.f32 %v3517_v8  ;;  %v3521_v37 = vadd.f32 %v3520_v27, %v3360_v40 }
 0x538   : > { %v5463_v62 = vpop.eup %5462  ;;  %5476 = vtanh.f32 %v3515_v4  ;;  %v3522_v45 = vpop.f32.mrf.mxu0 }
 0x539   : > { %v5465_v7 = vpop.eup %5464  ;;  %v3523_v6 = vadd.f32 %v3522_v45, %v3362_v29  ;;  %3719 = vmatprep.mubr.f32.mxu1 %v5463_v62  ;;  %v7859_v4 = vpop.f32.mrf.mxu1 }
 0x53a   : > { %v3526_v12 = vpop.f32.mrf.mxu0  ;;  %3720 = vmatmul.mubr.f32.vlgmr.msra.gmra.mxu1 %v5465_v7  ;;  %v3404_v5 = vadd.f32 %v7859_v4, %v3243_v50 }
 0x53b   : > { %5478 = vtanh.f32 %v3523_v6  ;;  %v3527_v28 = vadd.f32 %v3526_v12, %v3366_v38  ;;  %v3407_v29 = vpop.f32.mrf.mxu1 }
 0x53c   : > { %v5467_v13 = vpop.eup %5466  ;;  %5480 = vtanh.f32 %v3521_v37  ;;  %v3528_v56 = vpop.f32.mrf.mxu0  ;;  %v3408_v52 = vadd.f32 %v3407_v29, %v3247_v0  ;;  %v3916_v0 = vld [vmem:[%s8312_s9 + $0x78] sm:$0xff] }
 0x53d   : > { %v5469_v18 = vpop.eup %5468  ;;  %v3529_v22 = vadd.f32 %v3528_v56, %v3368_v35  ;;  %3724 = vmatprep.mubr.f32.mxu1 %v5467_v13  ;;  %v3409_v38 = vpop.f32.mrf.mxu1 }
 0x53e   : > { %v3532_v3 = vpop.f32.mrf.mxu0  ;;  %3725 = vmatmul.mubr.f32.gmra.mxu1 %v5469_v18  ;;  %v3410_v10 = vadd.f32 %v3409_v38, %v3249_v43  ;;  %v3914_v43 = vld [vmem:[%s8312_s9 + $0x68] sm:$0xff] }
 0x53f   : > { %5482 = vtanh.f32 %v3529_v22  ;;  %v3533_v14 = vadd.f32 %v3532_v3, %v3372_v20  ;;  %v3413_v18 = vpop.f32.mrf.mxu1 }
 0x540   : > { %v5471_v19 = vpop.eup %5470  ;;  %5484 = vtanh.f32 %v3527_v28  ;;  %v3534_v31 = vpop.f32.mrf.mxu0  ;;  %v3414_v39 = vadd.f32 %v3413_v18, %v3253_v2  ;;  %v3926_v2 = vld [vmem:[%s8312_s9 + $0xc8] sm:$0xff] }
 0x541   : > { %v5473_v26 = vpop.eup %5472  ;;  %v3535_v55 = vadd.f32 %v3534_v31, %v3374_v9  ;;  %3729 = vmatprep.mubr.f32.mxu1 %v5471_v19  ;;  %v3415_v19 = vpop.f32.mrf.mxu1 }
 0x542   : > { %v3538_v57 = vpop.f32.mrf.mxu0  ;;  %3730 = vmatmul.mubr.f32.gmra.mxu1 %v5473_v26  ;;  %v3416_v46 = vadd.f32 %v3415_v19, %v3255_v30  ;;  %v3930_v19 = vld [vmem:[%s8312_s9 + $0xe8] sm:$0xff]  ;;  %v3924_v30 = vld [vmem:[%s8312_s9 + $0xb8] sm:$0xff] }
 0x543   : > { %5486 = vtanh.f32 %v3535_v55  ;;  %v3539_v8 = vadd.f32 %v3538_v57, %v3378_v16  ;;  %v3419_v57 = vpop.f32.mrf.mxu1 }
 0x544   : > { %v5475_v53 = vpop.eup %5474  ;;  %5488 = vtanh.f32 %v3533_v14  ;;  %v3540_v21 = vpop.f32.mrf.mxu0 }
 0x545   : > { %v5477_v40 = vpop.eup %5476  ;;  %v3541_v27 = vadd.f32 %v3540_v21, %v3380_v51  ;;  %3734 = vmatprep.mubr.f32.mxu1 %v5475_v53  ;;  %v3421_v42 = vpop.f32.mrf.mxu1 }
 0x546   : > { %v3544_v11 = vpop.f32.mrf.mxu0  ;;  %3735 = vmatmul.mubr.f32.gmra.mxu1 %v5477_v40  ;;  %v3259_v40 = vadd.f32 %v7791_v49, %v7789_v47 }
 0x547   : > { %5490 = vtanh.f32 %v3541_v27  ;;  %v3545_v37 = vadd.f32 %v3544_v11, %v3384_v44  ;;  %v3261_v44 = vadd.f32 %v7799_v60, %v7797_v58 }
 0x548   : > { %v5479_v62 = vpop.eup %5478  ;;  %5492 = vtanh.f32 %v3539_v8  ;;  %v3546_v45 = vpop.f32.mrf.mxu0  ;;  %v3420_v49 = vadd.f32 %v3419_v57, %v3259_v40  ;;  %v3909_v57 = vld [vmem:[%s8312_s9 + $0x40] sm:$0xff] }
 0x549   : > { %v5481_v7 = vpop.eup %5480  ;;  %v3547_v6 = vadd.f32 %v3546_v45, %v3386_v63  ;;  %3739 = vmatprep.mubr.f32.mxu1 %v5479_v62  ;;  %v3422_v60 = vadd.f32 %v3421_v42, %v3261_v44  ;;  %v3905_v40 = vld [vmem:[%s8312_s9 + $0x20] sm:$0xff]  ;;  %v3904_v42 = vld [vmem:[%s8312_s9 + $0x18] sm:$0xff]  ;;  %v3919_v44 = vld [vmem:[%s8312_s9 + $0x90] sm:$0xff] }
 0x54a   : > { %v3550_v23 = vpop.f32.mrf.mxu0  ;;  %3740 = vmatmul.mubr.f32.gmra.mxu1 %v5481_v7  ;;  %v3425_v7 = vpop.f32.mrf.mxu1 }
 0x54b   : > { %5494 = vtanh.f32 %v3547_v6  ;;  %v3551_v17 = vadd.f32 %v3550_v23, %v3390_v54  ;;  %v8357_v6 = vld [vmem:[#allocation22_spill] sm:$0xff] }
 0x54c   : > { %v5483_v12 = vpop.eup %5482  ;;  %5496 = vtanh.f32 %v3545_v37  ;;  %v3552_v35 = vpop.f32.mrf.mxu0  ;;  %v3265_v37 = vadd.f32 %v7802_v25, %v7789_v47  ;;  %v3267_v59 = vadd.f32 %v8357_v6, %v7797_v58 }
 0x54d   : > { %v5485_v13 = vpop.eup %5484  ;;  %v3553_v28 = vadd.f32 %v3552_v35, %v3392_v24  ;;  %3744 = vmatprep.mubr.f32.mxu1 %v5483_v12 }
 0x54e   : > { %v3556_v56 = vpop.f32.mrf.mxu0  ;;  %3745 = vmatmul.mubr.f32.gmra.mxu1 %v5485_v13  ;;  %v3426_v12 = vadd.f32 %v3425_v7, %v3265_v37 }
 0x54f   : > { %5498 = vtanh.f32 %v3553_v28  ;;  %v3557_v32 = vadd.f32 %v3556_v56, %v3396_v61 }
 0x550   : > { %v5487_v22 = vpop.eup %5486  ;;  %5500 = vtanh.f32 %v3551_v17  ;;  %v3558_v20 = vpop.f32.mrf.mxu0 }
 0x551   : > { %v5489_v3 = vpop.eup %5488  ;;  %v3559_v34 = vadd.f32 %v3558_v20, %v3398_v15  ;;  %3749 = vmatprep.mubr.f32.mxu1 %v5487_v22  ;;  %v3427_v17 = vpop.f32.mrf.mxu1 }
 0x552   : > { %v3562_v9 = vpop.f32.mrf.mxu0  ;;  %3750 = vmatmul.mubr.f32.gmra.mxu1 %v5489_v3  ;;  %v3428_v47 = vadd.f32 %v3427_v17, %v3267_v59  ;;  %v3800_v3 = vld [vmem:[%s8311_s8] sm:$0xff] }
 0x553   : > { %5502 = vtanh.f32 %v3559_v34  ;;  %v3563_v31 = vadd.f32 %v3562_v9, %v3402_v33  ;;  %4957 = vmatprep.mubr.f32.mxu0 %v3800_v3  ;;  %v3932_v34 = vld [vmem:[%s8312_s9 + $0xf8] sm:$0xff]  ;;  %v3931_v33 = vld [vmem:[%s8312_s9 + $0xf0] sm:$0xff] }
 0x554   : > { %v5491_v14 = vpop.eup %5490  ;;  %5504 = vtanh.f32 %v3557_v32  ;;  %v3564_v26 = vpop.f32.mrf.mxu0  ;;  %4727 = vmatprep.subr.mxu1 %v3932_v34  ;;  %v3915_v9 = vld [vmem:[%s8312_s9 + $0x70] sm:$0xff] }
 0x555   : > { %v5493_v55 = vpop.eup %5492  ;;  %v3565_v36 = vadd.f32 %v3564_v26, %v3404_v5  ;;  %3754 = vmatprep.mubr.f32.mxu1 %v5491_v14  ;;  %4728 = vmatpush3.msra.mxu1 %v3916_v0  ;;  %v3929_v5 = vld [vmem:[%s8312_s9 + $0xe0] sm:$0xff]  ;;  %v3912_v26 = vld [vmem:[%s8312_s9 + $0x58] sm:$0xff] }
 0x556   : > { %v3568_v16 = vpop.f32.mrf.mxu0  ;;  %3755 = vmatmul.mubr.f32.gmra.mxu1 %v5493_v55  ;;  %4729 = vmatprep.subr.mxu1 %v3931_v33  ;;  %v3913_v14 = vld [vmem:[%s8312_s9 + $0x60] sm:$0xff]  ;;  %v3927_v55 = vld [vmem:[%s8312_s9 + $0xd0] sm:$0xff] }
 0x557   : > { %5506 = vtanh.f32 %v3565_v36  ;;  %v3569_v51 = vadd.f32 %v3568_v16, %v3408_v52  ;;  %4730 = vmatpush3.msra.mxu1 %v3915_v9  ;;  %v3911_v36 = vld [vmem:[%s8312_s9 + $0x50] sm:$0xff]  ;;  %v3910_v52 = vld [vmem:[%s8312_s9 + $0x48] sm:$0xff]  ;;  %v3925_v16 = vld [vmem:[%s8312_s9 + $0xc0] sm:$0xff] }
 0x558   : > { %v5495_v4 = vpop.eup %5494  ;;  %5508 = vtanh.f32 %v3563_v31  ;;  %v3570_v53 = vpop.f32.mrf.mxu0  ;;  %4731 = vmatprep.subr.mxu1 %v3930_v19  ;;  %v3928_v31 = vld [vmem:[%s8312_s9 + $0xd8] sm:$0xff] }
 0x559   : > { %v5497_v8 = vpop.eup %5496  ;;  %v3571_v21 = vadd.f32 %v3570_v53, %v3410_v10  ;;  %3759 = vmatprep.mubr.f32.mxu1 %v5495_v4  ;;  %4732 = vmatpush3.msra.mxu1 %v3914_v43  ;;  %v3908_v10 = vld [vmem:[%s8312_s9 + $0x38] sm:$0xff]  ;;  %v3923_v4 = vld [vmem:[%s8312_s9 + $0xb0] sm:$0xff]  ;;  %v3922_v53 = vld [vmem:[%s8312_s9 + $0xa8] sm:$0xff] }
 0x55a   : > { %v3574_v27 = vpop.f32.mrf.mxu0  ;;  %3760 = vmatmul.mubr.f32.gmra.mxu1 %v5497_v8  ;;  %4733 = vmatprep.subr.mxu1 %v3929_v5  ;;  %v3906_v8 = vld [vmem:[%s8312_s9 + $0x28] sm:$0xff] }
 0x55b   : > { %5510 = vtanh.f32 %v3571_v21  ;;  %v3575_v29 = vadd.f32 %v3574_v27, %v3414_v39  ;;  %4734 = vmatpush3.msra.mxu1 %v3913_v14  ;;  %v3921_v21 = vld [vmem:[%s8312_s9 + $0xa0] sm:$0xff]  ;;  %v3920_v39 = vld [vmem:[%s8312_s9 + $0x98] sm:$0xff] }
 0x55c   : > { %v5499_v11 = vpop.eup %5498  ;;  %5512 = vtanh.f32 %v3569_v51  ;;  %v3576_v41 = vpop.f32.mrf.mxu0  ;;  %4735 = vmatprep.subr.mxu1 %v3928_v31  ;;  %v3907_v51 = vld [vmem:[%s8312_s9 + $0x30] sm:$0xff] }
 0x55d   : > { %v5501_v63 = vpop.eup %5500  ;;  %v3577_v62 = vadd.f32 %v3576_v41, %v3416_v46  ;;  %3764 = vmatprep.mubr.f32.mxu1 %v5499_v11  ;;  %4736 = vmatpush3.msra.mxu1 %v3912_v26  ;;  %v3903_v11 = vld [vmem:[%s8312_s9 + $0x10] sm:$0xff]  ;;  %v3918_v41 = vld [vmem:[%s8312_s9 + $0x88] sm:$0xff] }
 0x55e   : > { %v3580_v45 = vpop.f32.mrf.mxu0  ;;  %3765 = vmatmul.mubr.f32.gmra.mxu1 %v5501_v63  ;;  %4737 = vmatprep.subr.mxu1 %v3927_v55 }
 0x55f   : > { %5514 = vtanh.f32 %v3577_v62  ;;  %v3581_v23 = vadd.f32 %v3580_v45, %v3420_v49  ;;  %4738 = vmatpush3.msra.mxu1 %v3911_v36  ;;  %v3902_v62 = vld [vmem:[%s8312_s9 + $0x8] sm:$0xff] }
 0x560   : > { %v5503_v54 = vpop.eup %5502  ;;  %5516 = vtanh.f32 %v3575_v29  ;;  %v3582_v38 = vpop.f32.mrf.mxu0  ;;  %4739 = vmatprep.subr.mxu1 %v3926_v2 }
 0x561   : > { %v5505_v1 = vpop.eup %5504  ;;  %v3583_v24 = vadd.f32 %v3582_v38, %v3422_v60  ;;  %3769 = vmatprep.mubr.f32.mxu1 %v5503_v54  ;;  %4740 = vmatpush3.msra.mxu1 %v3910_v52 }
 0x562   : > { %v3586_v35 = vpop.f32.mrf.mxu0  ;;  %3770 = vmatmul.mubr.f32.gmra.mxu1 %v5505_v1  ;;  %4741 = vmatprep.subr.mxu1 %v3925_v16  ;;  %v3801_v16 = vld [vmem:[%s8311_s8 + $0x8] sm:$0xff] }
 0x563   : > { %5518 = vtanh.f32 %v3583_v24  ;;  %v3587_v13 = vadd.f32 %v3586_v35, %v3426_v12  ;;  %4742 = vmatpush3.msra.mxu1 %v3909_v57  ;;  %v3802_v57 = vld [vmem:[%s8311_s8 + $0x10] sm:$0xff] }
 0x564   : > { %v5507_v25 = vpop.eup %5506  ;;  %5520 = vtanh.f32 %v3581_v23  ;;  %v3588_v28 = vpop.f32.mrf.mxu0  ;;  %4743 = vmatprep.subr.mxu1 %v3924_v30  ;;  %v3803_v30 = vld [vmem:[%s8311_s8 + $0x18] sm:$0xff] }
 0x565   : > { %v5509_v58 = vpop.eup %5508  ;;  %v3589_v48 = vadd.f32 %v3588_v28, %v3428_v47  ;;  %3774 = vmatprep.mubr.f32.mxu1 %v5507_v25  ;;  %4744 = vmatpush3.msra.mxu1 %v3908_v10  ;;  %v3804_v10 = vld [vmem:[%s8311_s8 + $0x20] sm:$0xff] }
 0x566   : > { %3775 = vmatmul.mubr.f32.gmra.mxu1 %v5509_v58  ;;  %4745 = vmatprep.subr.mxu1 %v3923_v4  ;;  %v3805_v4 = vld [vmem:[%s8311_s8 + $0x28] sm:$0xff] }
 0x567   : > { %5522 = vtanh.f32 %v3589_v48  ;;  %4746 = vmatpush3.msra.mxu1 %v3907_v51  ;;  %v3964_v51 = vld [vmem:[%s8312_s9 + $0x1f8] sm:$0xff] }
 0x568   : > { %v5511_v61 = vpop.eup %5510  ;;  %5524 = vtanh.f32 %v3587_v13  ;;  %4747 = vmatprep.subr.mxu1 %v3922_v53  ;;  %v3948_v53 = vld [vmem:[%s8312_s9 + $0x178] sm:$0xff] }
 0x569   : > { %v5513_v56 = vpop.eup %5512  ;;  %3779 = vmatprep.mubr.f32.mxu1 %v5511_v61  ;;  %4748 = vmatpush3.msra.mxu1 %v3906_v8  ;;  %v3963_v8 = vld [vmem:[%s8312_s9 + $0x1f0] sm:$0xff] }
 0x56a   : > { %3780 = vmatmul.mubr.f32.gmra.mxu1 %v5513_v56  ;;  %4749 = vmatprep.subr.mxu1 %v3921_v21  ;;  %v3947_v21 = vld [vmem:[%s8312_s9 + $0x170] sm:$0xff] }
 0x56b   : > { %4750 = vmatpush3.msra.mxu1 %v3905_v40  ;;  %v3962_v40 = vld [vmem:[%s8312_s9 + $0x1e8] sm:$0xff] }
 0x56c   : > { %v5515_v18 = vpop.eup %5514  ;;  %4751 = vmatprep.subr.mxu1 %v3920_v39  ;;  %v3946_v39 = vld [vmem:[%s8312_s9 + $0x168] sm:$0xff] }
 0x56d   : > { %v5517_v50 = vpop.eup %5516  ;;  %3784 = vmatprep.mubr.f32.mxu1 %v5515_v18  ;;  %4752 = vmatpush3.msra.mxu1 %v3904_v42  ;;  %v3945_v42 = vld [vmem:[%s8312_s9 + $0x160] sm:$0xff] }
 0x56e   : > { %3785 = vmatmul.mubr.f32.gmra.mxu1 %v5517_v50  ;;  %4753 = vmatprep.subr.mxu1 %v3919_v44  ;;  %v3960_v44 = vld [vmem:[%s8312_s9 + $0x1d8] sm:$0xff] }
 0x56f   : > { %4754 = vmatpush3.msra.mxu1 %v3903_v11  ;;  %v3959_v11 = vld [vmem:[%s8312_s9 + $0x1d0] sm:$0xff] }
 0x570   : > { %v5519_v15 = vpop.eup %5518  ;;  %4755 = vmatprep.subr.mxu1 %v3918_v41  ;;  %v3958_v41 = vld [vmem:[%s8312_s9 + $0x1c8] sm:$0xff] }
 0x571   : > { %v5521_v22 = vpop.eup %5520  ;;  %3789 = vmatprep.mubr.f32.mxu1 %v5519_v15  ;;  %4756 = vmatpush3.msra.mxu1 %v3902_v62  ;;  %v3957_v62 = vld [vmem:[%s8312_s9 + $0x1c0] sm:$0xff] }
 0x572   : > { %3790 = vmatmul.mubr.f32.gmra.mxu1 %v5521_v22 }
 0x574   : > { %v5523_v32 = vpop.eup %5522 }
 0x575   : > { %v5525_v20 = vpop.eup %5524  ;;  %3794 = vmatprep.mubr.f32.mxu1 %v5523_v32 }
 0x576   : > { %3795 = vmatmul.mubr.f32.gmra.mxu1 %v5525_v20 }
 0x5fa   : > { %v4657_v27 = vpop.f32.mrf.mxu1 }
 0x5fc   : > { %v4658_v46 = vpop.f32.mrf.mxu1 }
 0x5fd   : > { %v7987_v29 = vadd.f32 %v4658_v46, %v4657_v27  ;;  %v3961_v27 = vld [vmem:[%s8312_s9 + $0x1e0] sm:$0xff]  ;;  %v3944_v46 = vld [vmem:[%s8312_s9 + $0x158] sm:$0xff] }
 0x5fe   : > { %v4660_v63 = vpop.f32.mrf.mxu1 }
 0x600   : > { %v4661_v37 = vpop.f32.mrf.mxu1 }
 0x601   : > { %v7995_v49 = vadd.f32 %v4661_v37, %v4660_v63  ;;  %v3942_v63 = vld [vmem:[%s8312_s9 + $0x148] sm:$0xff]  ;;  %v3941_v37 = vld [vmem:[%s8312_s9 + $0x140] sm:$0xff] }
 0x602   : > { %v4663_v45 = vpop.f32.mrf.mxu1 }
 0x604   : > { %v4664_v7 = vpop.f32.mrf.mxu1 }
 0x605   : > { %v7997_v6 = vadd.f32 %v4664_v7, %v4663_v45  ;;  %v3940_v45 = vld [vmem:[%s8312_s9 + $0x138] sm:$0xff]  ;;  %v3955_v7 = vld [vmem:[%s8312_s9 + $0x1b0] sm:$0xff] }
 0x606   : > { %v4666_v59 = vpop.f32.mrf.mxu1 }
 0x608   : > { %v4667_v60 = vpop.f32.mrf.mxu1 }
 0x609   : > { %v4668_v54 = vadd.f32 %v4667_v60, %v4666_v59  ;;  %v3954_v59 = vld [vmem:[%s8312_s9 + $0x1a8] sm:$0xff] }
 0x60a   : > { %v4669_v23 = vpop.f32.mrf.mxu1  ;;  %v3938_v60 = vld [vmem:[%s8312_s9 + $0x128] sm:$0xff] }
 0x60c   : > { %v4670_v38 = vpop.f32.mrf.mxu1 }
 0x60d   : > { %v4671_v1 = vadd.f32 %v4670_v38, %v4669_v23  ;;  %v3937_v23 = vld [vmem:[%s8312_s9 + $0x120] sm:$0xff] }
 0x60e   : > { %v4672_v24 = vpop.f32.mrf.mxu1  ;;  %v3917_v38 = vld [vmem:[%s8312_s9 + $0x80] sm:$0xff] }
 0x60f   : > { %4757 = vmatprep.subr.mxu1 %v3917_v38  ;;  %v4215_v38 = vld [vmem:[#allocation8] sm:$0xff] }
 0x610   : > { %v4673_v12 = vpop.f32.mrf.mxu1 }
 0x611   : > { %v4674_v52 = vadd.f32 %v4673_v12, %v4672_v24  ;;  %v3952_v24 = vld [vmem:[%s8312_s9 + $0x198] sm:$0xff] }
 0x612   : > { %v4675_v17 = vpop.f32.mrf.mxu1  ;;  %v3936_v12 = vld [vmem:[%s8312_s9 + $0x118] sm:$0xff] }
 0x614   : > { %v4676_v35 = vpop.f32.mrf.mxu1 }
 0x615   : > { %v4677_v2 = vadd.f32 %v4676_v35, %v4675_v17  ;;  %v3996_v17 = vld [vmem:[%s8312_s9 + $0x2f8] sm:$0xff]  ;;  %v3951_v35 = vld [vmem:[%s8312_s9 + $0x190] sm:$0xff] }
 0x616   : > { %v4678_v47 = vpop.f32.mrf.mxu1 }
 0x618   : > { %v4679_v25 = vpop.f32.mrf.mxu1 }
 0x619   : > { %v4680_v36 = vadd.f32 %v4679_v25, %v4678_v47  ;;  %v3935_v47 = vld [vmem:[%s8312_s9 + $0x110] sm:$0xff]  ;;  %v3950_v25 = vld [vmem:[%s8312_s9 + $0x188] sm:$0xff] }
 0x61a   : > { %v4681_v13 = vpop.f32.mrf.mxu1 }
 0x61c   : > { %v4682_v28 = vpop.f32.mrf.mxu1 }
 0x61d   : > { %v4683_v55 = vadd.f32 %v4682_v28, %v4681_v13  ;;  %v3934_v13 = vld [vmem:[%s8312_s9 + $0x108] sm:$0xff]  ;;  %v3949_v28 = vld [vmem:[%s8312_s9 + $0x180] sm:$0xff] }
 0x61e   : > { %v4684_v58 = vpop.f32.mrf.mxu1 }
 0x620   : > { %v4685_v48 = vpop.f32.mrf.mxu1 }
 0x621   : > { %v4686_v26 = vadd.f32 %v4685_v48, %v4684_v58  ;;  %v3933_v58 = vld [vmem:[%s8312_s9 + $0x100] sm:$0xff]  ;;  %v8358_v48 = vmov 0.0  }
 0x622   : > { %v4687_v61 = vpop.f32.mrf.mxu1 }
 0x624   : > { %v4688_v56 = vpop.f32.mrf.mxu1 }
 0x625   : > { %v4689_v31 = vadd.f32 %v4688_v56, %v4687_v61  ;;  %v3980_v56 = vld [vmem:[%s8312_s9 + $0x278] sm:$0xff] }
 0x626   : > { %v4690_v18 = vpop.f32.mrf.mxu1 }
 0x628   : > { %v4691_v50 = vpop.f32.mrf.mxu1 }
 0x629   : > { %v4692_v14 = vadd.f32 %v4691_v50, %v4690_v18  ;;  %v3995_v50 = vld [vmem:[%s8312_s9 + $0x2f0] sm:$0xff] }
 0x62a   : > { %v4693_v15 = vpop.f32.mrf.mxu1 }
 0x62c   : > { %v4694_v22 = vpop.f32.mrf.mxu1 }
 0x62d   : > { %v4695_v5 = vadd.f32 %v4694_v22, %v4693_v15  ;;  %v3979_v15 = vld [vmem:[%s8312_s9 + $0x270] sm:$0xff]  ;;  %v3994_v22 = vld [vmem:[%s8312_s9 + $0x2e8] sm:$0xff] }
 0x62e   : > { %v4696_v32 = vpop.f32.mrf.mxu1 }
 0x630   : > { %v4697_v20 = vpop.f32.mrf.mxu1 }
 0x631   : > { %v4698_v43 = vadd.f32 %v4697_v20, %v4696_v32  ;;  %v3978_v20 = vld [vmem:[%s8312_s9 + $0x268] sm:$0xff] }
 0x632   : > { %v4699_v3 = vpop.f32.mrf.mxu1 }
 0x634   : > { %v4700_v34 = vpop.f32.mrf.mxu1 }
 0x635   : > { %v4701_v19 = vadd.f32 %v4700_v34, %v4699_v3  ;;  %v4230_v3 = vld [vmem:[#allocation8 + $0x78] sm:$0xff] }
 0x636   : > { %v4702_v0 = vpop.f32.mrf.mxu1  ;;  %v3993_v34 = vld [vmem:[%s8312_s9 + $0x2e0] sm:$0xff] }
 0x638   : > { %v4703_v33 = vpop.f32.mrf.mxu1 }
 0x639   : > { %v4704_v9 = vadd.f32 %v4703_v33, %v4702_v0  ;;  %v3977_v33 = vld [vmem:[%s8312_s9 + $0x260] sm:$0xff] }
 0x63b   : > { %4925 = vmatprep.subr.mxu0 %v4704_v9 }
 0x63c   : > { %4926 = vmatpush3.msra.mxu0 %v4704_v9  ;;  %v3992_v9 = vld [vmem:[%s8312_s9 + $0x2d8] sm:$0xff] }
 0x63d   : > { %4927 = vmatprep.subr.mxu0 %v4701_v19 }
 0x63e   : > { %4928 = vmatpush3.msra.mxu0 %v4701_v19 }
 0x63f   : > { %4929 = vmatprep.subr.mxu0 %v4698_v43 }
 0x640   : > { %4930 = vmatpush3.msra.mxu0 %v4698_v43  ;;  %v4229_v43 = vld [vmem:[#allocation8 + $0x70] sm:$0xff] }
 0x641   : > { %4931 = vmatprep.subr.mxu0 %v4695_v5 }
 0x642   : > { %4932 = vmatpush3.msra.mxu0 %v4695_v5  ;;  %v3976_v5 = vld [vmem:[%s8312_s9 + $0x258] sm:$0xff] }
 0x643   : > { %4933 = vmatprep.subr.mxu0 %v4692_v14 }
 0x644   : > { %4934 = vmatpush3.msra.mxu0 %v4692_v14  ;;  %v3991_v14 = vld [vmem:[%s8312_s9 + $0x2d0] sm:$0xff] }
 0x645   : > { %4935 = vmatprep.subr.mxu0 %v4689_v31 }
 0x646   : > { %4936 = vmatpush3.msra.mxu0 %v4689_v31  ;;  %v4228_v31 = vld [vmem:[#allocation8 + $0x68] sm:$0xff] }
 0x647   : > { %4937 = vmatprep.subr.mxu0 %v4686_v26 }
 0x648   : > { %4938 = vmatpush3.msra.mxu0 %v4686_v26  ;;  %v3975_v26 = vld [vmem:[%s8312_s9 + $0x250] sm:$0xff] }
 0x649   : > { %4939 = vmatprep.subr.mxu0 %v4683_v55 }
 0x64a   : > { %4940 = vmatpush3.msra.mxu0 %v4683_v55  ;;  %v3990_v55 = vld [vmem:[%s8312_s9 + $0x2c8] sm:$0xff] }
 0x64b   : > { %4941 = vmatprep.subr.mxu0 %v4680_v36 }
 0x64c   : > { %4942 = vmatpush3.msra.mxu0 %v4680_v36  ;;  %v3974_v36 = vld [vmem:[%s8312_s9 + $0x248] sm:$0xff] }
 0x64d   : > { %4943 = vmatprep.subr.mxu0 %v4677_v2 }
 0x64e   : > { %4944 = vmatpush3.msra.mxu0 %v4677_v2  ;;  %v3989_v2 = vld [vmem:[%s8312_s9 + $0x2c0] sm:$0xff] }
 0x64f   : > { %4945 = vmatprep.subr.mxu0 %v4674_v52 }
 0x650   : > { %4946 = vmatpush3.msra.mxu0 %v4674_v52  ;;  %v3973_v52 = vld [vmem:[%s8312_s9 + $0x240] sm:$0xff] }
 0x651   : > { %4947 = vmatprep.subr.mxu0 %v4671_v1 }
 0x652   : > { %4948 = vmatpush3.msra.mxu0 %v4671_v1  ;;  %v3901_v1 = vld [vmem:[%s8312_s9] sm:$0xff] }
 0x653   : > { %4949 = vmatprep.subr.mxu0 %v4668_v54  ;;  %4758 = vmatpush3.msra.mxu1 %v3901_v1  ;;  %v4324_v1 = vld [vmem:[#allocation10 + $0x78] sm:$0xff] }
 0x654   : > { %4950 = vmatpush3.msra.mxu0 %v4668_v54  ;;  %v3953_v54 = vld [vmem:[%s8312_s9 + $0x1a0] sm:$0xff]  ;;  %4797 = vmatprep.subr.mxu1 %v3996_v17  ;;  %v4321_v17 = vld [vmem:[#allocation10 + $0x60] sm:$0xff] }
 0x655   : > { %4951 = vmatprep.subr.mxu0 %v7997_v6 }
 0x656   : > { %4952 = vmatpush3.msra.mxu0 %v7997_v6  ;;  %v3939_v6 = vld [vmem:[%s8312_s9 + $0x130] sm:$0xff] }
 0x657   : > { %4953 = vmatprep.subr.mxu0 %v7995_v49 }
 0x658   : > { %4954 = vmatpush3.msra.mxu0 %v7995_v49  ;;  %v3956_v49 = vld [vmem:[%s8312_s9 + $0x1b8] sm:$0xff] }
 0x659   : > { %4955 = vmatprep.subr.mxu0 %v7987_v29 }
 0x65a   : > { %4956 = vmatpush3.msra.mxu0 %v7987_v29  ;;  %v3943_v29 = vld [vmem:[%s8312_s9 + $0x150] sm:$0xff] }
 0x65b   : > { %4958 = vmatmul.mubr.f32.vlgmr.msra.gmra.mxu0 %v3801_v16  ;;  %4762 = vmatprep.subr.mxu0 %v3964_v51  ;;  %v3988_v16 = vld [vmem:[%s8312_s9 + $0x2b8] sm:$0xff]  ;;  %v3970_v51 = vld [vmem:[%s8312_s9 + $0x228] sm:$0xff] }
 0x65c   : > { %4960 = vmatprep.mubr.f32.mxu0 %v3802_v57  ;;  %4763 = vmatpush3.msra.mxu0 %v3948_v53  ;;  %v3972_v57 = vld [vmem:[%s8312_s9 + $0x238] sm:$0xff]  ;;  %v3985_v53 = vld [vmem:[%s8312_s9 + $0x2a0] sm:$0xff] }
 0x65d   : > { %4764 = vmatprep.subr.mxu0 %v3963_v8  ;;  %v3969_v8 = vld [vmem:[%s8312_s9 + $0x220] sm:$0xff] }
 0x65e   : > { %4765 = vmatpush3.msra.mxu0 %v3947_v21  ;;  %v3984_v21 = vld [vmem:[%s8312_s9 + $0x298] sm:$0xff] }
 0x65f   : > { %4961 = vmatmul.mubr.f32.gmra.mxu0 %v3803_v30  ;;  %4766 = vmatprep.subr.mxu0 %v3962_v40  ;;  %v3987_v30 = vld [vmem:[%s8312_s9 + $0x2b0] sm:$0xff]  ;;  %v3968_v40 = vld [vmem:[%s8312_s9 + $0x218] sm:$0xff] }
 0x660   : > { %4963 = vmatprep.mubr.f32.mxu0 %v3804_v10  ;;  %4767 = vmatpush3.msra.mxu0 %v3946_v39  ;;  %v3971_v10 = vld [vmem:[%s8312_s9 + $0x230] sm:$0xff] }
 0x661   : > { %4768 = vmatprep.subr.mxu0 %v3961_v27  ;;  %v3983_v39 = vld [vmem:[%s8312_s9 + $0x290] sm:$0xff] }
 0x662   : > { %4769 = vmatpush3.msra.mxu0 %v3945_v42  ;;  %v3967_v27 = vld [vmem:[%s8312_s9 + $0x210] sm:$0xff]  ;;  %v3982_v42 = vld [vmem:[%s8312_s9 + $0x288] sm:$0xff] }
 0x663   : > { %4964 = vmatmul.mubr.f32.gmra.mxu0 %v3805_v4  ;;  %4770 = vmatprep.subr.mxu0 %v3960_v44  ;;  %v3986_v4 = vld [vmem:[%s8312_s9 + $0x2a8] sm:$0xff] }
 0x664   : > { %4771 = vmatpush3.msra.mxu0 %v3944_v46  ;;  %v3966_v44 = vld [vmem:[%s8312_s9 + $0x208] sm:$0xff]  ;;  %v3981_v46 = vld [vmem:[%s8312_s9 + $0x280] sm:$0xff] }
 0x665   : > { %4772 = vmatprep.subr.mxu0 %v3959_v11  ;;  %v3965_v11 = vld [vmem:[%s8312_s9 + $0x200] sm:$0xff] }
 0x666   : > { %4773 = vmatpush3.msra.mxu0 %v3943_v29 }
 0x667   : > { %4774 = vmatprep.subr.mxu0 %v3958_v41  ;;  %v4227_v41 = vld [vmem:[#allocation8 + $0x60] sm:$0xff] }
 0x668   : > { %4775 = vmatpush3.msra.mxu0 %v3942_v63  ;;  %v4226_v63 = vld [vmem:[#allocation8 + $0x58] sm:$0xff] }
 0x669   : > { %4776 = vmatprep.subr.mxu0 %v3957_v62  ;;  %v4225_v62 = vld [vmem:[#allocation8 + $0x50] sm:$0xff] }
 0x66a   : > { %4777 = vmatpush3.msra.mxu0 %v3941_v37  ;;  %v4224_v37 = vld [vmem:[#allocation8 + $0x48] sm:$0xff] }
 0x66b   : > { %4778 = vmatprep.subr.mxu0 %v3956_v49  ;;  %v4223_v49 = vld [vmem:[#allocation8 + $0x40] sm:$0xff] }
 0x66c   : > { %4779 = vmatpush3.msra.mxu0 %v3940_v45  ;;  %v4222_v45 = vld [vmem:[#allocation8 + $0x38] sm:$0xff] }
 0x66d   : > { %4780 = vmatprep.subr.mxu0 %v3955_v7  ;;  %v4221_v7 = vld [vmem:[#allocation8 + $0x30] sm:$0xff] }
 0x66e   : > { %4781 = vmatpush3.msra.mxu0 %v3939_v6  ;;  %v4220_v6 = vld [vmem:[#allocation8 + $0x28] sm:$0xff] }
 0x66f   : > { %4782 = vmatprep.subr.mxu0 %v3954_v59  ;;  %v4219_v59 = vld [vmem:[#allocation8 + $0x20] sm:$0xff] }
 0x670   : > { %4783 = vmatpush3.msra.mxu0 %v3938_v60  ;;  %v4218_v60 = vld [vmem:[#allocation8 + $0x18] sm:$0xff] }
 0x671   : > { %4784 = vmatprep.subr.mxu0 %v3953_v54  ;;  %v4217_v54 = vld [vmem:[#allocation8 + $0x10] sm:$0xff] }
 0x672   : > { %4785 = vmatpush3.msra.mxu0 %v3937_v23  ;;  %v4216_v23 = vld [vmem:[#allocation8 + $0x8] sm:$0xff] }
 0x673   : > { %4786 = vmatprep.subr.mxu0 %v3952_v24  ;;  %v4323_v24 = vld [vmem:[#allocation10 + $0x70] sm:$0xff] }
 0x674   : > { %4787 = vmatpush3.msra.mxu0 %v3936_v12  ;;  %v4322_v12 = vld [vmem:[#allocation10 + $0x68] sm:$0xff] }
 0x675   : > { %4788 = vmatprep.subr.mxu0 %v3951_v35  ;;  %v4320_v35 = vld [vmem:[#allocation10 + $0x58] sm:$0xff] }
 0x676   : > { %4789 = vmatpush3.msra.mxu0 %v3935_v47  ;;  %v4319_v47 = vld [vmem:[#allocation10 + $0x50] sm:$0xff] }
 0x677   : > { %4790 = vmatprep.subr.mxu0 %v3950_v25  ;;  %v4318_v25 = vld [vmem:[#allocation10 + $0x48] sm:$0xff] }
 0x678   : > { %4791 = vmatpush3.msra.mxu0 %v3934_v13 }
 0x679   : > { %4792 = vmatprep.subr.mxu0 %v3949_v28 }
 0x67a   : > { %4793 = vmatpush3.msra.mxu0 %v3933_v58 }
 0x67b   : > { %4966 = vmatprep.subr.mxu0 %v8358_v48 }
 0x71b   : > { %v4959_v61 = vpop.f32.mrf.mxu0 }
 0x71c   : > { %4068 = vmatprep.mubr.f32.mxu1 %v4959_v61 }
 0x71d   : > { %v3872_v18 = vpop.f32.mrf.mxu0 }
 0x71e   : > { %4069 = vmatmul.mubr.f32.vlgmr.msra.gmra.mxu1 %v3872_v18  ;;  %v4597_v18 = vld [vmem:[%s8313_s10] ss:$0 sm:$0xff] }
 0x71f   : > { %4798 = vmatpush3.msra.mxu1 %v3980_v56  ;;  %v4962_v32 = vpop.f32.mrf.mxu0 }
 0x720   : > { %4799 = vmatprep.subr.mxu1 %v3995_v50  ;;  %4138 = vmatprep.mubr.f32.mxu0 %v4962_v32 }
 0x721   : > { %4800 = vmatpush3.msra.mxu1 %v3979_v15  ;;  %v3882_v0 = vpop.f32.mrf.mxu0 }
 0x722   : > { %4801 = vmatprep.subr.mxu1 %v3994_v22  ;;  %4139 = vmatmul.mubr.f32.vlgmr.msra.gmra.mxu0 %v3882_v0 }
 0x723   : > { %4802 = vmatpush3.msra.mxu1 %v3978_v20  ;;  %v4965_v19 = vpop.f32.mrf.mxu0  ;;  %4967 = vmatpush3.msra.mxu0 %v4230_v3 }
 0x724   : > { %4803 = vmatprep.subr.mxu1 %v3993_v34  ;;  %4208 = vmatprep.mubr.f32.mxu1 %v4965_v19  ;;  %v4315_v19 = vld [vmem:[#allocation10 + $0x30] sm:$0xff] }
 0x725   : > { %4804 = vmatpush3.msra.mxu1 %v3977_v33  ;;  %4968 = vmatprep.subr.mxu0 %v8358_v48  ;;  %v3892_v29 = vpop.f32.mrf.mxu0  ;;  %v4317_v33 = vld [vmem:[#allocation10 + $0x40] sm:$0xff] }
 0x726   : > { %4805 = vmatprep.subr.mxu1 %v3992_v9  ;;  %4969 = vmatpush3.msra.mxu0 %v4229_v43  ;;  %v4316_v9 = vld [vmem:[#allocation10 + $0x38] sm:$0xff]  ;;  %v4314_v43 = vld [vmem:[#allocation10 + $0x28] sm:$0xff] }
 0x727   : > { %4806 = vmatpush3.msra.mxu1 %v3976_v5  ;;  %4970 = vmatprep.subr.mxu0 %v8358_v48  ;;  %v4313_v5 = vld [vmem:[#allocation10 + $0x20] sm:$0xff] }
 0x728   : > { %4807 = vmatprep.subr.mxu1 %v3991_v14  ;;  %4971 = vmatpush3.msra.mxu0 %v4228_v31  ;;  %v4312_v14 = vld [vmem:[#allocation10 + $0x18] sm:$0xff]  ;;  %v4311_v31 = vld [vmem:[#allocation10 + $0x10] sm:$0xff] }
 0x729   : > { %4808 = vmatpush3.msra.mxu1 %v3975_v26  ;;  %4972 = vmatprep.subr.mxu0 %v8358_v48  ;;  %v4310_v26 = vld [vmem:[#allocation10 + $0x8] sm:$0xff] }
 0x72a   : > { %4809 = vmatprep.subr.mxu1 %v3990_v55  ;;  %4998 = vmatprep.mubr.msk.f32.mxu0 %vm5764_vm9, %v8358_v48  ;;  %v4309_v55 = vld [vmem:[#allocation10] sm:$0xff] }
 0x72b   : > { %4810 = vmatpush3.msra.mxu1 %v3974_v36  ;;  %4973 = vmatpush3.msra.mxu0 %v4227_v41  ;;  %v4598_v36 = vld [vmem:[%s8315_s12] ss:$0 sm:$0xff] }
 0x72c   : > { %4811 = vmatprep.subr.mxu1 %v3989_v2  ;;  %4974 = vmatprep.subr.mxu0 %v8358_v48 }
 0x72d   : > { %4812 = vmatpush3.msra.mxu1 %v3973_v52  ;;  %4975 = vmatpush3.msra.mxu0 %v4226_v63 }
 0x72e   : > { %4813 = vmatprep.subr.mxu1 %v3988_v16  ;;  %4976 = vmatprep.subr.mxu0 %v8358_v48 }
 0x72f   : > { %4814 = vmatpush3.msra.mxu1 %v3972_v57  ;;  %4977 = vmatpush3.msra.mxu0 %v4225_v62 }
 0x730   : > { %4815 = vmatprep.subr.mxu1 %v3987_v30  ;;  %4978 = vmatprep.subr.mxu0 %v8358_v48  ;;  %v4599_v30 = vld [vmem:[%s8359_s25] ss:$0 sm:$0xff] }
 0x731   : > { %4816 = vmatpush3.msra.mxu1 %v3971_v10  ;;  %4979 = vmatpush3.msra.mxu0 %v4224_v37 }
 0x732   : > { %4817 = vmatprep.subr.mxu1 %v3986_v4  ;;  %4980 = vmatprep.subr.mxu0 %v8358_v48 }
 0x733   : > { %4818 = vmatpush3.msra.mxu1 %v3970_v51  ;;  %4981 = vmatpush3.msra.mxu0 %v4223_v49 }
 0x734   : > { %4819 = vmatprep.subr.mxu1 %v3985_v53  ;;  %4982 = vmatprep.subr.mxu0 %v8358_v48 }
 0x735   : > { %4820 = vmatpush3.msra.mxu1 %v3969_v8  ;;  %4983 = vmatpush3.msra.mxu0 %v4222_v45 }
 0x736   : > { %4821 = vmatprep.subr.mxu1 %v3984_v21  ;;  %4984 = vmatprep.subr.mxu0 %v8358_v48 }
 0x737   : > { %4822 = vmatpush3.msra.mxu1 %v3968_v40  ;;  %4985 = vmatpush3.msra.mxu0 %v4221_v7 }
 0x738   : > { %4823 = vmatprep.subr.mxu1 %v3983_v39  ;;  %4986 = vmatprep.subr.mxu0 %v8358_v48 }
 0x739   : > { %4824 = vmatpush3.msra.mxu1 %v3967_v27  ;;  %4987 = vmatpush3.msra.mxu0 %v4220_v6 }
 0x73a   : > { %4825 = vmatprep.subr.mxu1 %v3982_v42  ;;  %4988 = vmatprep.subr.mxu0 %v8358_v48 }
 0x73b   : > { %4826 = vmatpush3.msra.mxu1 %v3966_v44  ;;  %4989 = vmatpush3.msra.mxu0 %v4219_v59 }
 0x73c   : > { %4827 = vmatprep.subr.mxu1 %v3981_v46  ;;  %4990 = vmatprep.subr.mxu0 %v8358_v48 }
 0x73d   : > { %4828 = vmatpush3.msra.mxu1 %v3965_v11  ;;  %4991 = vmatpush3.msra.mxu0 %v4218_v60 }
 0x73e   : > { %4209 = vmatmul.mubr.f32.vlgmr.msra.gmra.mxu1 %v3892_v29  ;;  %5001 = vmatprep.subr.mxu1 %v8358_v48 }
 0x73f   : > { %5033 = vmatprep.mubr.msk.f32.mxu1 %vm5764_vm9, %v8358_v48  ;;  %4992 = vmatprep.subr.mxu0 %v8358_v48 }
 0x740   : > { %4993 = vmatpush3.msra.mxu0 %v4217_v54  ;;  %5002 = vmatpush3.msra.mxu1 %v4324_v1 }
 0x741   : > { %4994 = vmatprep.subr.mxu0 %v8358_v48  ;;  %5003 = vmatprep.subr.mxu1 %v8358_v48 }
 0x742   : > { %4995 = vmatpush3.msra.mxu0 %v4216_v23  ;;  %5004 = vmatpush3.msra.mxu1 %v4323_v24 }
 0x743   : > { %4996 = vmatprep.subr.mxu0 %v8358_v48  ;;  %5005 = vmatprep.subr.mxu1 %v8358_v48 }
 0x744   : > { %4997 = vmatpush3.msra.mxu0 %v4215_v38  ;;  %5006 = vmatpush3.msra.mxu1 %v4322_v12 }
 0x745   : > { %5007 = vmatprep.subr.mxu1 %v8358_v48 }
 0x746   : > { %5008 = vmatpush3.msra.mxu1 %v4321_v17 }
 0x747   : > { %5009 = vmatprep.subr.mxu1 %v8358_v48 }
 0x748   : > { %5010 = vmatpush3.msra.mxu1 %v4320_v35 }
 0x749   : > { %5011 = vmatprep.subr.mxu1 %v8358_v48 }
 0x74a   : > { %5012 = vmatpush3.msra.mxu1 %v4319_v47 }
 0x74b   : > { %5013 = vmatprep.subr.mxu1 %v8358_v48 }
 0x74c   : > { %5014 = vmatpush3.msra.mxu1 %v4318_v25 }
 0x74d   : > { %5015 = vmatprep.subr.mxu1 %v8358_v48 }
 0x74e   : > { %5016 = vmatpush3.msra.mxu1 %v4317_v33 }
 0x74f   : > { %5017 = vmatprep.subr.mxu1 %v8358_v48 }
 0x750   : > { %5018 = vmatpush3.msra.mxu1 %v4316_v9 }
 0x751   : > { %5019 = vmatprep.subr.mxu1 %v8358_v48 }
 0x752   : > { %5020 = vmatpush3.msra.mxu1 %v4315_v19 }
 0x753   : > { %5021 = vmatprep.subr.mxu1 %v8358_v48 }
 0x754   : > { %5022 = vmatpush3.msra.mxu1 %v4314_v43 }
 0x755   : > { %5023 = vmatprep.subr.mxu1 %v8358_v48 }
 0x756   : > { %5024 = vmatpush3.msra.mxu1 %v4313_v5 }
 0x757   : > { %5025 = vmatprep.subr.mxu1 %v8358_v48 }
 0x758   : > { %5026 = vmatpush3.msra.mxu1 %v4312_v14 }
 0x759   : > { %5027 = vmatprep.subr.mxu1 %v8358_v48 }
 0x75a   : > { %5028 = vmatpush3.msra.mxu1 %v4311_v31 }
 0x75b   : > { %5029 = vmatprep.subr.mxu1 %v8358_v48 }
 0x75c   : > { %5030 = vmatpush3.msra.mxu1 %v4310_v26 }
 0x75d   : > { %5031 = vmatprep.subr.mxu1 %v8358_v48 }
 0x75e   : > { %5032 = vmatpush3.msra.mxu1 %v4309_v55 }
 0x7de   : > { %v4759_v13 = vpop.f32.mrf.mxu1 }
 0x7e0   : > { %v4760_v58 = vpop.f32.mrf.mxu1 }
 0x7e1   : > { %v4761_v56 = vadd.f32 %v4760_v58, %v4759_v13 }
 0x7e2   : > { %v4794_v28 = vpop.f32.mrf.mxu0 }
 0x7e3   : > { %v4071_v22 = vadd.f32 %v4761_v56, %v4597_v18 }
 0x7e4   : > { %v4795_v61 = vpop.f32.mrf.mxu0 }
 0x7e5   : > { %v4796_v50 = vadd.f32 %v4795_v61, %v4794_v28 }
 0x7e7   : > { %v4141_v20 = vadd.f32 %v4796_v50, %v4071_v22 }
 0x7fe   : > { %v4829_v15 = vpop.f32.mrf.mxu1 }
 0x800   : > { %v4830_v32 = vpop.f32.mrf.mxu1 }
 0x801   : > { %v4831_v3 = vadd.f32 %v4830_v32, %v4829_v15 }
 0x803   : > { %v4211_v34 = vadd.f32 %v4831_v3, %v4141_v20 }
 0x805   : > { %5526 = vtanh.f32 %v4211_v34 }
 0x812   : > { %v5527_v0 = vpop.eup %5526 }
 0x813   : > { %4999 = vmatmul.mubr.f32.vlgmr.msra.gmra.mxu0 %v5527_v0 }
 0x8d3   : > { %v4304_v2 = vpop.f32.mrf.mxu0 }
 0x8d4   : > { %v4305_v52 = vadd.f32 %v4598_v36, %v4304_v2 }
 0x8d5   : > { %v5000_v16 = vpop.f32.mrf.mxu0 }
 0x8d6   : > { %5528 = vtanh.f32 %v4305_v52 }
 0x8e3   : > { %v5529_v57 = vpop.eup %5528 }
 0x8e4   : > { %5034 = vmatmul.mubr.f32.vlgmr.msra.gmra.mxu1 %v5529_v57 }
 0x9a4   : > { %v4398_v48 = vpop.f32.mrf.mxu1 }
 0x9a5   : > { %v4399_v10 = vadd.f32 %v4599_v30, %v4398_v48 }
 0x9a6   : > { %v5035_v4 = vpop.f32.mrf.mxu1 }
 0x9a7   : > { %4402 = vst [vmem:[%s561_s27] sm:$0xff] %v4399_v10 }
 0x9a8   : > { %5687 = shalt.err (!%p5684_p3)
}
 0x9a9   : > { %s5688_s16 = scalar_lea.hbm %s8268_s15, 128  ;;  %s5692_s18 = scalar_lea.hbm %s8361_s29, 256 }
 0x9aa   : > { %p5689_p9 = scmp.ne.s32.totalorder %s8268_s15, %s5688_s16  ;;  %p5693_p12 = scmp.lt.s32.totalorder %s8268_s15, %s8361_s29 }
 0x9ab   : > { %p5694_p10 = scmp.lt.s32.totalorder %s5692_s18, %s5688_s16 }
 0x9ac   : > { %p5690_p2 = pnand %p5689_p9, %p5884_p5 }
 0x9ad   : > { %p5695_p7 = por %p5694_p10, %p5693_p12 }
 0x9ae   : > { %p5691_p4 = pneg %p5690_p2 }
 0x9b0   : > { %p5696_p8 = pnand %p5695_p7, %p5691_p4 }
 0x9b2   : > { %5699 = shalt.err (!%p5696_p8)
}
 0x9b3   : > { %5056 = dma.vmem_to_hbm [thread:$0]  (%p5884_p5), %s4418_s30, 128, %s8268_s15, %s4404_s24  }
 0x9b4 PF: > { %s8362_s0 = sld [smem:[#allocation18_spill]] }
 0x9b5   : > { %s8363_s20 = sld [smem:[#allocation16_spill]] }
 0x9ba   : > { %p5088_p0 = scmp.ge.s32.totalorder %s8362_s0, 2 }
 0x9bb   : > { %s4429_s14 = sand.u32 1, %s8363_s20  }
 0x9bc   : > { %p5075_p11 = pnand %p5088_p0, %p5888_p6  ;;  %s4430_s22 = scalar_lea.sflag [#allocation4], %s4429_s14 }
 0x9be   : > { %p5076_p1 = pneg %p5075_p11 }
 0x9c0   : > { %5729 = dma.done.wait (%p5076_p1), %s4430_s22, 128  }
 0x9c1   : > { %5731 = vsyncadd (%p5076_p1), %s4430_s22, 4294967168  ;;  %s8365_s21 = sld [smem:[#allocation19_spill]]  ;;  %s8368_s18 = smov %s5738_s19 }
 0x9c2   : > { %s8366_s17 = sld [smem:[#allocation17_spill]] }
 0x9c3   : > { %s8367_s20 = sld [smem:[#allocation20_spill]] }
 0x9c7   : > { %p28_p13 = scmp.ge.s32.totalorder %s8365_s21, 4  }
 0x9c8   : > { %s8369_s19 = smov %s8366_s17 }
 0x9c9   :  { %30 = sbr.rel (!%p28_p13) target bundleno = 10 (0xa), region = 136 }
 0x9ce   :  { %4435 = vsyncpa [#allocation3], 1 }
 0x9cf   :  { %4437 = vsyncpa [#allocation3 + $0x1], 1 }
 0x9d0   :  { %4438 = vsyncpa [#allocation6], 1 }
 0x9d1   :  { %4439 = vsyncpa [#allocation9], 1 }
 0x9d2   :  { %4440 = vsyncpa [#allocation4], 1 }
 0x9d3   :  { %4442 = vsyncpa [#allocation4 + $0x1], 1 }

</bundles_post_ra>
